<compile_context>
chip_gen: v6e
topology: v6e:2x2x1
jax: 0.10.0
libtpu: 0.0.40
codegen_flags: <defaults>
</compile_context>

<pallas_src>
import functools

import jax
import jax.numpy as jnp
from jax.experimental import pallas as pl
from jax.experimental.pallas import tpu as pltpu


# ----------------------------------------------------------------------------
# Parallel GEMM + bias kernel:  out = A @ W + b      (used for the vocab head)
# Grid is (N-blocks, M-blocks): the weight block index is constant along the
# inner M axis, so each (K, tn) weight tile is fetched once and stays resident
# while the (much smaller) activation tiles re-stream.
# ----------------------------------------------------------------------------
def _matmul_bias_kernel(a_ref, w_ref, b_ref, out_ref):
    acc = jnp.dot(a_ref[...].astype(w_ref.dtype), w_ref[...],
                  preferred_element_type=jnp.float32)
    out_ref[...] = (acc + b_ref[...]).astype(out_ref.dtype)


def _matmul_bias(a, w, b, out_dtype, tm=256, tn=512):
    M, K = a.shape
    K2, N = w.shape
    assert K == K2
    tm = min(tm, M)
    tn = min(tn, N)
    m_pad = ((M + tm - 1) // tm) * tm
    n_pad = ((N + tn - 1) // tn) * tn
    a_p = a if m_pad == M else jnp.pad(a, ((0, m_pad - M), (0, 0)))
    w_p = w if n_pad == N else jnp.pad(w, ((0, 0), (0, n_pad - N)))
    b_p = b if n_pad == N else jnp.pad(b, ((0, 0), (0, n_pad - N)))
    # TODO(synk): add a K grid axis + f32 accumulator for very large K (K = H
    # here, which stays VMEM-resident at realistic hidden sizes).
    out = pl.pallas_call(
        _matmul_bias_kernel,
        out_shape=jax.ShapeDtypeStruct((m_pad, n_pad), out_dtype),
        grid_spec=pltpu.PrefetchScalarGridSpec(
            num_scalar_prefetch=0,
            grid=(n_pad // tn, m_pad // tm),            # N outer, M inner
            in_specs=[
                pl.BlockSpec((tm, K), lambda j, i: (i, 0)),    # activations stream
                pl.BlockSpec((K, tn), lambda j, i: (0, j)),    # weight resident / j
                pl.BlockSpec((1, tn), lambda j, i: (0, j)),    # bias
            ],
            out_specs=pl.BlockSpec((tm, tn), lambda j, i: (i, j)),
        ),
        compiler_params=pltpu.CompilerParams(
            dimension_semantics=("parallel", "parallel")),
    )(a_p, w_p, b_p)
    if m_pad != M or n_pad != N:
        out = out[:M, :N]
    return out


# ----------------------------------------------------------------------------
# Fused recurrence kernel.  One grid step == one (batch-block, time-block).
#   tgt_ref  : (tt, bb, E)  f32   time-major input slab (cast to bf16 in-kernel)
#   h0 / c0  : (bb, H)      f32   initial state for this batch block
#   wih_ref  : (E, 4H)      bf16  input->gates weights   (resident, 1 buffer)
#   whh_ref  : (H, 4H)      bf16  recurrent gate weights (resident, 1 buffer)
#   b_ref    : (1, 4H)      f32   b_ih + b_hh            (resident, 1 buffer)
#   hs_ref   : (tt, bb, H)  bf16  all hidden states (feeds the vocab head)
#   hout/cout: (bb, H)      f32   constant-index output blocks -> VMEM carry
# ----------------------------------------------------------------------------
def _lstm_block_kernel(tgt_ref, h0_ref, c0_ref, wih_ref, whh_ref, b_ref,
                       hs_ref, hout_ref, cout_ref):
    t_blk = pl.program_id(1)          # time axis is grid axis 1 ("arbitrary")

    @pl.when(t_blk == 0)
    def _():
        hout_ref[...] = h0_ref[...]
        cout_ref[...] = c0_ref[...]

    tt = tgt_ref.shape[0]
    bb, h_dim = hout_ref.shape
    wih = wih_ref[...]
    whh = whh_ref[...]
    bias = jnp.broadcast_to(b_ref[...], (bb, 4 * h_dim))   # hoisted once

    h = hout_ref[...]                 # (bb, H) f32, carried across time blocks
    c = cout_ref[...]                 # (bb, H) f32

    # Statically unrolled over the time block (reduce tt if the unrolled
    # schedule starts spilling).  The x @ W_ih block GEMMs do not depend on the
    # h-chain, so the scheduler overlaps them with the serial gate math.
    for s in range(tt):
        x_s = tgt_ref[s].astype(jnp.bfloat16)                        # (bb, E)
        pre = (jnp.dot(x_s, wih, preferred_element_type=jnp.float32)
               + jnp.dot(h.astype(jnp.bfloat16), whh,
                         preferred_element_type=jnp.float32)
               + bias)                                               # (bb, 4H) f32
        # sigmoid(x) = 0.5 * tanh(0.5 x) + 0.5  -> single EUP op per gate.
        i_g = 0.5 * jnp.tanh(0.5 * pre[:, 0 * h_dim:1 * h_dim]) + 0.5
        f_g = 0.5 * jnp.tanh(0.5 * pre[:, 1 * h_dim:2 * h_dim]) + 0.5
        g_g = jnp.tanh(pre[:, 2 * h_dim:3 * h_dim])
        o_g = 0.5 * jnp.tanh(0.5 * pre[:, 3 * h_dim:4 * h_dim]) + 0.5
        c = f_g * c + i_g * g_g
        h = o_g * jnp.tanh(c)
        hs_ref[s] = h.astype(hs_ref.dtype)        # full-tile, lane-dense store

    hout_ref[...] = h
    cout_ref[...] = c


def _recurrence_vmem_limit(tt, bb, e_dim, h_dim):
    f32, bf16 = 4, 2
    buffers = (
        2 * tt * bb * e_dim * f32          # tgt blocks (double-buffered)
        + 2 * tt * bb * h_dim * bf16       # hs blocks (double-buffered)
        + 2 * 2 * bb * h_dim * f32         # h0, c0
        + 2 * 2 * bb * h_dim * f32         # hout, cout carries
        + (e_dim + h_dim) * 4 * h_dim * bf16  # W_ih, W_hh (single-buffered)
        + 4 * h_dim * f32                  # bias
    )
    # Generous headroom for in-kernel temporaries; clamp to v7x's 64 MiB VMEM.
    return min(64 * 1024 * 1024, max(32 * 1024 * 1024, 2 * buffers))


# ----------------------------------------------------------------------------
# Forward wrapper: mirrors LightDecoder.forward(tgt, hidden, encoder_final_hidden)
# ----------------------------------------------------------------------------
@functools.partial(jax.jit, static_argnames=("tt", "bb"))
def light_decoder_forward(tgt, hidden, encoder_final_hidden, params, tt=8, bb=None):
    """tgt: (B, T, E) f32; hidden = (h0, c0), each (1, B, H) f32.
    Returns (prediction (B, T, V) f32, (h_n (1,B,H), c_n (1,B,H))).
    tt: time steps per grid step.  bb: batch rows per grid step ("parallel"
    grid axis; set bb = B // 2 on v7x to use both TensorCores; default bb = B)."""
    del encoder_final_hidden          # unused by the reference module's forward
    h0, c0 = hidden
    B, T, E = tgt.shape
    H = h0.shape[-1]

    wih = params["wih"]     # (E, 4H) bf16 (pre-cast at init; no per-call convert)
    whh = params["whh"]     # (H, 4H) bf16
    wout = params["wout"]   # (H, V)  bf16
    b = params["b"]         # (1, 4H) f32  (= b_ih + b_hh)
    bout = params["bout"]   # (1, V)  f32
    V = wout.shape[-1]

    if bb is None:
        bb = B
    assert T % tt == 0, "time block must tile T"
    assert B % bb == 0, "batch block must tile B"
    # Best perf when E and H are multiples of 128 (lane-dense gate slices/stores).

    # Time-major input: per-step slabs in the kernel are contiguous (bb, E)
    # tiles instead of middle-axis gathers (transpose touches only E columns).
    tgt_t = jnp.transpose(tgt, (1, 0, 2))         # (T, B, E), stays f32

    resident = pl.Buffered(1)   # constant-index blocks: single-buffer the VMEM

    hs_t, h_n, c_n = pl.pallas_call(
        _lstm_block_kernel,
        out_shape=(
            jax.ShapeDtypeStruct((T, B, H), jnp.bfloat16),
            jax.ShapeDtypeStruct((B, H), jnp.float32),
            jax.ShapeDtypeStruct((B, H), jnp.float32),
        ),
        grid_spec=pltpu.PrefetchScalarGridSpec(
            num_scalar_prefetch=0,
            grid=(B // bb, T // tt),
            in_specs=[
                pl.BlockSpec((tt, bb, E), lambda b_, t: (t, b_, 0)),    # tgt slab
                pl.BlockSpec((bb, H), lambda b_, t: (b_, 0)),           # h0
                pl.BlockSpec((bb, H), lambda b_, t: (b_, 0)),           # c0
                pl.BlockSpec((E, 4 * H), lambda b_, t: (0, 0),
                             pipeline_mode=resident),                   # W_ih
                pl.BlockSpec((H, 4 * H), lambda b_, t: (0, 0),
                             pipeline_mode=resident),                   # W_hh
                pl.BlockSpec((1, 4 * H), lambda b_, t: (0, 0),
                             pipeline_mode=resident),                   # bias
            ],
            out_specs=(
                pl.BlockSpec((tt, bb, H), lambda b_, t: (t, b_, 0)),    # hidden states
                pl.BlockSpec((bb, H), lambda b_, t: (b_, 0)),           # h_n carry
                pl.BlockSpec((bb, H), lambda b_, t: (b_, 0)),           # c_n carry
            ),
        ),
        compiler_params=pltpu.CompilerParams(
            dimension_semantics=("parallel", "arbitrary"),   # batch ||, time serial
            vmem_limit_bytes=_recurrence_vmem_limit(tt, bb, E, H)),
    )(tgt_t, h0[0], c0[0], wih, whh, b)

    # Vocab head over all T*B rows (hs is bf16 and time-major, so the reshape is
    # layout-free).  Kept f32 to match the torch module's output dtype.
    # TODO(synk): emit bf16 here if the downstream consumer allows (halves the
    # largest HBM write of the decoder).
    pred_t = _matmul_bias(hs_t.reshape(T * B, H), wout, bout, out_dtype=jnp.float32)
    prediction = jnp.transpose(pred_t.reshape(T, B, V), (1, 0, 2))    # (B, T, V)

    return prediction, (h_n[None], c_n[None])


# ----------------------------------------------------------------------------
# Parameters (fused gate layout: columns [i | f | g | o] along the 4H axis,
# matching torch.nn.LSTM's chunking).  Matmul weights stored bf16 once here.
# ----------------------------------------------------------------------------
def init_params(key, embedding_dim, hidden_dim, vocab_size):
    ks = jax.random.split(key, 6)
    bound = 1.0 / float(hidden_dim) ** 0.5

    def u(k, shape):
        return jax.random.uniform(k, shape, jnp.float32, -bound, bound)

    wih = u(ks[0], (embedding_dim, 4 * hidden_dim)).astype(jnp.bfloat16)
    whh = u(ks[1], (hidden_dim, 4 * hidden_dim)).astype(jnp.bfloat16)
    b_ih = u(ks[2], (1, 4 * hidden_dim))
    b_hh = u(ks[3], (1, 4 * hidden_dim))
    wout = u(ks[4], (hidden_dim, vocab_size)).astype(jnp.bfloat16)
    bout = u(ks[5], (1, vocab_size))
    return {"wih": wih, "whh": whh, "b": b_ih + b_hh, "wout": wout, "bout": bout}


# ----------------------------------------------------------------------------
# Pure-JAX reference (same math as torch.nn.LSTM + Linear).  compute_dtype
# mirrors the kernel's bf16-matmul-input / f32-accumulate numerics when bf16.
# ----------------------------------------------------------------------------
def reference_forward(tgt, hidden, params, compute_dtype=jnp.float32):
    h0, c0 = hidden
    cd = compute_dtype
    wih = params["wih"].astype(cd)
    whh = params["whh"].astype(cd)
    wout = params["wout"].astype(cd)
    b, bout = params["b"], params["bout"]
    H = h0.shape[-1]

    def step(carry, x_t):
        h, c = carry
        pre = (jnp.dot(x_t.astype(cd), wih, preferred_element_type=jnp.float32)
               + jnp.dot(h.astype(cd), whh, preferred_element_type=jnp.float32)
               + b)
        i = jax.nn.sigmoid(pre[:, 0 * H:1 * H])
        f = jax.nn.sigmoid(pre[:, 1 * H:2 * H])
        g = jnp.tanh(pre[:, 2 * H:3 * H])
        o = jax.nn.sigmoid(pre[:, 3 * H:4 * H])
        c = f * c + i * g
        h = o * jnp.tanh(c)
        return (h, c), h

    (h_n, c_n), hs = jax.lax.scan(step, (h0[0], c0[0]),
                                  jnp.transpose(tgt, (1, 0, 2)))
    outputs = jnp.transpose(hs, (1, 0, 2))                          # (B, T, H)
    B, T, _ = outputs.shape
    pred = (jnp.dot(outputs.astype(cd).reshape(B * T, H), wout,
                    preferred_element_type=jnp.float32) + bout).reshape(B, T, -1)
    return pred, (h_n[None], c_n[None])


if __name__ == "__main__":
    # Small but TPU-tile-friendly shapes: E, H multiples of 128; B = one sublane tile.
    B, T, E, H, V = 8, 16, 128, 128, 256

    key = jax.random.PRNGKey(0)
    k_tgt, k_h, k_c, k_enc, k_p = jax.random.split(key, 5)

    tgt = jax.random.normal(k_tgt, (B, T, E), jnp.float32)
    h0 = jax.random.normal(k_h, (1, B, H), jnp.float32)
    c0 = jax.random.normal(k_c, (1, B, H), jnp.float32)
    encoder_final_hidden = jax.random.normal(k_enc, (1, B, H), jnp.float32)
    params = init_params(k_p, E, H, V)

    pred, (h_n, c_n) = light_decoder_forward(tgt, (h0, c0),
                                             encoder_final_hidden, params, tt=8)
    jax.block_until_ready((pred, h_n, c_n))
    assert pred.shape == (B, T, V) and pred.dtype == jnp.float32
    assert h_n.shape == (1, B, H) and c_n.shape == (1, B, H)

    # Numerics-matched reference (bf16 matmul inputs, f32 accumulation / gates).
    pred_bf, (h_bf, c_bf) = reference_forward(tgt, (h0, c0), params, jnp.bfloat16)
    assert jnp.allclose(pred, pred_bf, atol=3e-3, rtol=3e-3), "prediction mismatch"
    assert jnp.allclose(h_n, h_bf, atol=3e-3, rtol=3e-3), "h_n mismatch"
    assert jnp.allclose(c_n, c_bf, atol=3e-3, rtol=3e-3), "c_n mismatch"

    # Looser sanity check vs f32-activation math (bf16 weights in both paths).
    pred_f, (h_f, c_f) = reference_forward(tgt, (h0, c0), params, jnp.float32)
    assert jnp.allclose(pred, pred_f, atol=1e-1, rtol=1e-1), "prediction (f32) mismatch"
    assert jnp.allclose(h_n, h_f, atol=1e-1, rtol=1e-1), "h_n (f32) mismatch"
    assert jnp.allclose(c_n, c_f, atol=1e-1, rtol=1e-1), "c_n (f32) mismatch"

    print("KERNEL_OK")
</pallas_src>

<mosaic_0001>
module attributes {stable_mosaic.version = 11 : i64} {
  func.func @_lstm_block_kernel(%arg0: i32, %arg1: i32, %arg2: memref<8x8x128xf32, #tpu.memory_space<vmem>>, %arg3: memref<8x128xf32, #tpu.memory_space<vmem>>, %arg4: memref<8x128xf32, #tpu.memory_space<vmem>>, %arg5: memref<128x512xbf16, #tpu.memory_space<vmem>>, %arg6: memref<128x512xbf16, #tpu.memory_space<vmem>>, %arg7: memref<1x512xf32, #tpu.memory_space<vmem>>, %arg8: memref<8x8x128xbf16, #tpu.memory_space<vmem>>, %arg9: memref<8x128xf32, #tpu.memory_space<vmem>>, %arg10: memref<8x128xf32, #tpu.memory_space<vmem>>) attributes {dimension_semantics = [#tpu.dimension_semantics<parallel>, #tpu.dimension_semantics<arbitrary>], iteration_bounds = array<i64: 1, 2>, scalar_prefetch = 0 : i64, scratch_operands = 0 : i64, tpu.core_type = #tpu.core_type<tc>, window_params = [{transform_indices = @transform_0, window_bounds = array<i64: 8, 8, 128>}, {transform_indices = @transform_1, window_bounds = array<i64: 8, 128>}, {transform_indices = @transform_2, window_bounds = array<i64: 8, 128>}, {pipeline_mode = #tpu.pipeline_mode<synchronous>, transform_indices = @transform_3, window_bounds = array<i64: 128, 512>}, {pipeline_mode = #tpu.pipeline_mode<synchronous>, transform_indices = @transform_4, window_bounds = array<i64: 128, 512>}, {pipeline_mode = #tpu.pipeline_mode<synchronous>, transform_indices = @transform_5, window_bounds = array<i64: 1, 512>}, {transform_indices = @transform_6, window_bounds = array<i64: 8, 8, 128>}, {transform_indices = @transform_7, window_bounds = array<i64: 8, 128>}, {transform_indices = @transform_8, window_bounds = array<i64: 8, 128>}]} {
    %c0_i32 = arith.constant 0 : i32
    %0 = arith.cmpi eq, %arg1, %c0_i32 : i32
    %1 = arith.extui %0 : i1 to i32
    %c0_i32_0 = arith.constant 0 : i32
    %2 = arith.cmpi ne, %1, %c0_i32_0 : i32
    scf.if %2 {
      %c0_142 = arith.constant 0 : index
      %c0_143 = arith.constant 0 : index
      %356 = vector.load %arg3[%c0_142, %c0_143] : memref<8x128xf32, #tpu.memory_space<vmem>>, vector<8x128xf32>
      %c0_144 = arith.constant 0 : index
      %c0_145 = arith.constant 0 : index
      %357 = vector.load %arg9[%c0_144, %c0_145] : memref<8x128xf32, #tpu.memory_space<vmem>>, vector<8x128xf32>
      tpu.vector_store %arg9[%c0_144, %c0_145], %356 {strides = array<i32>} : memref<8x128xf32, #tpu.memory_space<vmem>>, vector<8x128xf32>,
      %c0_146 = arith.constant 0 : index
      %c0_147 = arith.constant 0 : index
      %358 = vector.load %arg4[%c0_146, %c0_147] : memref<8x128xf32, #tpu.memory_space<vmem>>, vector<8x128xf32>
      %c0_148 = arith.constant 0 : index
      %c0_149 = arith.constant 0 : index
      %359 = vector.load %arg10[%c0_148, %c0_149] : memref<8x128xf32, #tpu.memory_space<vmem>>, vector<8x128xf32>
      tpu.vector_store %arg10[%c0_148, %c0_149], %358 {strides = array<i32>} : memref<8x128xf32, #tpu.memory_space<vmem>>, vector<8x128xf32>,
    } else {
    }
    %c0 = arith.constant 0 : index
    %c0_1 = arith.constant 0 : index
    %3 = vector.load %arg5[%c0, %c0_1] : memref<128x512xbf16, #tpu.memory_space<vmem>>, vector<128x512xbf16>
    %c0_2 = arith.constant 0 : index
    %c0_3 = arith.constant 0 : index
    %4 = vector.load %arg6[%c0_2, %c0_3] : memref<128x512xbf16, #tpu.memory_space<vmem>>, vector<128x512xbf16>
    %c0_4 = arith.constant 0 : index
    %c0_5 = arith.constant 0 : index
    %5 = vector.load %arg7[%c0_4, %c0_5] : memref<1x512xf32, #tpu.memory_space<vmem>>, vector<1x512xf32>
    %6 = vector.shape_cast %5 : vector<1x512xf32> to vector<1x512xf32>
    %7 = vector.broadcast %6 : vector<1x512xf32> to vector<8x512xf32>
    %c0_6 = arith.constant 0 : index
    %c0_7 = arith.constant 0 : index
    %8 = vector.load %arg9[%c0_6, %c0_7] : memref<8x128xf32, #tpu.memory_space<vmem>>, vector<8x128xf32>
    %c0_8 = arith.constant 0 : index
    %c0_9 = arith.constant 0 : index
    %9 = vector.load %arg10[%c0_8, %c0_9] : memref<8x128xf32, #tpu.memory_space<vmem>>, vector<8x128xf32>
    %c0_10 = arith.constant 0 : index
    %c0_11 = arith.constant 0 : index
    %c0_12 = arith.constant 0 : index
    %10 = vector.load %arg2[%c0_10, %c0_11, %c0_12] : memref<8x8x128xf32, #tpu.memory_space<vmem>>, vector<1x8x128xf32>
    %11 = vector.shape_cast %10 : vector<1x8x128xf32> to vector<8x128xf32>
    %12 = arith.truncf %11 : vector<8x128xf32> to vector<8x128xbf16>
    %cst = arith.constant dense<0.000000e+00> : vector<8x512xf32>
    %13 = tpu.matmul %12, %3, %cst {dimension_numbers = #tpu.dot_dimension_numbers<[1], [0], [0], [1], [0, 0, 1, 1], [], []>} : vector<8x128xbf16>, vector<128x512xbf16>, vector<8x512xf32> -> vector<8x512xf32>
    %14 = arith.truncf %8 : vector<8x128xf32> to vector<8x128xbf16>
    %cst_13 = arith.constant dense<0.000000e+00> : vector<8x512xf32>
    %15 = tpu.matmul %14, %4, %cst_13 {dimension_numbers = #tpu.dot_dimension_numbers<[1], [0], [0], [1], [0, 0, 1, 1], [], []>} : vector<8x128xbf16>, vector<128x512xbf16>, vector<8x512xf32> -> vector<8x512xf32>
    %16 = arith.addf %13, %15 : vector<8x512xf32>
    %17 = arith.addf %16, %7 : vector<8x512xf32>
    %18 = vector.extract_strided_slice %17 {offsets = [0, 0], sizes = [8, 128], strides = [1, 1]} : vector<8x512xf32> to vector<8x128xf32>
    %cst_14 = arith.constant 5.000000e-01 : f32
    %19 = vector.broadcast %cst_14 : f32 to vector<8x128xf32>
    %20 = arith.mulf %19, %18 : vector<8x128xf32>
    %21 = math.tanh %20 : vector<8x128xf32>
    %cst_15 = arith.constant 5.000000e-01 : f32
    %22 = vector.broadcast %cst_15 : f32 to vector<8x128xf32>
    %23 = arith.mulf %22, %21 : vector<8x128xf32>
    %cst_16 = arith.constant 5.000000e-01 : f32
    %24 = vector.broadcast %cst_16 : f32 to vector<8x128xf32>
    %25 = arith.addf %23, %24 : vector<8x128xf32>
    %26 = vector.extract_strided_slice %17 {offsets = [0, 128], sizes = [8, 128], strides = [1, 1]} : vector<8x512xf32> to vector<8x128xf32>
    %cst_17 = arith.constant 5.000000e-01 : f32
    %27 = vector.broadcast %cst_17 : f32 to vector<8x128xf32>
    %28 = arith.mulf %27, %26 : vector<8x128xf32>
    %29 = math.tanh %28 : vector<8x128xf32>
    %cst_18 = arith.constant 5.000000e-01 : f32
    %30 = vector.broadcast %cst_18 : f32 to vector<8x128xf32>
    %31 = arith.mulf %30, %29 : vector<8x128xf32>
    %cst_19 = arith.constant 5.000000e-01 : f32
    %32 = vector.broadcast %cst_19 : f32 to vector<8x128xf32>
    %33 = arith.addf %31, %32 : vector<8x128xf32>
    %34 = vector.extract_strided_slice %17 {offsets = [0, 256], sizes = [8, 128], strides = [1, 1]} : vector<8x512xf32> to vector<8x128xf32>
    %35 = math.tanh %34 : vector<8x128xf32>
    %36 = vector.extract_strided_slice %17 {offsets = [0, 384], sizes = [8, 128], strides = [1, 1]} : vector<8x512xf32> to vector<8x128xf32>
    %cst_20 = arith.constant 5.000000e-01 : f32
    %37 = vector.broadcast %cst_20 : f32 to vector<8x128xf32>
    %38 = arith.mulf %37, %36 : vector<8x128xf32>
    %39 = math.tanh %38 : vector<8x128xf32>
    %cst_21 = arith.constant 5.000000e-01 : f32
    %40 = vector.broadcast %cst_21 : f32 to vector<8x128xf32>
    %41 = arith.mulf %40, %39 : vector<8x128xf32>
    %cst_22 = arith.constant 5.000000e-01 : f32
    %42 = vector.broadcast %cst_22 : f32 to vector<8x128xf32>
    %43 = arith.addf %41, %42 : vector<8x128xf32>
    %44 = arith.mulf %33, %9 : vector<8x128xf32>
    %45 = arith.mulf %25, %35 : vector<8x128xf32>
    %46 = arith.addf %44, %45 : vector<8x128xf32>
    %47 = math.tanh %46 : vector<8x128xf32>
    %48 = arith.mulf %43, %47 : vector<8x128xf32>
    %49 = arith.truncf %48 : vector<8x128xf32> to vector<8x128xbf16>
    %c0_23 = arith.constant 0 : index
    %c0_24 = arith.constant 0 : index
    %c0_25 = arith.constant 0 : index
    %50 = vector.load %arg8[%c0_23, %c0_24, %c0_25] : memref<8x8x128xbf16, #tpu.memory_space<vmem>>, vector<1x8x128xbf16>
    %51 = vector.shape_cast %50 : vector<1x8x128xbf16> to vector<8x128xbf16>
    %52 = vector.shape_cast %49 : vector<8x128xbf16> to vector<1x8x128xbf16>
    tpu.vector_store %arg8[%c0_23, %c0_24, %c0_25], %52 {strides = array<i32>} : memref<8x8x128xbf16, #tpu.memory_space<vmem>>, vector<1x8x128xbf16>,
    %c1 = arith.constant 1 : index
    %c0_26 = arith.constant 0 : index
    %c0_27 = arith.constant 0 : index
    %53 = vector.load %arg2[%c1, %c0_26, %c0_27] : memref<8x8x128xf32, #tpu.memory_space<vmem>>, vector<1x8x128xf32>
    %54 = vector.shape_cast %53 : vector<1x8x128xf32> to vector<8x128xf32>
    %55 = arith.truncf %54 : vector<8x128xf32> to vector<8x128xbf16>
    %cst_28 = arith.constant dense<0.000000e+00> : vector<8x512xf32>
    %56 = tpu.matmul %55, %3, %cst_28 {dimension_numbers = #tpu.dot_dimension_numbers<[1], [0], [0], [1], [0, 0, 1, 1], [], []>} : vector<8x128xbf16>, vector<128x512xbf16>, vector<8x512xf32> -> vector<8x512xf32>
    %57 = arith.truncf %48 : vector<8x128xf32> to vector<8x128xbf16>
    %cst_29 = arith.constant dense<0.000000e+00> : vector<8x512xf32>
    %58 = tpu.matmul %57, %4, %cst_29 {dimension_numbers = #tpu.dot_dimension_numbers<[1], [0], [0], [1], [0, 0, 1, 1], [], []>} : vector<8x128xbf16>, vector<128x512xbf16>, vector<8x512xf32> -> vector<8x512xf32>
    %59 = arith.addf %56, %58 : vector<8x512xf32>
    %60 = arith.addf %59, %7 : vector<8x512xf32>
    %61 = vector.extract_strided_slice %60 {offsets = [0, 0], sizes = [8, 128], strides = [1, 1]} : vector<8x512xf32> to vector<8x128xf32>
    %cst_30 = arith.constant 5.000000e-01 : f32
    %62 = vector.broadcast %cst_30 : f32 to vector<8x128xf32>
    %63 = arith.mulf %62, %61 : vector<8x128xf32>
    %64 = math.tanh %63 : vector<8x128xf32>
    %cst_31 = arith.constant 5.000000e-01 : f32
    %65 = vector.broadcast %cst_31 : f32 to vector<8x128xf32>
    %66 = arith.mulf %65, %64 : vector<8x128xf32>
    %cst_32 = arith.constant 5.000000e-01 : f32
    %67 = vector.broadcast %cst_32 : f32 to vector<8x128xf32>
    %68 = arith.addf %66, %67 : vector<8x128xf32>
    %69 = vector.extract_strided_slice %60 {offsets = [0, 128], sizes = [8, 128], strides = [1, 1]} : vector<8x512xf32> to vector<8x128xf32>
    %cst_33 = arith.constant 5.000000e-01 : f32
    %70 = vector.broadcast %cst_33 : f32 to vector<8x128xf32>
    %71 = arith.mulf %70, %69 : vector<8x128xf32>
    %72 = math.tanh %71 : vector<8x128xf32>
    %cst_34 = arith.constant 5.000000e-01 : f32
    %73 = vector.broadcast %cst_34 : f32 to vector<8x128xf32>
    %74 = arith.mulf %73, %72 : vector<8x128xf32>
    %cst_35 = arith.constant 5.000000e-01 : f32
    %75 = vector.broadcast %cst_35 : f32 to vector<8x128xf32>
    %76 = arith.addf %74, %75 : vector<8x128xf32>
    %77 = vector.extract_strided_slice %60 {offsets = [0, 256], sizes = [8, 128], strides = [1, 1]} : vector<8x512xf32> to vector<8x128xf32>
    %78 = math.tanh %77 : vector<8x128xf32>
    %79 = vector.extract_strided_slice %60 {offsets = [0, 384], sizes = [8, 128], strides = [1, 1]} : vector<8x512xf32> to vector<8x128xf32>
    %cst_36 = arith.constant 5.000000e-01 : f32
    %80 = vector.broadcast %cst_36 : f32 to vector<8x128xf32>
    %81 = arith.mulf %80, %79 : vector<8x128xf32>
    %82 = math.tanh %81 : vector<8x128xf32>
    %cst_37 = arith.constant 5.000000e-01 : f32
    %83 = vector.broadcast %cst_37 : f32 to vector<8x128xf32>
    %84 = arith.mulf %83, %82 : vector<8x128xf32>
    %cst_38 = arith.constant 5.000000e-01 : f32
    %85 = vector.broadcast %cst_38 : f32 to vector<8x128xf32>
    %86 = arith.addf %84, %85 : vector<8x128xf32>
    %87 = arith.mulf %76, %46 : vector<8x128xf32>
    %88 = arith.mulf %68, %78 : vector<8x128xf32>
    %89 = arith.addf %87, %88 : vector<8x128xf32>
    %90 = math.tanh %89 : vector<8x128xf32>
    %91 = arith.mulf %86, %90 : vector<8x128xf32>
    %92 = arith.truncf %91 : vector<8x128xf32> to vector<8x128xbf16>
    %c1_39 = arith.constant 1 : index
    %c0_40 = arith.constant 0 : index
    %c0_41 = arith.constant 0 : index
    %93 = vector.load %arg8[%c1_39, %c0_40, %c0_41] : memref<8x8x128xbf16, #tpu.memory_space<vmem>>, vector<1x8x128xbf16>
    %94 = vector.shape_cast %93 : vector<1x8x128xbf16> to vector<8x128xbf16>
    %95 = vector.shape_cast %92 : vector<8x128xbf16> to vector<1x8x128xbf16>
    tpu.vector_store %arg8[%c1_39, %c0_40, %c0_41], %95 {strides = array<i32>} : memref<8x8x128xbf16, #tpu.memory_space<vmem>>, vector<1x8x128xbf16>,
    %c2 = arith.constant 2 : index
    %c0_42 = arith.constant 0 : index
    %c0_43 = arith.constant 0 : index
    %96 = vector.load %arg2[%c2, %c0_42, %c0_43] : memref<8x8x128xf32, #tpu.memory_space<vmem>>, vector<1x8x128xf32>
    %97 = vector.shape_cast %96 : vector<1x8x128xf32> to vector<8x128xf32>
    %98 = arith.truncf %97 : vector<8x128xf32> to vector<8x128xbf16>
    %cst_44 = arith.constant dense<0.000000e+00> : vector<8x512xf32>
    %99 = tpu.matmul %98, %3, %cst_44 {dimension_numbers = #tpu.dot_dimension_numbers<[1], [0], [0], [1], [0, 0, 1, 1], [], []>} : vector<8x128xbf16>, vector<128x512xbf16>, vector<8x512xf32> -> vector<8x512xf32>
    %100 = arith.truncf %91 : vector<8x128xf32> to vector<8x128xbf16>
    %cst_45 = arith.constant dense<0.000000e+00> : vector<8x512xf32>
    %101 = tpu.matmul %100, %4, %cst_45 {dimension_numbers = #tpu.dot_dimension_numbers<[1], [0], [0], [1], [0, 0, 1, 1], [], []>} : vector<8x128xbf16>, vector<128x512xbf16>, vector<8x512xf32> -> vector<8x512xf32>
    %102 = arith.addf %99, %101 : vector<8x512xf32>
    %103 = arith.addf %102, %7 : vector<8x512xf32>
    %104 = vector.extract_strided_slice %103 {offsets = [0, 0], sizes = [8, 128], strides = [1, 1]} : vector<8x512xf32> to vector<8x128xf32>
    %cst_46 = arith.constant 5.000000e-01 : f32
    %105 = vector.broadcast %cst_46 : f32 to vector<8x128xf32>
    %106 = arith.mulf %105, %104 : vector<8x128xf32>
    %107 = math.tanh %106 : vector<8x128xf32>
    %cst_47 = arith.constant 5.000000e-01 : f32
    %108 = vector.broadcast %cst_47 : f32 to vector<8x128xf32>
    %109 = arith.mulf %108, %107 : vector<8x128xf32>
    %cst_48 = arith.constant 5.000000e-01 : f32
    %110 = vector.broadcast %cst_48 : f32 to vector<8x128xf32>
    %111 = arith.addf %109, %110 : vector<8x128xf32>
    %112 = vector.extract_strided_slice %103 {offsets = [0, 128], sizes = [8, 128], strides = [1, 1]} : vector<8x512xf32> to vector<8x128xf32>
    %cst_49 = arith.constant 5.000000e-01 : f32
    %113 = vector.broadcast %cst_49 : f32 to vector<8x128xf32>
    %114 = arith.mulf %113, %112 : vector<8x128xf32>
    %115 = math.tanh %114 : vector<8x128xf32>
    %cst_50 = arith.constant 5.000000e-01 : f32
    %116 = vector.broadcast %cst_50 : f32 to vector<8x128xf32>
    %117 = arith.mulf %116, %115 : vector<8x128xf32>
    %cst_51 = arith.constant 5.000000e-01 : f32
    %118 = vector.broadcast %cst_51 : f32 to vector<8x128xf32>
    %119 = arith.addf %117, %118 : vector<8x128xf32>
    %120 = vector.extract_strided_slice %103 {offsets = [0, 256], sizes = [8, 128], strides = [1, 1]} : vector<8x512xf32> to vector<8x128xf32>
    %121 = math.tanh %120 : vector<8x128xf32>
    %122 = vector.extract_strided_slice %103 {offsets = [0, 384], sizes = [8, 128], strides = [1, 1]} : vector<8x512xf32> to vector<8x128xf32>
    %cst_52 = arith.constant 5.000000e-01 : f32
    %123 = vector.broadcast %cst_52 : f32 to vector<8x128xf32>
    %124 = arith.mulf %123, %122 : vector<8x128xf32>
    %125 = math.tanh %124 : vector<8x128xf32>
    %cst_53 = arith.constant 5.000000e-01 : f32
    %126 = vector.broadcast %cst_53 : f32 to vector<8x128xf32>
    %127 = arith.mulf %126, %125 : vector<8x128xf32>
    %cst_54 = arith.constant 5.000000e-01 : f32
    %128 = vector.broadcast %cst_54 : f32 to vector<8x128xf32>
    %129 = arith.addf %127, %128 : vector<8x128xf32>
    %130 = arith.mulf %119, %89 : vector<8x128xf32>
    %131 = arith.mulf %111, %121 : vector<8x128xf32>
    %132 = arith.addf %130, %131 : vector<8x128xf32>
    %133 = math.tanh %132 : vector<8x128xf32>
    %134 = arith.mulf %129, %133 : vector<8x128xf32>
    %135 = arith.truncf %134 : vector<8x128xf32> to vector<8x128xbf16>
    %c2_55 = arith.constant 2 : index
    %c0_56 = arith.constant 0 : index
    %c0_57 = arith.constant 0 : index
    %136 = vector.load %arg8[%c2_55, %c0_56, %c0_57] : memref<8x8x128xbf16, #tpu.memory_space<vmem>>, vector<1x8x128xbf16>
    %137 = vector.shape_cast %136 : vector<1x8x128xbf16> to vector<8x128xbf16>
    %138 = vector.shape_cast %135 : vector<8x128xbf16> to vector<1x8x128xbf16>
    tpu.vector_store %arg8[%c2_55, %c0_56, %c0_57], %138 {strides = array<i32>} : memref<8x8x128xbf16, #tpu.memory_space<vmem>>, vector<1x8x128xbf16>,
    %c3 = arith.constant 3 : index
    %c0_58 = arith.constant 0 : index
    %c0_59 = arith.constant 0 : index
    %139 = vector.load %arg2[%c3, %c0_58, %c0_59] : memref<8x8x128xf32, #tpu.memory_space<vmem>>, vector<1x8x128xf32>
    %140 = vector.shape_cast %139 : vector<1x8x128xf32> to vector<8x128xf32>
    %141 = arith.truncf %140 : vector<8x128xf32> to vector<8x128xbf16>
    %cst_60 = arith.constant dense<0.000000e+00> : vector<8x512xf32>
    %142 = tpu.matmul %141, %3, %cst_60 {dimension_numbers = #tpu.dot_dimension_numbers<[1], [0], [0], [1], [0, 0, 1, 1], [], []>} : vector<8x128xbf16>, vector<128x512xbf16>, vector<8x512xf32> -> vector<8x512xf32>
    %143 = arith.truncf %134 : vector<8x128xf32> to vector<8x128xbf16>
    %cst_61 = arith.constant dense<0.000000e+00> : vector<8x512xf32>
    %144 = tpu.matmul %143, %4, %cst_61 {dimension_numbers = #tpu.dot_dimension_numbers<[1], [0], [0], [1], [0, 0, 1, 1], [], []>} : vector<8x128xbf16>, vector<128x512xbf16>, vector<8x512xf32> -> vector<8x512xf32>
    %145 = arith.addf %142, %144 : vector<8x512xf32>
    %146 = arith.addf %145, %7 : vector<8x512xf32>
    %147 = vector.extract_strided_slice %146 {offsets = [0, 0], sizes = [8, 128], strides = [1, 1]} : vector<8x512xf32> to vector<8x128xf32>
    %cst_62 = arith.constant 5.000000e-01 : f32
    %148 = vector.broadcast %cst_62 : f32 to vector<8x128xf32>
    %149 = arith.mulf %148, %147 : vector<8x128xf32>
    %150 = math.tanh %149 : vector<8x128xf32>
    %cst_63 = arith.constant 5.000000e-01 : f32
    %151 = vector.broadcast %cst_63 : f32 to vector<8x128xf32>
    %152 = arith.mulf %151, %150 : vector<8x128xf32>
    %cst_64 = arith.constant 5.000000e-01 : f32
    %153 = vector.broadcast %cst_64 : f32 to vector<8x128xf32>
    %154 = arith.addf %152, %153 : vector<8x128xf32>
    %155 = vector.extract_strided_slice %146 {offsets = [0, 128], sizes = [8, 128], strides = [1, 1]} : vector<8x512xf32> to vector<8x128xf32>
    %cst_65 = arith.constant 5.000000e-01 : f32
    %156 = vector.broadcast %cst_65 : f32 to vector<8x128xf32>
    %157 = arith.mulf %156, %155 : vector<8x128xf32>
    %158 = math.tanh %157 : vector<8x128xf32>
    %cst_66 = arith.constant 5.000000e-01 : f32
    %159 = vector.broadcast %cst_66 : f32 to vector<8x128xf32>
    %160 = arith.mulf %159, %158 : vector<8x128xf32>
    %cst_67 = arith.constant 5.000000e-01 : f32
    %161 = vector.broadcast %cst_67 : f32 to vector<8x128xf32>
    %162 = arith.addf %160, %161 : vector<8x128xf32>
    %163 = vector.extract_strided_slice %146 {offsets = [0, 256], sizes = [8, 128], strides = [1, 1]} : vector<8x512xf32> to vector<8x128xf32>
    %164 = math.tanh %163 : vector<8x128xf32>
    %165 = vector.extract_strided_slice %146 {offsets = [0, 384], sizes = [8, 128], strides = [1, 1]} : vector<8x512xf32> to vector<8x128xf32>
    %cst_68 = arith.constant 5.000000e-01 : f32
    %166 = vector.broadcast %cst_68 : f32 to vector<8x128xf32>
    %167 = arith.mulf %166, %165 : vector<8x128xf32>
    %168 = math.tanh %167 : vector<8x128xf32>
    %cst_69 = arith.constant 5.000000e-01 : f32
    %169 = vector.broadcast %cst_69 : f32 to vector<8x128xf32>
    %170 = arith.mulf %169, %168 : vector<8x128xf32>
    %cst_70 = arith.constant 5.000000e-01 : f32
    %171 = vector.broadcast %cst_70 : f32 to vector<8x128xf32>
    %172 = arith.addf %170, %171 : vector<8x128xf32>
    %173 = arith.mulf %162, %132 : vector<8x128xf32>
    %174 = arith.mulf %154, %164 : vector<8x128xf32>
    %175 = arith.addf %173, %174 : vector<8x128xf32>
    %176 = math.tanh %175 : vector<8x128xf32>
    %177 = arith.mulf %172, %176 : vector<8x128xf32>
    %178 = arith.truncf %177 : vector<8x128xf32> to vector<8x128xbf16>
    %c3_71 = arith.constant 3 : index
    %c0_72 = arith.constant 0 : index
    %c0_73 = arith.constant 0 : index
    %179 = vector.load %arg8[%c3_71, %c0_72, %c0_73] : memref<8x8x128xbf16, #tpu.memory_space<vmem>>, vector<1x8x128xbf16>
    %180 = vector.shape_cast %179 : vector<1x8x128xbf16> to vector<8x128xbf16>
    %181 = vector.shape_cast %178 : vector<8x128xbf16> to vector<1x8x128xbf16>
    tpu.vector_store %arg8[%c3_71, %c0_72, %c0_73], %181 {strides = array<i32>} : memref<8x8x128xbf16, #tpu.memory_space<vmem>>, vector<1x8x128xbf16>,
    %c4 = arith.constant 4 : index
    %c0_74 = arith.constant 0 : index
    %c0_75 = arith.constant 0 : index
    %182 = vector.load %arg2[%c4, %c0_74, %c0_75] : memref<8x8x128xf32, #tpu.memory_space<vmem>>, vector<1x8x128xf32>
    %183 = vector.shape_cast %182 : vector<1x8x128xf32> to vector<8x128xf32>
    %184 = arith.truncf %183 : vector<8x128xf32> to vector<8x128xbf16>
    %cst_76 = arith.constant dense<0.000000e+00> : vector<8x512xf32>
    %185 = tpu.matmul %184, %3, %cst_76 {dimension_numbers = #tpu.dot_dimension_numbers<[1], [0], [0], [1], [0, 0, 1, 1], [], []>} : vector<8x128xbf16>, vector<128x512xbf16>, vector<8x512xf32> -> vector<8x512xf32>
    %186 = arith.truncf %177 : vector<8x128xf32> to vector<8x128xbf16>
    %cst_77 = arith.constant dense<0.000000e+00> : vector<8x512xf32>
    %187 = tpu.matmul %186, %4, %cst_77 {dimension_numbers = #tpu.dot_dimension_numbers<[1], [0], [0], [1], [0, 0, 1, 1], [], []>} : vector<8x128xbf16>, vector<128x512xbf16>, vector<8x512xf32> -> vector<8x512xf32>
    %188 = arith.addf %185, %187 : vector<8x512xf32>
    %189 = arith.addf %188, %7 : vector<8x512xf32>
    %190 = vector.extract_strided_slice %189 {offsets = [0, 0], sizes = [8, 128], strides = [1, 1]} : vector<8x512xf32> to vector<8x128xf32>
    %cst_78 = arith.constant 5.000000e-01 : f32
    %191 = vector.broadcast %cst_78 : f32 to vector<8x128xf32>
    %192 = arith.mulf %191, %190 : vector<8x128xf32>
    %193 = math.tanh %192 : vector<8x128xf32>
    %cst_79 = arith.constant 5.000000e-01 : f32
    %194 = vector.broadcast %cst_79 : f32 to vector<8x128xf32>
    %195 = arith.mulf %194, %193 : vector<8x128xf32>
    %cst_80 = arith.constant 5.000000e-01 : f32
    %196 = vector.broadcast %cst_80 : f32 to vector<8x128xf32>
    %197 = arith.addf %195, %196 : vector<8x128xf32>
    %198 = vector.extract_strided_slice %189 {offsets = [0, 128], sizes = [8, 128], strides = [1, 1]} : vector<8x512xf32> to vector<8x128xf32>
    %cst_81 = arith.constant 5.000000e-01 : f32
    %199 = vector.broadcast %cst_81 : f32 to vector<8x128xf32>
    %200 = arith.mulf %199, %198 : vector<8x128xf32>
    %201 = math.tanh %200 : vector<8x128xf32>
    %cst_82 = arith.constant 5.000000e-01 : f32
    %202 = vector.broadcast %cst_82 : f32 to vector<8x128xf32>
    %203 = arith.mulf %202, %201 : vector<8x128xf32>
    %cst_83 = arith.constant 5.000000e-01 : f32
    %204 = vector.broadcast %cst_83 : f32 to vector<8x128xf32>
    %205 = arith.addf %203, %204 : vector<8x128xf32>
    %206 = vector.extract_strided_slice %189 {offsets = [0, 256], sizes = [8, 128], strides = [1, 1]} : vector<8x512xf32> to vector<8x128xf32>
    %207 = math.tanh %206 : vector<8x128xf32>
    %208 = vector.extract_strided_slice %189 {offsets = [0, 384], sizes = [8, 128], strides = [1, 1]} : vector<8x512xf32> to vector<8x128xf32>
    %cst_84 = arith.constant 5.000000e-01 : f32
    %209 = vector.broadcast %cst_84 : f32 to vector<8x128xf32>
    %210 = arith.mulf %209, %208 : vector<8x128xf32>
    %211 = math.tanh %210 : vector<8x128xf32>
    %cst_85 = arith.constant 5.000000e-01 : f32
    %212 = vector.broadcast %cst_85 : f32 to vector<8x128xf32>
    %213 = arith.mulf %212, %211 : vector<8x128xf32>
    %cst_86 = arith.constant 5.000000e-01 : f32
    %214 = vector.broadcast %cst_86 : f32 to vector<8x128xf32>
    %215 = arith.addf %213, %214 : vector<8x128xf32>
    %216 = arith.mulf %205, %175 : vector<8x128xf32>
    %217 = arith.mulf %197, %207 : vector<8x128xf32>
    %218 = arith.addf %216, %217 : vector<8x128xf32>
    %219 = math.tanh %218 : vector<8x128xf32>
    %220 = arith.mulf %215, %219 : vector<8x128xf32>
    %221 = arith.truncf %220 : vector<8x128xf32> to vector<8x128xbf16>
    %c4_87 = arith.constant 4 : index
    %c0_88 = arith.constant 0 : index
    %c0_89 = arith.constant 0 : index
    %222 = vector.load %arg8[%c4_87, %c0_88, %c0_89] : memref<8x8x128xbf16, #tpu.memory_space<vmem>>, vector<1x8x128xbf16>
    %223 = vector.shape_cast %222 : vector<1x8x128xbf16> to vector<8x128xbf16>
    %224 = vector.shape_cast %221 : vector<8x128xbf16> to vector<1x8x128xbf16>
    tpu.vector_store %arg8[%c4_87, %c0_88, %c0_89], %224 {strides = array<i32>} : memref<8x8x128xbf16, #tpu.memory_space<vmem>>, vector<1x8x128xbf16>,
    %c5 = arith.constant 5 : index
    %c0_90 = arith.constant 0 : index
    %c0_91 = arith.constant 0 : index
    %225 = vector.load %arg2[%c5, %c0_90, %c0_91] : memref<8x8x128xf32, #tpu.memory_space<vmem>>, vector<1x8x128xf32>
    %226 = vector.shape_cast %225 : vector<1x8x128xf32> to vector<8x128xf32>
    %227 = arith.truncf %226 : vector<8x128xf32> to vector<8x128xbf16>
    %cst_92 = arith.constant dense<0.000000e+00> : vector<8x512xf32>
    %228 = tpu.matmul %227, %3, %cst_92 {dimension_numbers = #tpu.dot_dimension_numbers<[1], [0], [0], [1], [0, 0, 1, 1], [], []>} : vector<8x128xbf16>, vector<128x512xbf16>, vector<8x512xf32> -> vector<8x512xf32>
    %229 = arith.truncf %220 : vector<8x128xf32> to vector<8x128xbf16>
    %cst_93 = arith.constant dense<0.000000e+00> : vector<8x512xf32>
    %230 = tpu.matmul %229, %4, %cst_93 {dimension_numbers = #tpu.dot_dimension_numbers<[1], [0], [0], [1], [0, 0, 1, 1], [], []>} : vector<8x128xbf16>, vector<128x512xbf16>, vector<8x512xf32> -> vector<8x512xf32>
    %231 = arith.addf %228, %230 : vector<8x512xf32>
    %232 = arith.addf %231, %7 : vector<8x512xf32>
    %233 = vector.extract_strided_slice %232 {offsets = [0, 0], sizes = [8, 128], strides = [1, 1]} : vector<8x512xf32> to vector<8x128xf32>
    %cst_94 = arith.constant 5.000000e-01 : f32
    %234 = vector.broadcast %cst_94 : f32 to vector<8x128xf32>
    %235 = arith.mulf %234, %233 : vector<8x128xf32>
    %236 = math.tanh %235 : vector<8x128xf32>
    %cst_95 = arith.constant 5.000000e-01 : f32
    %237 = vector.broadcast %cst_95 : f32 to vector<8x128xf32>
    %238 = arith.mulf %237, %236 : vector<8x128xf32>
    %cst_96 = arith.constant 5.000000e-01 : f32
    %239 = vector.broadcast %cst_96 : f32 to vector<8x128xf32>
    %240 = arith.addf %238, %239 : vector<8x128xf32>
    %241 = vector.extract_strided_slice %232 {offsets = [0, 128], sizes = [8, 128], strides = [1, 1]} : vector<8x512xf32> to vector<8x128xf32>
    %cst_97 = arith.constant 5.000000e-01 : f32
    %242 = vector.broadcast %cst_97 : f32 to vector<8x128xf32>
    %243 = arith.mulf %242, %241 : vector<8x128xf32>
    %244 = math.tanh %243 : vector<8x128xf32>
    %cst_98 = arith.constant 5.000000e-01 : f32
    %245 = vector.broadcast %cst_98 : f32 to vector<8x128xf32>
    %246 = arith.mulf %245, %244 : vector<8x128xf32>
    %cst_99 = arith.constant 5.000000e-01 : f32
    %247 = vector.broadcast %cst_99 : f32 to vector<8x128xf32>
    %248 = arith.addf %246, %247 : vector<8x128xf32>
    %249 = vector.extract_strided_slice %232 {offsets = [0, 256], sizes = [8, 128], strides = [1, 1]} : vector<8x512xf32> to vector<8x128xf32>
    %250 = math.tanh %249 : vector<8x128xf32>
    %251 = vector.extract_strided_slice %232 {offsets = [0, 384], sizes = [8, 128], strides = [1, 1]} : vector<8x512xf32> to vector<8x128xf32>
    %cst_100 = arith.constant 5.000000e-01 : f32
    %252 = vector.broadcast %cst_100 : f32 to vector<8x128xf32>
    %253 = arith.mulf %252, %251 : vector<8x128xf32>
    %254 = math.tanh %253 : vector<8x128xf32>
    %cst_101 = arith.constant 5.000000e-01 : f32
    %255 = vector.broadcast %cst_101 : f32 to vector<8x128xf32>
    %256 = arith.mulf %255, %254 : vector<8x128xf32>
    %cst_102 = arith.constant 5.000000e-01 : f32
    %257 = vector.broadcast %cst_102 : f32 to vector<8x128xf32>
    %258 = arith.addf %256, %257 : vector<8x128xf32>
    %259 = arith.mulf %248, %218 : vector<8x128xf32>
    %260 = arith.mulf %240, %250 : vector<8x128xf32>
    %261 = arith.addf %259, %260 : vector<8x128xf32>
    %262 = math.tanh %261 : vector<8x128xf32>
    %263 = arith.mulf %258, %262 : vector<8x128xf32>
    %264 = arith.truncf %263 : vector<8x128xf32> to vector<8x128xbf16>
    %c5_103 = arith.constant 5 : index
    %c0_104 = arith.constant 0 : index
    %c0_105 = arith.constant 0 : index
    %265 = vector.load %arg8[%c5_103, %c0_104, %c0_105] : memref<8x8x128xbf16, #tpu.memory_space<vmem>>, vector<1x8x128xbf16>
    %266 = vector.shape_cast %265 : vector<1x8x128xbf16> to vector<8x128xbf16>
    %267 = vector.shape_cast %264 : vector<8x128xbf16> to vector<1x8x128xbf16>
    tpu.vector_store %arg8[%c5_103, %c0_104, %c0_105], %267 {strides = array<i32>} : memref<8x8x128xbf16, #tpu.memory_space<vmem>>, vector<1x8x128xbf16>,
    %c6 = arith.constant 6 : index
    %c0_106 = arith.constant 0 : index
    %c0_107 = arith.constant 0 : index
    %268 = vector.load %arg2[%c6, %c0_106, %c0_107] : memref<8x8x128xf32, #tpu.memory_space<vmem>>, vector<1x8x128xf32>
    %269 = vector.shape_cast %268 : vector<1x8x128xf32> to vector<8x128xf32>
    %270 = arith.truncf %269 : vector<8x128xf32> to vector<8x128xbf16>
    %cst_108 = arith.constant dense<0.000000e+00> : vector<8x512xf32>
    %271 = tpu.matmul %270, %3, %cst_108 {dimension_numbers = #tpu.dot_dimension_numbers<[1], [0], [0], [1], [0, 0, 1, 1], [], []>} : vector<8x128xbf16>, vector<128x512xbf16>, vector<8x512xf32> -> vector<8x512xf32>
    %272 = arith.truncf %263 : vector<8x128xf32> to vector<8x128xbf16>
    %cst_109 = arith.constant dense<0.000000e+00> : vector<8x512xf32>
    %273 = tpu.matmul %272, %4, %cst_109 {dimension_numbers = #tpu.dot_dimension_numbers<[1], [0], [0], [1], [0, 0, 1, 1], [], []>} : vector<8x128xbf16>, vector<128x512xbf16>, vector<8x512xf32> -> vector<8x512xf32>
    %274 = arith.addf %271, %273 : vector<8x512xf32>
    %275 = arith.addf %274, %7 : vector<8x512xf32>
    %276 = vector.extract_strided_slice %275 {offsets = [0, 0], sizes = [8, 128], strides = [1, 1]} : vector<8x512xf32> to vector<8x128xf32>
    %cst_110 = arith.constant 5.000000e-01 : f32
    %277 = vector.broadcast %cst_110 : f32 to vector<8x128xf32>
    %278 = arith.mulf %277, %276 : vector<8x128xf32>
    %279 = math.tanh %278 : vector<8x128xf32>
    %cst_111 = arith.constant 5.000000e-01 : f32
    %280 = vector.broadcast %cst_111 : f32 to vector<8x128xf32>
    %281 = arith.mulf %280, %279 : vector<8x128xf32>
    %cst_112 = arith.constant 5.000000e-01 : f32
    %282 = vector.broadcast %cst_112 : f32 to vector<8x128xf32>
    %283 = arith.addf %281, %282 : vector<8x128xf32>
    %284 = vector.extract_strided_slice %275 {offsets = [0, 128], sizes = [8, 128], strides = [1, 1]} : vector<8x512xf32> to vector<8x128xf32>
    %cst_113 = arith.constant 5.000000e-01 : f32
    %285 = vector.broadcast %cst_113 : f32 to vector<8x128xf32>
    %286 = arith.mulf %285, %284 : vector<8x128xf32>
    %287 = math.tanh %286 : vector<8x128xf32>
    %cst_114 = arith.constant 5.000000e-01 : f32
    %288 = vector.broadcast %cst_114 : f32 to vector<8x128xf32>
    %289 = arith.mulf %288, %287 : vector<8x128xf32>
    %cst_115 = arith.constant 5.000000e-01 : f32
    %290 = vector.broadcast %cst_115 : f32 to vector<8x128xf32>
    %291 = arith.addf %289, %290 : vector<8x128xf32>
    %292 = vector.extract_strided_slice %275 {offsets = [0, 256], sizes = [8, 128], strides = [1, 1]} : vector<8x512xf32> to vector<8x128xf32>
    %293 = math.tanh %292 : vector<8x128xf32>
    %294 = vector.extract_strided_slice %275 {offsets = [0, 384], sizes = [8, 128], strides = [1, 1]} : vector<8x512xf32> to vector<8x128xf32>
    %cst_116 = arith.constant 5.000000e-01 : f32
    %295 = vector.broadcast %cst_116 : f32 to vector<8x128xf32>
    %296 = arith.mulf %295, %294 : vector<8x128xf32>
    %297 = math.tanh %296 : vector<8x128xf32>
    %cst_117 = arith.constant 5.000000e-01 : f32
    %298 = vector.broadcast %cst_117 : f32 to vector<8x128xf32>
    %299 = arith.mulf %298, %297 : vector<8x128xf32>
    %cst_118 = arith.constant 5.000000e-01 : f32
    %300 = vector.broadcast %cst_118 : f32 to vector<8x128xf32>
    %301 = arith.addf %299, %300 : vector<8x128xf32>
    %302 = arith.mulf %291, %261 : vector<8x128xf32>
    %303 = arith.mulf %283, %293 : vector<8x128xf32>
    %304 = arith.addf %302, %303 : vector<8x128xf32>
    %305 = math.tanh %304 : vector<8x128xf32>
    %306 = arith.mulf %301, %305 : vector<8x128xf32>
    %307 = arith.truncf %306 : vector<8x128xf32> to vector<8x128xbf16>
    %c6_119 = arith.constant 6 : index
    %c0_120 = arith.constant 0 : index
    %c0_121 = arith.constant 0 : index
    %308 = vector.load %arg8[%c6_119, %c0_120, %c0_121] : memref<8x8x128xbf16, #tpu.memory_space<vmem>>, vector<1x8x128xbf16>
    %309 = vector.shape_cast %308 : vector<1x8x128xbf16> to vector<8x128xbf16>
    %310 = vector.shape_cast %307 : vector<8x128xbf16> to vector<1x8x128xbf16>
    tpu.vector_store %arg8[%c6_119, %c0_120, %c0_121], %310 {strides = array<i32>} : memref<8x8x128xbf16, #tpu.memory_space<vmem>>, vector<1x8x128xbf16>,
    %c7 = arith.constant 7 : index
    %c0_122 = arith.constant 0 : index
    %c0_123 = arith.constant 0 : index
    %311 = vector.load %arg2[%c7, %c0_122, %c0_123] : memref<8x8x128xf32, #tpu.memory_space<vmem>>, vector<1x8x128xf32>
    %312 = vector.shape_cast %311 : vector<1x8x128xf32> to vector<8x128xf32>
    %313 = arith.truncf %312 : vector<8x128xf32> to vector<8x128xbf16>
    %cst_124 = arith.constant dense<0.000000e+00> : vector<8x512xf32>
    %314 = tpu.matmul %313, %3, %cst_124 {dimension_numbers = #tpu.dot_dimension_numbers<[1], [0], [0], [1], [0, 0, 1, 1], [], []>} : vector<8x128xbf16>, vector<128x512xbf16>, vector<8x512xf32> -> vector<8x512xf32>
    %315 = arith.truncf %306 : vector<8x128xf32> to vector<8x128xbf16>
    %cst_125 = arith.constant dense<0.000000e+00> : vector<8x512xf32>
    %316 = tpu.matmul %315, %4, %cst_125 {dimension_numbers = #tpu.dot_dimension_numbers<[1], [0], [0], [1], [0, 0, 1, 1], [], []>} : vector<8x128xbf16>, vector<128x512xbf16>, vector<8x512xf32> -> vector<8x512xf32>
    %317 = arith.addf %314, %316 : vector<8x512xf32>
    %318 = arith.addf %317, %7 : vector<8x512xf32>
    %319 = vector.extract_strided_slice %318 {offsets = [0, 0], sizes = [8, 128], strides = [1, 1]} : vector<8x512xf32> to vector<8x128xf32>
    %cst_126 = arith.constant 5.000000e-01 : f32
    %320 = vector.broadcast %cst_126 : f32 to vector<8x128xf32>
    %321 = arith.mulf %320, %319 : vector<8x128xf32>
    %322 = math.tanh %321 : vector<8x128xf32>
    %cst_127 = arith.constant 5.000000e-01 : f32
    %323 = vector.broadcast %cst_127 : f32 to vector<8x128xf32>
    %324 = arith.mulf %323, %322 : vector<8x128xf32>
    %cst_128 = arith.constant 5.000000e-01 : f32
    %325 = vector.broadcast %cst_128 : f32 to vector<8x128xf32>
    %326 = arith.addf %324, %325 : vector<8x128xf32>
    %327 = vector.extract_strided_slice %318 {offsets = [0, 128], sizes = [8, 128], strides = [1, 1]} : vector<8x512xf32> to vector<8x128xf32>
    %cst_129 = arith.constant 5.000000e-01 : f32
    %328 = vector.broadcast %cst_129 : f32 to vector<8x128xf32>
    %329 = arith.mulf %328, %327 : vector<8x128xf32>
    %330 = math.tanh %329 : vector<8x128xf32>
    %cst_130 = arith.constant 5.000000e-01 : f32
    %331 = vector.broadcast %cst_130 : f32 to vector<8x128xf32>
    %332 = arith.mulf %331, %330 : vector<8x128xf32>
    %cst_131 = arith.constant 5.000000e-01 : f32
    %333 = vector.broadcast %cst_131 : f32 to vector<8x128xf32>
    %334 = arith.addf %332, %333 : vector<8x128xf32>
    %335 = vector.extract_strided_slice %318 {offsets = [0, 256], sizes = [8, 128], strides = [1, 1]} : vector<8x512xf32> to vector<8x128xf32>
    %336 = math.tanh %335 : vector<8x128xf32>
    %337 = vector.extract_strided_slice %318 {offsets = [0, 384], sizes = [8, 128], strides = [1, 1]} : vector<8x512xf32> to vector<8x128xf32>
    %cst_132 = arith.constant 5.000000e-01 : f32
    %338 = vector.broadcast %cst_132 : f32 to vector<8x128xf32>
    %339 = arith.mulf %338, %337 : vector<8x128xf32>
    %340 = math.tanh %339 : vector<8x128xf32>
    %cst_133 = arith.constant 5.000000e-01 : f32
    %341 = vector.broadcast %cst_133 : f32 to vector<8x128xf32>
    %342 = arith.mulf %341, %340 : vector<8x128xf32>
    %cst_134 = arith.constant 5.000000e-01 : f32
    %343 = vector.broadcast %cst_134 : f32 to vector<8x128xf32>
    %344 = arith.addf %342, %343 : vector<8x128xf32>
    %345 = arith.mulf %334, %304 : vector<8x128xf32>
    %346 = arith.mulf %326, %336 : vector<8x128xf32>
    %347 = arith.addf %345, %346 : vector<8x128xf32>
    %348 = math.tanh %347 : vector<8x128xf32>
    %349 = arith.mulf %344, %348 : vector<8x128xf32>
    %350 = arith.truncf %349 : vector<8x128xf32> to vector<8x128xbf16>
    %c7_135 = arith.constant 7 : index
    %c0_136 = arith.constant 0 : index
    %c0_137 = arith.constant 0 : index
    %351 = vector.load %arg8[%c7_135, %c0_136, %c0_137] : memref<8x8x128xbf16, #tpu.memory_space<vmem>>, vector<1x8x128xbf16>
    %352 = vector.shape_cast %351 : vector<1x8x128xbf16> to vector<8x128xbf16>
    %353 = vector.shape_cast %350 : vector<8x128xbf16> to vector<1x8x128xbf16>
    tpu.vector_store %arg8[%c7_135, %c0_136, %c0_137], %353 {strides = array<i32>} : memref<8x8x128xbf16, #tpu.memory_space<vmem>>, vector<1x8x128xbf16>,
    %c0_138 = arith.constant 0 : index
    %c0_139 = arith.constant 0 : index
    %354 = vector.load %arg9[%c0_138, %c0_139] : memref<8x128xf32, #tpu.memory_space<vmem>>, vector<8x128xf32>
    tpu.vector_store %arg9[%c0_138, %c0_139], %349 {strides = array<i32>} : memref<8x128xf32, #tpu.memory_space<vmem>>, vector<8x128xf32>,
    %c0_140 = arith.constant 0 : index
    %c0_141 = arith.constant 0 : index
    %355 = vector.load %arg10[%c0_140, %c0_141] : memref<8x128xf32, #tpu.memory_space<vmem>>, vector<8x128xf32>
    tpu.vector_store %arg10[%c0_140, %c0_141], %347 {strides = array<i32>} : memref<8x128xf32, #tpu.memory_space<vmem>>, vector<8x128xf32>,
    return
  }
  func.func @transform_0(%arg0: i32, %arg1: i32) -> (i32, i32, i32) {
    %c0_i32 = arith.constant 0 : i32
    %c0_i32_0 = arith.constant 0 : i32
    return %arg1, %arg0, %c0_i32 : i32, i32, i32
  }
  func.func @transform_1(%arg0: i32, %arg1: i32) -> (i32, i32) {
    %c0_i32 = arith.constant 0 : i32
    %c0_i32_0 = arith.constant 0 : i32
    return %arg0, %c0_i32 : i32, i32
  }
  func.func @transform_2(%arg0: i32, %arg1: i32) -> (i32, i32) {
    %c0_i32 = arith.constant 0 : i32
    %c0_i32_0 = arith.constant 0 : i32
    return %arg0, %c0_i32 : i32, i32
  }
  func.func @transform_3(%arg0: i32, %arg1: i32) -> (i32, i32) {
    %c0_i32 = arith.constant 0 : i32
    %c0_i32_0 = arith.constant 0 : i32
    %c0_i32_1 = arith.constant 0 : i32
    return %c0_i32, %c0_i32_0 : i32, i32
  }
  func.func @transform_4(%arg0: i32, %arg1: i32) -> (i32, i32) {
    %c0_i32 = arith.constant 0 : i32
    %c0_i32_0 = arith.constant 0 : i32
    %c0_i32_1 = arith.constant 0 : i32
    return %c0_i32, %c0_i32_0 : i32, i32
  }
  func.func @transform_5(%arg0: i32, %arg1: i32) -> (i32, i32) {
    %c0_i32 = arith.constant 0 : i32
    %c0_i32_0 = arith.constant 0 : i32
    %c0_i32_1 = arith.constant 0 : i32
    return %c0_i32, %c0_i32_0 : i32, i32
  }
  func.func @transform_6(%arg0: i32, %arg1: i32) -> (i32, i32, i32) {
    %c0_i32 = arith.constant 0 : i32
    %c0_i32_0 = arith.constant 0 : i32
    return %arg1, %arg0, %c0_i32 : i32, i32, i32
  }
  func.func @transform_7(%arg0: i32, %arg1: i32) -> (i32, i32) {
    %c0_i32 = arith.constant 0 : i32
    %c0_i32_0 = arith.constant 0 : i32
    return %arg0, %c0_i32 : i32, i32
  }
  func.func @transform_8(%arg0: i32, %arg1: i32) -> (i32, i32) {
    %c0_i32 = arith.constant 0 : i32
    %c0_i32_0 = arith.constant 0 : i32
    return %arg0, %c0_i32 : i32, i32
  }
}

module attributes {stable_mosaic.version = 11 : i64} {
  func.func @_matmul_bias_kernel(%arg0: i32, %arg1: i32, %arg2: memref<128x128xbf16, #tpu.memory_space<vmem>>, %arg3: memref<128x256xbf16, #tpu.memory_space<vmem>>, %arg4: memref<1x256xf32, #tpu.memory_space<vmem>>, %arg5: memref<128x256xf32, #tpu.memory_space<vmem>>) attributes {dimension_semantics = [#tpu.dimension_semantics<parallel>, #tpu.dimension_semantics<parallel>], iteration_bounds = array<i64: 1, 1>, scalar_prefetch = 0 : i64, scratch_operands = 0 : i64, tpu.core_type = #tpu.core_type<tc>, window_params = [{transform_indices = @transform_0, window_bounds = array<i64: 128, 128>}, {transform_indices = @transform_1, window_bounds = array<i64: 128, 256>}, {transform_indices = @transform_2, window_bounds = array<i64: 1, 256>}, {transform_indices = @transform_3, window_bounds = array<i64: 128, 256>}]} {
    %c0 = arith.constant 0 : index
    %c0_0 = arith.constant 0 : index
    %0 = vector.load %arg2[%c0, %c0_0] : memref<128x128xbf16, #tpu.memory_space<vmem>>, vector<128x128xbf16>
    %c0_1 = arith.constant 0 : index
    %c0_2 = arith.constant 0 : index
    %1 = vector.load %arg3[%c0_1, %c0_2] : memref<128x256xbf16, #tpu.memory_space<vmem>>, vector<128x256xbf16>
    %cst = arith.constant dense<0.000000e+00> : vector<128x256xf32>
    %2 = tpu.matmul %0, %1, %cst {dimension_numbers = #tpu.dot_dimension_numbers<[1], [0], [0], [1], [0, 0, 1, 1], [], []>} : vector<128x128xbf16>, vector<128x256xbf16>, vector<128x256xf32> -> vector<128x256xf32>
    %c0_3 = arith.constant 0 : index
    %c0_4 = arith.constant 0 : index
    %3 = vector.load %arg4[%c0_3, %c0_4] : memref<1x256xf32, #tpu.memory_space<vmem>>, vector<1x256xf32>
    %4 = vector.broadcast %3 : vector<1x256xf32> to vector<128x256xf32>
    %5 = arith.addf %2, %4 : vector<128x256xf32>
    %c0_5 = arith.constant 0 : index
    %c0_6 = arith.constant 0 : index
    %6 = vector.load %arg5[%c0_5, %c0_6] : memref<128x256xf32, #tpu.memory_space<vmem>>, vector<128x256xf32>
    tpu.vector_store %arg5[%c0_5, %c0_6], %5 {strides = array<i32>} : memref<128x256xf32, #tpu.memory_space<vmem>>, vector<128x256xf32>,
    return
  }
  func.func @transform_0(%arg0: i32, %arg1: i32) -> (i32, i32) {
    %c0_i32 = arith.constant 0 : i32
    %c0_i32_0 = arith.constant 0 : i32
    return %arg1, %c0_i32 : i32, i32
  }
  func.func @transform_1(%arg0: i32, %arg1: i32) -> (i32, i32) {
    %c0_i32 = arith.constant 0 : i32
    %c0_i32_0 = arith.constant 0 : i32
    return %c0_i32, %arg0 : i32, i32
  }
  func.func @transform_2(%arg0: i32, %arg1: i32) -> (i32, i32) {
    %c0_i32 = arith.constant 0 : i32
    %c0_i32_0 = arith.constant 0 : i32
    return %c0_i32, %arg0 : i32, i32
  }
  func.func @transform_3(%arg0: i32, %arg1: i32) -> (i32, i32) {
    %c0_i32 = arith.constant 0 : i32
    return %arg1, %arg0 : i32, i32
  }
}

</mosaic_0001>

<bundles_post_ra>
// kernel: light_decoder_forward.3
= control target key start
LH: loop header
LB: loop body
LE: loop exit
PB: predicated region body
PF: predicated region fallthrough
CT: control target
= control target key end

     0   :  { %v409_v1 = vmov 0   ;;  %v49_v25 = vlaneseq  ;;  %s645_s1 = inlined_call_operand.vmem [shape: bf16[128,256], index: 1, kind: input, shape index: {}]   ;;  %s646_s0 = inlined_call_operand.vmem [shape: bf16[128,128], index: 0, kind: input, shape index: {}]   ;;  %s647_s2 = inlined_call_operand.vmem [shape: f32[1,256], index: 2, kind: input, shape index: {}]   ;;  %s648_s3 = inlined_call_operand.vmem [shape: f32[128,256], index: 3, kind: output, shape index: {}]  }
   0x1   :  { %v377_v0 = vld [vmem:[%s645_s1 + $0x74] ss:$8 sps:$4 sm:$0xff]   ;;  %219 = vmatprep.mubr.bf16.mxu0 %v409_v1  ;;  %259 = vmatprep.mubr.bf16.mxu1 %v409_v1  ;;  %v379_v2 = vld [vmem:[%s645_s1 + $0x70] ss:$8 sps:$4 sm:$0xff]   ;;  %v380_v3 = vld [vmem:[%s645_s1 + $0x64] ss:$8 sps:$4 sm:$0xff]  }
   0x2   :  { %187 = vmatprep.subr.bf16.mxu0 %v377_v0  ;;  %360 = vmatprep.subr.bf16.mxu1 %v377_v0  ;;  %v382_v4 = vld [vmem:[%s645_s1 + $0x60] ss:$8 sps:$4 sm:$0xff]   ;;  %v383_v5 = vld [vmem:[%s645_s1 + $0x54] ss:$8 sps:$4 sm:$0xff]   ;;  %v385_v6 = vld [vmem:[%s645_s1 + $0x50] ss:$8 sps:$4 sm:$0xff]  }
   0x3   :  { %188 = vmatpush1.bf16.msra.mxu0 %v379_v2  ;;  %368 = vmatpush1.bf16.msra.mxu1 %v379_v2  ;;  %v386_v7 = vld [vmem:[%s645_s1 + $0x44] ss:$8 sps:$4 sm:$0xff]   ;;  %v388_v8 = vld [vmem:[%s645_s1 + $0x40] ss:$8 sps:$4 sm:$0xff]   ;;  %v389_v9 = vld [vmem:[%s645_s1 + $0x34] ss:$8 sps:$4 sm:$0xff]  }
   0x4   :  { %189 = vmatprep.subr.bf16.mxu0 %v380_v3  ;;  %361 = vmatprep.subr.bf16.mxu1 %v380_v3  ;;  %v391_v10 = vld [vmem:[%s645_s1 + $0x30] ss:$8 sps:$4 sm:$0xff]   ;;  %v392_v11 = vld [vmem:[%s645_s1 + $0x24] ss:$8 sps:$4 sm:$0xff]   ;;  %v394_v12 = vld [vmem:[%s645_s1 + $0x20] ss:$8 sps:$4 sm:$0xff]  }
   0x5   :  { %v395_v13 = vld [vmem:[%s645_s1 + $0x14] ss:$8 sps:$4 sm:$0xff]   ;;  %v397_v14 = vld [vmem:[%s645_s1 + $0x10] ss:$8 sps:$4 sm:$0xff]   ;;  %v398_v15 = vld [vmem:[%s645_s1 + $0x4] ss:$8 sps:$4 sm:$0xff]  }
   0x6   :  { %v400_v16 = vld [vmem:[%s645_s1] ss:$8 sps:$4 sm:$0xff]   ;;  %v405_v21 = vld [vmem:[%s646_s0 + $0x10] sm:$0xff]   ;;  %v407_v23 = vld [vmem:[%s646_s0 + $0x18] sm:$0xff]   ;;  %v50_v26 = vshrl.u32 %v49_v25, 7 }
   0x7   :  { %190 = vmatpush1.bf16.msra.mxu0 %v382_v4  ;;  %369 = vmatpush1.bf16.msra.mxu1 %v382_v4  ;;  %v401_v17 = vld [vmem:[%s646_s0] sm:$0xff]   ;;  %v403_v19 = vld [vmem:[%s646_s0 + $0x8] sm:$0xff]   ;;  %v406_v22 = vld [vmem:[%s646_s0 + $0x30] sm:$0xff]  }
   0x8   :  { %191 = vmatprep.subr.bf16.mxu0 %v383_v5  ;;  %362 = vmatprep.subr.bf16.mxu1 %v383_v5  ;;  %v402_v18 = vld [vmem:[%s646_s0 + $0x20] sm:$0xff]   ;;  %v404_v20 = vld [vmem:[%s646_s0 + $0x28] sm:$0xff]   ;;  %v408_v24 = vld [vmem:[%s646_s0 + $0x38] sm:$0xff]   ;;  %v51_v27 = vsub.s32 0, %v50_v26  ;;  %v55_v29 = vsub.s32 1, %v50_v26 }
   0x9   :  { %v47_v28 = vld [vmem:[%s647_s2] sm:$0x3] }
   0xa   :  { %v513_v30 = vrot.slane %v47_v28, %v51_v27  ;;  %v515_v31 = vrot.slane %v47_v28, %v55_v29 }
   0xb   :  { %192 = vmatpush1.bf16.msra.mxu0 %v385_v6  ;;  %370 = vmatpush1.bf16.msra.mxu1 %v385_v6 }
   0xc   :  { %193 = vmatprep.subr.bf16.mxu0 %v386_v7  ;;  %363 = vmatprep.subr.bf16.mxu1 %v386_v7 }
   0xf   :  { %194 = vmatpush1.bf16.msra.mxu0 %v388_v8  ;;  %371 = vmatpush1.bf16.msra.mxu1 %v388_v8 }
  0x10   :  { %195 = vmatprep.subr.bf16.mxu0 %v389_v9  ;;  %364 = vmatprep.subr.bf16.mxu1 %v389_v9 }
  0x13   :  { %196 = vmatpush1.bf16.msra.mxu0 %v391_v10  ;;  %372 = vmatpush1.bf16.msra.mxu1 %v391_v10 }
  0x14   :  { %197 = vmatprep.subr.bf16.mxu0 %v392_v11  ;;  %365 = vmatprep.subr.bf16.mxu1 %v392_v11 }
  0x17   :  { %198 = vmatpush1.bf16.msra.mxu0 %v394_v12  ;;  %373 = vmatpush1.bf16.msra.mxu1 %v394_v12 }
  0x18   :  { %199 = vmatprep.subr.bf16.mxu0 %v395_v13  ;;  %366 = vmatprep.subr.bf16.mxu1 %v395_v13 }
  0x1b   :  { %200 = vmatpush1.bf16.msra.mxu0 %v397_v14  ;;  %374 = vmatpush1.bf16.msra.mxu1 %v397_v14 }
  0x1c   :  { %201 = vmatprep.subr.bf16.mxu0 %v398_v15  ;;  %367 = vmatprep.subr.bf16.mxu1 %v398_v15 }
  0x1f   :  { %202 = vmatpush1.bf16.msra.mxu0 %v400_v16  ;;  %375 = vmatpush1.bf16.msra.mxu1 %v400_v16 }
  0x22   :  { %220 = vmatmul.mubr.bf16.vlgmr.msra.gmra.mxu0 %v401_v17  ;;  %260 = vmatmul.mubr.bf16.vlgmr.msra.gmra.mxu1 %v402_v18 }
  0x23   :  { %229 = vmatprep.mubr.bf16.mxu0 %v409_v1  ;;  %269 = vmatprep.mubr.bf16.mxu1 %v409_v1 }
  0x2a   :  { %230 = vmatmul.mubr.bf16.gmra.mxu0 %v403_v19  ;;  %270 = vmatmul.mubr.bf16.gmra.mxu1 %v404_v20 }
  0x2b   :  { %239 = vmatprep.mubr.bf16.mxu0 %v409_v1  ;;  %279 = vmatprep.mubr.bf16.mxu1 %v409_v1 }
  0x32   :  { %240 = vmatmul.mubr.bf16.gmra.mxu0 %v405_v21  ;;  %280 = vmatmul.mubr.bf16.gmra.mxu1 %v406_v22 }
  0x33   :  { %249 = vmatprep.mubr.bf16.mxu0 %v409_v1  ;;  %289 = vmatprep.mubr.bf16.mxu1 %v409_v1 }
  0x3a   :  { %250 = vmatmul.mubr.bf16.gmra.mxu0 %v407_v23  ;;  %290 = vmatmul.mubr.bf16.gmra.mxu1 %v408_v24 }
  0xe2   :  { %v221_v32 = vpop.f32.mrf.mxu0  ;;  %v261_v33 = vpop.f32.mrf.mxu1 }
  0xe3   :  { %v222_v34 = vadd.f32 %v221_v32, %v513_v30  ;;  %v262_v35 = vadd.f32 %v261_v33, %v513_v30 }
  0xe4   :  { %v223_v36 = vpop.f32.mrf.mxu0  ;;  %v263_v37 = vpop.f32.mrf.mxu1 }
  0xe5   :  { %300 = vst [vmem:[%s648_s3] sm:$0xff] %v222_v34  ;;  %316 = vst [vmem:[%s648_s3 + $0x80] sm:$0xff] %v262_v35  ;;  %v224_v38 = vadd.f32 %v223_v36, %v515_v31  ;;  %v264_v39 = vadd.f32 %v263_v37, %v515_v31 }
  0xe6   :  { %v225_v40 = vpop.f32.mrf.mxu0  ;;  %v265_v41 = vpop.f32.mrf.mxu1 }
  0xe7   :  { %301 = vst [vmem:[%s648_s3 + $0x8] sm:$0xff] %v224_v38  ;;  %317 = vst [vmem:[%s648_s3 + $0x88] sm:$0xff] %v264_v39  ;;  %v226_v42 = vadd.f32 %v225_v40, %v513_v30  ;;  %v266_v43 = vadd.f32 %v265_v41, %v513_v30 }
  0xe8   :  { %v227_v44 = vpop.f32.mrf.mxu0  ;;  %v267_v45 = vpop.f32.mrf.mxu1 }
  0xe9   :  { %302 = vst [vmem:[%s648_s3 + $0x10] sm:$0xff] %v226_v42  ;;  %318 = vst [vmem:[%s648_s3 + $0x90] sm:$0xff] %v266_v43  ;;  %v228_v46 = vadd.f32 %v227_v44, %v515_v31  ;;  %v268_v47 = vadd.f32 %v267_v45, %v515_v31 }
  0xea   :  { %v231_v48 = vpop.f32.mrf.mxu0  ;;  %v271_v49 = vpop.f32.mrf.mxu1 }
  0xeb   :  { %303 = vst [vmem:[%s648_s3 + $0x18] sm:$0xff] %v228_v46  ;;  %319 = vst [vmem:[%s648_s3 + $0x98] sm:$0xff] %v268_v47  ;;  %v232_v50 = vadd.f32 %v231_v48, %v513_v30  ;;  %v272_v51 = vadd.f32 %v271_v49, %v513_v30 }
  0xec   :  { %v233_v52 = vpop.f32.mrf.mxu0  ;;  %v273_v53 = vpop.f32.mrf.mxu1 }
  0xed   :  { %304 = vst [vmem:[%s648_s3 + $0x20] sm:$0xff] %v232_v50  ;;  %320 = vst [vmem:[%s648_s3 + $0xa0] sm:$0xff] %v272_v51  ;;  %v234_v54 = vadd.f32 %v233_v52, %v515_v31  ;;  %v274_v55 = vadd.f32 %v273_v53, %v515_v31 }
  0xee   :  { %v235_v56 = vpop.f32.mrf.mxu0  ;;  %v275_v57 = vpop.f32.mrf.mxu1 }
  0xef   :  { %305 = vst [vmem:[%s648_s3 + $0x28] sm:$0xff] %v234_v54  ;;  %321 = vst [vmem:[%s648_s3 + $0xa8] sm:$0xff] %v274_v55  ;;  %v236_v58 = vadd.f32 %v235_v56, %v513_v30  ;;  %v276_v59 = vadd.f32 %v275_v57, %v513_v30 }
  0xf0   :  { %v237_v60 = vpop.f32.mrf.mxu0  ;;  %v277_v61 = vpop.f32.mrf.mxu1 }
  0xf1   :  { %306 = vst [vmem:[%s648_s3 + $0x30] sm:$0xff] %v236_v58  ;;  %322 = vst [vmem:[%s648_s3 + $0xb0] sm:$0xff] %v276_v59  ;;  %v238_v62 = vadd.f32 %v237_v60, %v515_v31  ;;  %v278_v63 = vadd.f32 %v277_v61, %v515_v31 }
  0xf2   :  { %v241_v0 = vpop.f32.mrf.mxu0  ;;  %v281_v1 = vpop.f32.mrf.mxu1 }
  0xf3   :  { %307 = vst [vmem:[%s648_s3 + $0x38] sm:$0xff] %v238_v62  ;;  %323 = vst [vmem:[%s648_s3 + $0xb8] sm:$0xff] %v278_v63  ;;  %v242_v2 = vadd.f32 %v241_v0, %v513_v30  ;;  %v282_v3 = vadd.f32 %v281_v1, %v513_v30 }
  0xf4   :  { %v243_v4 = vpop.f32.mrf.mxu0  ;;  %v283_v5 = vpop.f32.mrf.mxu1 }
  0xf5   :  { %308 = vst [vmem:[%s648_s3 + $0x40] sm:$0xff] %v242_v2  ;;  %324 = vst [vmem:[%s648_s3 + $0xc0] sm:$0xff] %v282_v3  ;;  %v244_v6 = vadd.f32 %v243_v4, %v515_v31  ;;  %v284_v7 = vadd.f32 %v283_v5, %v515_v31 }
  0xf6   :  { %v245_v8 = vpop.f32.mrf.mxu0  ;;  %v285_v9 = vpop.f32.mrf.mxu1 }
  0xf7   :  { %309 = vst [vmem:[%s648_s3 + $0x48] sm:$0xff] %v244_v6  ;;  %325 = vst [vmem:[%s648_s3 + $0xc8] sm:$0xff] %v284_v7  ;;  %v246_v10 = vadd.f32 %v245_v8, %v513_v30  ;;  %v286_v11 = vadd.f32 %v285_v9, %v513_v30 }
  0xf8   :  { %v247_v12 = vpop.f32.mrf.mxu0  ;;  %v287_v13 = vpop.f32.mrf.mxu1 }
  0xf9   :  { %310 = vst [vmem:[%s648_s3 + $0x50] sm:$0xff] %v246_v10  ;;  %326 = vst [vmem:[%s648_s3 + $0xd0] sm:$0xff] %v286_v11  ;;  %v248_v14 = vadd.f32 %v247_v12, %v515_v31  ;;  %v288_v15 = vadd.f32 %v287_v13, %v515_v31 }
  0xfa   :  { %v251_v16 = vpop.f32.mrf.mxu0  ;;  %v291_v17 = vpop.f32.mrf.mxu1 }
  0xfb   :  { %311 = vst [vmem:[%s648_s3 + $0x58] sm:$0xff] %v248_v14  ;;  %327 = vst [vmem:[%s648_s3 + $0xd8] sm:$0xff] %v288_v15  ;;  %v252_v18 = vadd.f32 %v251_v16, %v513_v30  ;;  %v292_v19 = vadd.f32 %v291_v17, %v513_v30 }
  0xfc   :  { %v253_v20 = vpop.f32.mrf.mxu0  ;;  %v293_v21 = vpop.f32.mrf.mxu1 }
  0xfd   :  { %312 = vst [vmem:[%s648_s3 + $0x60] sm:$0xff] %v252_v18  ;;  %328 = vst [vmem:[%s648_s3 + $0xe0] sm:$0xff] %v292_v19  ;;  %v254_v22 = vadd.f32 %v253_v20, %v515_v31  ;;  %v294_v23 = vadd.f32 %v293_v21, %v515_v31 }
  0xfe   :  { %v255_v24 = vpop.f32.mrf.mxu0  ;;  %v295_v25 = vpop.f32.mrf.mxu1 }
  0xff   :  { %313 = vst [vmem:[%s648_s3 + $0x68] sm:$0xff] %v254_v22  ;;  %329 = vst [vmem:[%s648_s3 + $0xe8] sm:$0xff] %v294_v23  ;;  %v256_v26 = vadd.f32 %v255_v24, %v513_v30  ;;  %v296_v27 = vadd.f32 %v295_v25, %v513_v30 }
 0x100   :  { %v257_v28 = vpop.f32.mrf.mxu0  ;;  %v297_v29 = vpop.f32.mrf.mxu1 }
 0x101   :  { %314 = vst [vmem:[%s648_s3 + $0x70] sm:$0xff] %v256_v26  ;;  %330 = vst [vmem:[%s648_s3 + $0xf0] sm:$0xff] %v296_v27  ;;  %v258_v32 = vadd.f32 %v257_v28, %v515_v31  ;;  %v298_v33 = vadd.f32 %v297_v29, %v515_v31 }
 0x103   :  { %315 = vst [vmem:[%s648_s3 + $0x78] sm:$0xff] %v258_v32  ;;  %331 = vst [vmem:[%s648_s3 + $0xf8] sm:$0xff] %v298_v33 }

// kernel: light_decoder_forward.2
= control target key start
LH: loop header
LB: loop body
LE: loop exit
PB: predicated region body
PF: predicated region fallthrough
CT: control target
= control target key end

     0   :  { %14 = vsyncpa [#allocation3], 0  ;;  %s4315_s0 = inlined_call_operand.vmem [shape: f32[16,8,128], index: 0, kind: input, shape index: {}]   ;;  %s4316_s1 = inlined_call_operand.vmem [shape: f32[8,128], index: 1, kind: input, shape index: {}]   ;;  %s4317_s2 = inlined_call_operand.hbm [shape: f32[8,128], index: 2, kind: input, shape index: {}]   ;;  %s4318_s3 = inlined_call_operand.vmem [shape: bf16[128,512], index: 3, kind: input, shape index: {}]   ;;  %s4319_s4 = inlined_call_operand.hbm [shape: bf16[128,512], index: 4, kind: input, shape index: {}]   ;;  %s4320_s5 = inlined_call_operand.vmem [shape: f32[1,512], index: 5, kind: input, shape index: {}]   ;;  %s4321_s6 = inlined_call_operand.vmem [shape: bf16[16,8,128], index: 6, kind: output, shape index: {0}]   ;;  %s4322_s7 = inlined_call_operand.hbm [shape: f32[8,128], index: 7, kind: output, shape index: {1}]   ;;  %s4323_s8 = inlined_call_operand.hbm [shape: f32[8,128], index: 8, kind: output, shape index: {2}]  }
   0x1   :  { %15 = vsyncpa [#allocation6], 0 }
   0x2   :  { %16 = vsyncpa [#allocation4], 0 }
   0x3   :  { %17 = vsyncpa [#allocation9], 0  ;;  %s3117_s27 = smov 0   ;;  %s3119_s28 = smov 0  }
   0x4   :  { %s3121_s29 = smov 0  }
   0x5 LB: > { %s2524_s30 = sadd.s32 4294967295, %s3063_s29   ;;  %s32_s9 = sadd.s32 1, %s3059_s28  ;;  %s3063_s29 = sphi %s3121_s29, %s23_s29   ;;  %s3059_s28 = sphi %s3119_s28, %s4625_s28   ;;  %s3055_s27 = sphi %s3117_s27, %s4624_s27  }
   0x6   : > { %p33_p0 = scmp.ge.s32.totalorder %s32_s9, 2  ;;  %p2526_p1 = scmp.ge.s32.totalorder %s3063_s29, 1 }
   0x7   : > { %p263_p2 = scmp.lt.s32.totalorder %s3063_s29, 3  ;;  %p3144_p4 = scmp.eq.s32.totalorder %s2524_s30, 0 }
   0x8   : > { %s4627_s9 = smov (%p33_p0, %s32_s9), 0  ;;  %s3065_s12 = smov [#allocation2]  }
   0x9   : > { %p3138_p3 = pnand %p2526_p1, %p263_p2  ;;  %s285_s13 = sshll.u32 %s3065_s12, 4  ;;  %s286_s13 = int_to_ptr.vmem [resolvable:$true] %s285_s13 }
   0xa   : > { %s4446_s11 = scalar_select %p3144_p4, 1, 0 }
   0xb   : > { %s4445_s10 = scalar_select %p3138_p3, 1, 0 }
   0xc   : > { %p2639_p5 = pneg %p3138_p3  ;;  %s3066_s14 = smov [#allocation5]  }
   0xd   : > { %s298_s15 = sshll.u32 %s3066_s14, 4  ;;  %s2936_s17 = scalar_lea.vmem %s286_s13, 128  ;;  %s299_s15 = int_to_ptr.vmem [resolvable:$true] %s298_s15 }
   0xe   : > { %p3152_p6 = pnand %p3144_p4, %p2639_p5  ;;  %p2937_p8 = scmp.ne.s32.totalorder %s286_s13, %s2936_s17 }
   0xf   : > { %p2944_p11 = scmp.lt.s32.totalorder %s286_s13, %s286_s13  ;;  %p2945_p12 = scmp.lt.s32.totalorder %s2936_s17, %s2936_s17 }
  0x10   : > { %p2927_p7 = pneg %p3152_p6 }
  0x11   : > { %p2946_p13 = por %p2945_p12, %p2944_p11 }
  0x12   : > { %p2939_p9 = pnand %p2937_p8, %p2927_p7 }
  0x14   : > { %p2940_p10 = pneg %p2939_p9 }
  0x16   : > { %p2947_p0 = pnand %p2946_p13, %p2940_p10 }
  0x18   : > { %2950 = shalt.err (!%p2947_p0)
}
  0x19   : > { %2642 = dma.hbm_to_vmem [thread:$0]  (!%p3152_p6), %s4317_s2, 128, %s286_s13, [#allocation3]  }
  0x1a   : > { %s2962_s20 = scalar_lea.vmem %s299_s15, 4096  ;;  %p2970_p8 = scmp.lt.s32.totalorder %s299_s15, %s299_s15 }
  0x1b   : > { %p2963_p1 = scmp.ne.s32.totalorder %s299_s15, %s2962_s20  ;;  %p2971_p9 = scmp.lt.s32.totalorder %s2962_s20, %s2962_s20 }
  0x1d   : > { %p2965_p2 = pnand %p2963_p1, %p2927_p7  ;;  %p2972_p4 = por %p2971_p9, %p2970_p8 }
  0x1f   : > { %p2966_p5 = pneg %p2965_p2 }
  0x21   : > { %p2973_p3 = pnand %p2972_p4, %p2966_p5 }
  0x23   : > { %2976 = shalt.err (!%p2973_p3)
}
  0x24   : > { %s3067_s21 = smov 256   ;;  %s3068_s22 = smov 16  }
  0x25   : > { %2645 = dma.hbm_to_vmem [thread:$0]  (!%p3152_p6), %s4319_s4, 4096, %s299_s15, [#allocation6], %s3067_s21, %s3067_s21, %s3068_s22  }
  0x26   : > { %p4448_p10 = scmp.ne.s32.totalorder %s4445_s10, 0 }
  0x28   : > { %329 = sbr.rel (%p4448_p10) target bundleno = 2283 (0x8eb), region = 44 }
  0x2d   : > { %p4449_p11 = scmp.ne.s32.totalorder %s4446_s11, 0 }
  0x2f   : > { %3038 = dma.done.wait (%p4449_p11), [#allocation3], 128  }
  0x30   : > { %3040 = vsyncadd (%p4449_p11), [#allocation3], 4294967168 }
  0x31   : > { %3042 = dma.done.wait (%p4449_p11), [#allocation6], 4096  }
  0x32   : > { %3044 = vsyncadd (%p4449_p11), [#allocation6], 4294963200  ;;  %s2534_s25 = sshll.u32 %s3055_s27, 3  ;;  %p2538_p4 = scmp.ne.s32.totalorder %s3055_s27, 0 }
  0x33   : > { %p378_p3 = scmp.lt.s32.totalorder %s2534_s25, 15 }
  0x34   : > { %403 = sbr.rel (%p2538_p4) target bundleno = 60 (0x3c), region = 56 }
  0x35   : > { %s4629_s25 = smov (!%p378_p3, %s2534_s25), 15 }
  0x36   : > { %s2535_s26 = sshll.u32 %s4629_s25, 3  ;;  %s2537_s12 = sshll.u32 %s4629_s25, 2 }
  0x37   : > { %s3188_s14 = scalar_lea.vmem %s4315_s0, %s2535_s26  ;;  %s3193_s17 = scalar_lea.vmem %s4321_s6, %s2537_s12 }
  0x39   : > { %v404_v0 = vld [vmem:[%s4316_s1] sm:$0xff] }
  0x3a   : > { %v406_v1 = vld [vmem:[#allocation2] sm:$0xff]  ;;  %405 = vst [vmem:[#allocation7] sm:$0xff] %v404_v0 }
  0x3b   : > { %407 = vst [vmem:[#allocation8] sm:$0xff] %v406_v1 }
  0x3c PF: > { %v3199_v2 = vld [vmem:[#allocation5 + $0xe4] ss:$16 sps:$4 sm:$0xff]   ;;  %v3201_v3 = vld [vmem:[#allocation5 + $0xec] ss:$16 sps:$4 sm:$0xff]   ;;  %v4327_v4 = vmov 0   ;;  %p4279_p6 = scmp.eq.s32.totalorder %s2524_s30, 1 }
  0x3d   : > { %691 = vmatprep.mubr.bf16.mxu0 %v4327_v4  ;;  %732 = vmatprep.mubr.bf16.mxu1 %v4327_v4  ;;  %v3206_v5 = vld [vmem:[#allocation5 + $0xe0] ss:$16 sps:$4 sm:$0xff]   ;;  %v3208_v6 = vld [vmem:[#allocation5 + $0xe8] ss:$16 sps:$4 sm:$0xff]   ;;  %v3211_v7 = vld [vmem:[#allocation5 + $0xc4] ss:$16 sps:$4 sm:$0xff]  }
  0x3e   : > { %659 = vmatprep.subr.bf16.mxu0 %v3199_v2  ;;  %700 = vmatprep.subr.bf16.mxu1 %v3201_v3  ;;  %v3215_v8 = vld [vmem:[#allocation5 + $0xcc] ss:$16 sps:$4 sm:$0xff]   ;;  %v3217_v9 = vld [vmem:[#allocation5 + $0xc0] ss:$16 sps:$4 sm:$0xff]   ;;  %v3220_v10 = vld [vmem:[#allocation5 + $0xc8] ss:$16 sps:$4 sm:$0xff]  }
  0x3f   : > { %660 = vmatpush1.bf16.msra.mxu0 %v3206_v5  ;;  %701 = vmatpush1.bf16.msra.mxu1 %v3208_v6  ;;  %4450 = vst [vmem:[#allocation14_spill] sm:$0xff] %v3217_v9  ;;  %4451 = vst [vmem:[#allocation15_spill] sm:$0xff] %v3220_v10  ;;  %v3223_v11 = vld [vmem:[#allocation5 + $0xa4] ss:$16 sps:$4 sm:$0xff]   ;;  %v3225_v12 = vld [vmem:[#allocation5 + $0xac] ss:$16 sps:$4 sm:$0xff]  }
  0x40   : > { %661 = vmatprep.subr.bf16.mxu0 %v3211_v7  ;;  %702 = vmatprep.subr.bf16.mxu1 %v3215_v8  ;;  %4452 = vst [vmem:[#allocation16_spill] sm:$0xff] %v3223_v11  ;;  %4453 = vst [vmem:[#allocation17_spill] sm:$0xff] %v3225_v12  ;;  %v3227_v13 = vld [vmem:[#allocation5 + $0xa0] ss:$16 sps:$4 sm:$0xff]   ;;  %v3229_v14 = vld [vmem:[#allocation5 + $0xa8] ss:$16 sps:$4 sm:$0xff]  }
  0x41   : > { %4454 = vst [vmem:[#allocation18_spill] sm:$0xff] %v3227_v13  ;;  %4455 = vst [vmem:[#allocation19_spill] sm:$0xff] %v3229_v14  ;;  %v3233_v15 = vld [vmem:[#allocation5 + $0x84] ss:$16 sps:$4 sm:$0xff]   ;;  %v3237_v16 = vld [vmem:[#allocation5 + $0x8c] ss:$16 sps:$4 sm:$0xff]  }
  0x42   : > { %4456 = vst [vmem:[#allocation20_spill] sm:$0xff] %v3233_v15  ;;  %4457 = vst [vmem:[#allocation21_spill] sm:$0xff] %v3237_v16  ;;  %v3239_v17 = vld [vmem:[#allocation5 + $0x80] ss:$16 sps:$4 sm:$0xff]   ;;  %v3243_v18 = vld [vmem:[#allocation5 + $0x88] ss:$16 sps:$4 sm:$0xff]  }
  0x43   : > { %662 = vmatpush1.bf16.msra.mxu0 %v3217_v9  ;;  %703 = vmatpush1.bf16.msra.mxu1 %v3220_v10  ;;  %4458 = vst [vmem:[#allocation22_spill] sm:$0xff] %v3239_v17  ;;  %4459 = vst [vmem:[#allocation23_spill] sm:$0xff] %v3243_v18  ;;  %v3245_v19 = vld [vmem:[#allocation5 + $0x64] ss:$16 sps:$4 sm:$0xff]   ;;  %v3249_v20 = vld [vmem:[#allocation5 + $0x6c] ss:$16 sps:$4 sm:$0xff]  }
  0x44   : > { %663 = vmatprep.subr.bf16.mxu0 %v3223_v11  ;;  %704 = vmatprep.subr.bf16.mxu1 %v3225_v12  ;;  %4460 = vst [vmem:[#allocation24_spill] sm:$0xff] %v3245_v19  ;;  %4461 = vst [vmem:[#allocation25_spill] sm:$0xff] %v3249_v20  ;;  %v3251_v21 = vld [vmem:[#allocation5 + $0x60] ss:$16 sps:$4 sm:$0xff]   ;;  %v3253_v22 = vld [vmem:[#allocation5 + $0x68] ss:$16 sps:$4 sm:$0xff]  }
  0x45   : > { %4462 = vst [vmem:[#allocation26_spill] sm:$0xff] %v3251_v21  ;;  %4463 = vst [vmem:[#allocation27_spill] sm:$0xff] %v3253_v22  ;;  %v3257_v23 = vld [vmem:[#allocation5 + $0x44] ss:$16 sps:$4 sm:$0xff]   ;;  %v3261_v24 = vld [vmem:[#allocation5 + $0x4c] ss:$16 sps:$4 sm:$0xff]  }
  0x46   : > { %4464 = vst [vmem:[#allocation28_spill] sm:$0xff] %v3257_v23  ;;  %4465 = vst [vmem:[#allocation29_spill] sm:$0xff] %v3261_v24  ;;  %v3265_v25 = vld [vmem:[#allocation5 + $0x40] ss:$16 sps:$4 sm:$0xff]   ;;  %v3267_v26 = vld [vmem:[#allocation5 + $0x48] ss:$16 sps:$4 sm:$0xff]  }
  0x47   : > { %664 = vmatpush1.bf16.msra.mxu0 %v3227_v13  ;;  %705 = vmatpush1.bf16.msra.mxu1 %v3229_v14  ;;  %4466 = vst [vmem:[#allocation30_spill] sm:$0xff] %v3265_v25  ;;  %4467 = vst [vmem:[#allocation31_spill] sm:$0xff] %v3267_v26  ;;  %v3271_v27 = vld [vmem:[#allocation5 + $0x24] ss:$16 sps:$4 sm:$0xff]   ;;  %v3273_v28 = vld [vmem:[#allocation5 + $0x2c] ss:$16 sps:$4 sm:$0xff]  }
  0x48   : > { %665 = vmatprep.subr.bf16.mxu0 %v3233_v15  ;;  %706 = vmatprep.subr.bf16.mxu1 %v3237_v16  ;;  %4468 = vst [vmem:[#allocation32_spill] sm:$0xff] %v3271_v27  ;;  %4469 = vst [vmem:[#allocation33_spill] sm:$0xff] %v3273_v28  ;;  %v3275_v29 = vld [vmem:[#allocation5 + $0x20] ss:$16 sps:$4 sm:$0xff]   ;;  %v3277_v30 = vld [vmem:[#allocation5 + $0x28] ss:$16 sps:$4 sm:$0xff]  }
  0x49   : > { %4470 = vst [vmem:[#allocation34_spill] sm:$0xff] %v3275_v29  ;;  %4471 = vst [vmem:[#allocation35_spill] sm:$0xff] %v3277_v30  ;;  %v3281_v31 = vld [vmem:[#allocation5 + $0x4] ss:$16 sps:$4 sm:$0xff]   ;;  %v3285_v32 = vld [vmem:[#allocation5 + $0xc] ss:$16 sps:$4 sm:$0xff]  }
  0x4a   : > { %4472 = vst [vmem:[#allocation36_spill] sm:$0xff] %v3281_v31  ;;  %4473 = vst [vmem:[#allocation37_spill] sm:$0xff] %v3285_v32  ;;  %v3287_v33 = vld [vmem:[#allocation5] ss:$16 sps:$4 sm:$0xff]   ;;  %v3289_v34 = vld [vmem:[#allocation5 + $0x8] ss:$16 sps:$4 sm:$0xff]  }
  0x4b   : > { %666 = vmatpush1.bf16.msra.mxu0 %v3239_v17  ;;  %707 = vmatpush1.bf16.msra.mxu1 %v3243_v18  ;;  %4474 = vst [vmem:[#allocation38_spill] sm:$0xff] %v3287_v33  ;;  %4475 = vst [vmem:[#allocation39_spill] sm:$0xff] %v3289_v34  ;;  %v494_v35 = vld [vmem:[#allocation7] sm:$0xff]  ;;  %v3298_v36 = vld [vmem:[%s4318_s3 + $0xe4] ss:$16 sps:$4 sm:$0xff]  }
  0x4c   : > { %667 = vmatprep.subr.bf16.mxu0 %v3245_v19  ;;  %708 = vmatprep.subr.bf16.mxu1 %v3249_v20  ;;  %4476 = vst [vmem:[#allocation40_spill] sm:$0xff] %v3298_v36  ;;  %v3303_v37 = vld [vmem:[%s4318_s3 + $0xec] ss:$16 sps:$4 sm:$0xff]   ;;  %v498_v38 = vpack.c.bf16 %v494_v35, %v494_v35  ;;  %v3308_v39 = vld [vmem:[%s4318_s3 + $0xe0] ss:$16 sps:$4 sm:$0xff]  }
  0x4d   : > { %4477 = vst [vmem:[#allocation41_spill] sm:$0xff] %v3303_v37  ;;  %v3313_v40 = vld [vmem:[%s4318_s3 + $0xe8] ss:$16 sps:$4 sm:$0xff]   ;;  %v3320_v41 = vld [vmem:[%s4318_s3 + $0xc4] ss:$16 sps:$4 sm:$0xff]  }
  0x4e   : > { %v3327_v42 = vld [vmem:[%s4318_s3 + $0xcc] ss:$16 sps:$4 sm:$0xff]   ;;  %v3332_v43 = vld [vmem:[%s4318_s3 + $0xc0] ss:$16 sps:$4 sm:$0xff]   ;;  %v3339_v44 = vld [vmem:[%s4318_s3 + $0xc8] ss:$16 sps:$4 sm:$0xff]  }
  0x4f   : > { %668 = vmatpush1.bf16.msra.mxu0 %v3251_v21  ;;  %709 = vmatpush1.bf16.msra.mxu1 %v3253_v22  ;;  %v3346_v45 = vld [vmem:[%s4318_s3 + $0xa4] ss:$16 sps:$4 sm:$0xff]   ;;  %v3351_v46 = vld [vmem:[%s4318_s3 + $0xac] ss:$16 sps:$4 sm:$0xff]   ;;  %v3358_v47 = vld [vmem:[%s4318_s3 + $0xa0] ss:$16 sps:$4 sm:$0xff]  }
  0x50   : > { %669 = vmatprep.subr.bf16.mxu0 %v3257_v23  ;;  %710 = vmatprep.subr.bf16.mxu1 %v3261_v24  ;;  %v3363_v48 = vld [vmem:[%s4318_s3 + $0xa8] ss:$16 sps:$4 sm:$0xff]   ;;  %v3370_v49 = vld [vmem:[%s4318_s3 + $0x84] ss:$16 sps:$4 sm:$0xff]   ;;  %v3377_v50 = vld [vmem:[%s4318_s3 + $0x8c] ss:$16 sps:$4 sm:$0xff]  }
  0x51   : > { %v3384_v51 = vld [vmem:[%s4318_s3 + $0x80] ss:$16 sps:$4 sm:$0xff]   ;;  %v3389_v52 = vld [vmem:[%s4318_s3 + $0x88] ss:$16 sps:$4 sm:$0xff]   ;;  %v3396_v53 = vld [vmem:[%s4318_s3 + $0x64] ss:$16 sps:$4 sm:$0xff]  }
  0x52   : > { %v3401_v54 = vld [vmem:[%s4318_s3 + $0x6c] ss:$16 sps:$4 sm:$0xff]   ;;  %v3408_v55 = vld [vmem:[%s4318_s3 + $0x60] ss:$16 sps:$4 sm:$0xff]   ;;  %v3413_v56 = vld [vmem:[%s4318_s3 + $0x68] ss:$16 sps:$4 sm:$0xff]  }
  0x53   : > { %670 = vmatpush1.bf16.msra.mxu0 %v3265_v25  ;;  %711 = vmatpush1.bf16.msra.mxu1 %v3267_v26  ;;  %v3420_v57 = vld [vmem:[%s4318_s3 + $0x44] ss:$16 sps:$4 sm:$0xff]   ;;  %v3425_v58 = vld [vmem:[%s4318_s3 + $0x4c] ss:$16 sps:$4 sm:$0xff]   ;;  %v3432_v59 = vld [vmem:[%s4318_s3 + $0x40] ss:$16 sps:$4 sm:$0xff]  }
  0x54   : > { %671 = vmatprep.subr.bf16.mxu0 %v3271_v27  ;;  %712 = vmatprep.subr.bf16.mxu1 %v3273_v28  ;;  %v3437_v60 = vld [vmem:[%s4318_s3 + $0x48] ss:$16 sps:$4 sm:$0xff]   ;;  %v3444_v61 = vld [vmem:[%s4318_s3 + $0x24] ss:$16 sps:$4 sm:$0xff]   ;;  %v3449_v62 = vld [vmem:[%s4318_s3 + $0x2c] ss:$16 sps:$4 sm:$0xff]  }
  0x55   : > { %4478 = vst [vmem:[#allocation42_spill] sm:$0xff] %v3444_v61  ;;  %4479 = vst [vmem:[#allocation43_spill] sm:$0xff] %v3449_v62  ;;  %v3456_v63 = vld [vmem:[%s4318_s3 + $0x20] ss:$16 sps:$4 sm:$0xff]   ;;  %v3461_v0 = vld [vmem:[%s4318_s3 + $0x28] ss:$16 sps:$4 sm:$0xff]  }
  0x56   : > { %v3468_v1 = vld [vmem:[%s4318_s3 + $0x4] ss:$16 sps:$4 sm:$0xff]   ;;  %v3473_v35 = vld [vmem:[%s4318_s3 + $0xc] ss:$16 sps:$4 sm:$0xff]  }
  0x57   : > { %672 = vmatpush1.bf16.msra.mxu0 %v3275_v29  ;;  %713 = vmatpush1.bf16.msra.mxu1 %v3277_v30  ;;  %4480 = vst [vmem:[#allocation44_spill] sm:$0xff] %v3473_v35 }
  0x58   : > { %673 = vmatprep.subr.bf16.mxu0 %v3281_v31  ;;  %714 = vmatprep.subr.bf16.mxu1 %v3285_v32 }
  0x5b   : > { %674 = vmatpush1.bf16.msra.mxu0 %v3287_v33  ;;  %715 = vmatpush1.bf16.msra.mxu1 %v3289_v34 }
  0x5c   : > { %901 = vmatprep.subr.bf16.mxu0 %v3298_v36  ;;  %942 = vmatprep.subr.bf16.mxu1 %v3303_v37 }
  0x5e   : > { %692 = vmatmul.mubr.bf16.vlgmr.msra.gmra.mxu0 %v498_v38  ;;  %733 = vmatmul.mubr.bf16.vlgmr.msra.gmra.mxu1 %v498_v38  ;;  %v3480_v38 = vld [vmem:[%s4318_s3] ss:$16 sps:$4 sm:$0xff]  }
  0x5f   : > { %902 = vmatpush1.bf16.msra.mxu0 %v3308_v39  ;;  %943 = vmatpush1.bf16.msra.mxu1 %v3313_v40 }
  0x60   : > { %903 = vmatprep.subr.bf16.mxu0 %v3320_v41  ;;  %944 = vmatprep.subr.bf16.mxu1 %v3327_v42 }
  0x61   : > { %933 = vmatprep.mubr.bf16.mxu0 %v4327_v4  ;;  %974 = vmatprep.mubr.bf16.mxu1 %v4327_v4  ;;  %v3485_v4 = vld [vmem:[%s4318_s3 + $0x8] ss:$16 sps:$4 sm:$0xff]  }
  0x63   : > { %904 = vmatpush1.bf16.msra.mxu0 %v3332_v43  ;;  %945 = vmatpush1.bf16.msra.mxu1 %v3339_v44 }
  0x64   : > { %905 = vmatprep.subr.bf16.mxu0 %v3346_v45  ;;  %946 = vmatprep.subr.bf16.mxu1 %v3351_v46 }
  0x67   : > { %906 = vmatpush1.bf16.msra.mxu0 %v3358_v47  ;;  %947 = vmatpush1.bf16.msra.mxu1 %v3363_v48 }
  0x68   : > { %907 = vmatprep.subr.bf16.mxu0 %v3370_v49  ;;  %948 = vmatprep.subr.bf16.mxu1 %v3377_v50 }
  0x6b   : > { %908 = vmatpush1.bf16.msra.mxu0 %v3384_v51  ;;  %949 = vmatpush1.bf16.msra.mxu1 %v3389_v52 }
  0x6c   : > { %909 = vmatprep.subr.bf16.mxu0 %v3396_v53  ;;  %950 = vmatprep.subr.bf16.mxu1 %v3401_v54 }
  0x6f   : > { %910 = vmatpush1.bf16.msra.mxu0 %v3408_v55  ;;  %951 = vmatpush1.bf16.msra.mxu1 %v3413_v56 }
  0x70   : > { %911 = vmatprep.subr.bf16.mxu0 %v3420_v57  ;;  %952 = vmatprep.subr.bf16.mxu1 %v3425_v58 }
  0x73   : > { %912 = vmatpush1.bf16.msra.mxu0 %v3432_v59  ;;  %953 = vmatpush1.bf16.msra.mxu1 %v3437_v60 }
  0x74   : > { %913 = vmatprep.subr.bf16.mxu0 %v3444_v61  ;;  %954 = vmatprep.subr.bf16.mxu1 %v3449_v62  ;;  %v496_v62 = vld [vmem:[%s3188_s14] sm:$0xff] }
  0x75   : > { %v497_v61 = vpack.c.bf16 %v496_v62, %v496_v62 }
  0x77   : > { %914 = vmatpush1.bf16.msra.mxu0 %v3456_v63  ;;  %955 = vmatpush1.bf16.msra.mxu1 %v3461_v0 }
  0x78   : > { %915 = vmatprep.subr.bf16.mxu0 %v3468_v1  ;;  %956 = vmatprep.subr.bf16.mxu1 %v3473_v35  ;;  %v4481_v35 = vmov 0  }
  0x7b   : > { %916 = vmatpush1.bf16.msra.mxu0 %v3480_v38  ;;  %957 = vmatpush1.bf16.msra.mxu1 %v3485_v4 }
  0x7c   : > { %1010 = vmatprep.subr.bf16.mxu0 %v3199_v2  ;;  %1051 = vmatprep.subr.bf16.mxu1 %v3201_v3 }
  0x7e   : > { %934 = vmatmul.mubr.bf16.vlgmr.msra.gmra.mxu0 %v497_v61  ;;  %975 = vmatmul.mubr.bf16.vlgmr.msra.gmra.mxu1 %v497_v61 }
  0x7f   : > { %1011 = vmatpush1.bf16.msra.mxu0 %v3206_v5  ;;  %1052 = vmatpush1.bf16.msra.mxu1 %v3208_v6 }
  0x80   : > { %1012 = vmatprep.subr.bf16.mxu0 %v3211_v7  ;;  %1053 = vmatprep.subr.bf16.mxu1 %v3215_v8 }
  0x81   : > { %1042 = vmatprep.mubr.bf16.mxu0 %v4481_v35  ;;  %1083 = vmatprep.mubr.bf16.mxu1 %v4481_v35 }
  0x83   : > { %1013 = vmatpush1.bf16.msra.mxu0 %v3217_v9  ;;  %1054 = vmatpush1.bf16.msra.mxu1 %v3220_v10 }
  0x84   : > { %1014 = vmatprep.subr.bf16.mxu0 %v3223_v11  ;;  %1055 = vmatprep.subr.bf16.mxu1 %v3225_v12 }
  0x87   : > { %1015 = vmatpush1.bf16.msra.mxu0 %v3227_v13  ;;  %1056 = vmatpush1.bf16.msra.mxu1 %v3229_v14 }
  0x88   : > { %1016 = vmatprep.subr.bf16.mxu0 %v3233_v15  ;;  %1057 = vmatprep.subr.bf16.mxu1 %v3237_v16 }
  0x8b   : > { %1017 = vmatpush1.bf16.msra.mxu0 %v3239_v17  ;;  %1058 = vmatpush1.bf16.msra.mxu1 %v3243_v18 }
  0x8c   : > { %1018 = vmatprep.subr.bf16.mxu0 %v3245_v19  ;;  %1059 = vmatprep.subr.bf16.mxu1 %v3249_v20 }
  0x8f   : > { %1019 = vmatpush1.bf16.msra.mxu0 %v3251_v21  ;;  %1060 = vmatpush1.bf16.msra.mxu1 %v3253_v22 }
  0x90   : > { %1020 = vmatprep.subr.bf16.mxu0 %v3257_v23  ;;  %1061 = vmatprep.subr.bf16.mxu1 %v3261_v24  ;;  %v474_v24 = vlaneseq }
  0x93   : > { %1021 = vmatpush1.bf16.msra.mxu0 %v3265_v25  ;;  %1062 = vmatpush1.bf16.msra.mxu1 %v3267_v26 }
  0x94   : > { %1022 = vmatprep.subr.bf16.mxu0 %v3271_v27  ;;  %1063 = vmatprep.subr.bf16.mxu1 %v3273_v28 }
  0x97   : > { %1023 = vmatpush1.bf16.msra.mxu0 %v3275_v29  ;;  %1064 = vmatpush1.bf16.msra.mxu1 %v3277_v30 }
  0x98   : > { %1024 = vmatprep.subr.bf16.mxu0 %v3281_v31  ;;  %1065 = vmatprep.subr.bf16.mxu1 %v3285_v32  ;;  %v475_v31 = vshrl.u32 %v474_v24, 7 }
  0x9a   : > { %v476_v23 = vsub.s32 0, %v475_v31  ;;  %v484_v21 = vsub.s32 2, %v475_v31 }
  0x9b   : > { %1025 = vmatpush1.bf16.msra.mxu0 %v3287_v33  ;;  %1066 = vmatpush1.bf16.msra.mxu1 %v3289_v34  ;;  %v472_v33 = vld [vmem:[%s4320_s5] sm:$0xf]  ;;  %v480_v34 = vsub.s32 1, %v475_v31 }
  0x9c   : > { %1092 = vmatprep.subr.bf16.mxu0 %v3298_v36  ;;  %1133 = vmatprep.subr.bf16.mxu1 %v3303_v37  ;;  %v3531_v32 = vrot.slane %v472_v33, %v476_v23  ;;  %v3536_v17 = vrot.slane %v472_v33, %v484_v21 }
  0x9d   : > { %v3533_v20 = vrot.slane %v472_v33, %v480_v34 }
 0x11e   : > { %v693_v61 = vpop.f32.mrf.mxu0  ;;  %v734_v62 = vpop.f32.mrf.mxu1 }
 0x120   : > { %v695_v27 = vpop.f32.mrf.mxu0  ;;  %v736_v28 = vpop.f32.mrf.mxu1 }
 0x122   : > { %v697_v26 = vpop.f32.mrf.mxu0  ;;  %v738_v29 = vpop.f32.mrf.mxu1 }
 0x124   : > { %v698_v25 = vpop.f32.mrf.mxu0  ;;  %v739_v30 = vpop.f32.mrf.mxu1 }
 0x13e   : > { %v935_v36 = vpop.f32.mrf.mxu0  ;;  %v976_v37 = vpop.f32.mrf.mxu1 }
 0x13f   : > { %v936_v22 = vadd.f32 %v935_v36, %v693_v61  ;;  %v977_v16 = vadd.f32 %v976_v37, %v734_v62  ;;  %v488_v61 = vsub.s32 3, %v475_v31 }
 0x140   : > { %v937_v26 = vpop.f32.mrf.mxu0  ;;  %v978_v29 = vpop.f32.mrf.mxu1 }
 0x141   : > { %v983_v25 = vadd.f32 %v936_v22, %v3531_v32  ;;  %v938_v30 = vadd.f32 %v937_v26, %v695_v27  ;;  %v985_v34 = vadd.f32 %v977_v16, %v3536_v17  ;;  %v3540_v13 = vrot.slane %v472_v33, %v488_v61  ;;  %v4482_v61 = vld [vmem:[#allocation42_spill] sm:$0xff] }
 0x142   : > { %v939_v24 = vpop.f32.mrf.mxu0  ;;  %v980_v19 = vpop.f32.mrf.mxu1  ;;  %v979_v22 = vadd.f32 %v978_v29, %v736_v28 }
 0x143   : > { %v987_v18 = vmul.f32 0.5, %v983_v25  ;;  %v984_v23 = vadd.f32 %v938_v30, %v3533_v20 }
 0x144   : > { %v940_v15 = vpop.f32.mrf.mxu0  ;;  %v981_v14 = vpop.f32.mrf.mxu1  ;;  %v986_v19 = vadd.f32 %v979_v22, %v3540_v13  ;;  %v2603_v22 = vld [vmem:[%s3188_s14 + $0x8] sm:$0xff] }
 0x145   : > { %2781 = vtanh.f32 %v987_v18  ;;  %v991_v36 = vmul.f32 0.5, %v984_v23  ;;  %v495_v14 = vld [vmem:[#allocation8] sm:$0xff] }
 0x146   : > { %v996_v27 = vmul.f32 0.5, %v986_v19  ;;  %v4484_v19 = vld [vmem:[#allocation44_spill] sm:$0xff] }
 0x147   : > { %2783 = vtanh.f32 %v991_v36 }
 0x148   : > { %2785 = vtanh.f32 %v985_v34  ;;  %v4483_v34 = vld [vmem:[#allocation43_spill] sm:$0xff] }
 0x149   : > { %2787 = vtanh.f32 %v996_v27  ;;  %v1009_v27 = vpack.c.bf16 %v2603_v22, %v2603_v22  ;;  %v4501_v22 = vld [vmem:[#allocation34_spill] sm:$0xff] }
 0x152   : > { %v2782_v21 = vpop.eup %2781 }
 0x153   : > { %v989_v26 = vmul.f32 0.5, %v2782_v21  ;;  %v4485_v21 = vld [vmem:[#allocation18_spill] sm:$0xff] }
 0x154   : > { %v2784_v37 = vpop.eup %2783 }
 0x155   : > { %v990_v62 = vadd.f32 0.5, %v989_v26  ;;  %v993_v15 = vmul.f32 0.5, %v2784_v37  ;;  %v2786_v31 = vpop.eup %2785  ;;  %v4486_v26 = vld [vmem:[#allocation19_spill] sm:$0xff]  ;;  %v4487_v37 = vld [vmem:[#allocation20_spill] sm:$0xff] }
 0x156   : > { %v2788_v28 = vpop.eup %2787 }
 0x157   : > { %v994_v18 = vadd.f32 0.5, %v993_v15  ;;  %v1001_v16 = vmul.f32 %v2786_v31, %v990_v62  ;;  %v998_v33 = vmul.f32 0.5, %v2788_v28  ;;  %v4488_v62 = vld [vmem:[#allocation21_spill] sm:$0xff]  ;;  %v4489_v15 = vld [vmem:[#allocation22_spill] sm:$0xff]  ;;  %v4495_v28 = vld [vmem:[#allocation28_spill] sm:$0xff] }
 0x158   : > { %v4492_v31 = vld [vmem:[#allocation25_spill] sm:$0xff] }
 0x159   : > { %v1000_v25 = vmul.f32 %v994_v18, %v495_v14  ;;  %v999_v29 = vadd.f32 0.5, %v998_v33  ;;  %v4490_v14 = vld [vmem:[#allocation23_spill] sm:$0xff]  ;;  %v4491_v18 = vld [vmem:[#allocation24_spill] sm:$0xff]  ;;  %v4496_v33 = vld [vmem:[#allocation29_spill] sm:$0xff] }
 0x15b   : > { %v3543_v30 = vadd.f32 %v1001_v16, %v1000_v25  ;;  %v4493_v25 = vld [vmem:[#allocation26_spill] sm:$0xff]  ;;  %v4494_v16 = vld [vmem:[#allocation27_spill] sm:$0xff] }
 0x15d   : > { %2789 = vtanh.f32 %v3543_v30 }
 0x16a   : > { %v2790_v24 = vpop.eup %2789 }
 0x16b   : > { %v1004_v23 = vmul.f32 %v2790_v24, %v999_v29  ;;  %v4497_v29 = vld [vmem:[#allocation30_spill] sm:$0xff]  ;;  %v4498_v24 = vld [vmem:[#allocation31_spill] sm:$0xff] }
 0x16d   : > { %v1005_v36 = vpack.c.bf16 %v1004_v23, %v1004_v23  ;;  %v4499_v23 = vld [vmem:[#allocation32_spill] sm:$0xff] }
 0x16f   : > { %1006 = vst [vmem:[%s3193_s17] sm:$0xf] %v1005_v36  ;;  %1043 = vmatmul.mubr.bf16.vlgmr.msra.gmra.mxu0 %v1005_v36  ;;  %1084 = vmatmul.mubr.bf16.vlgmr.msra.gmra.mxu1 %v1005_v36  ;;  %v4500_v36 = vld [vmem:[#allocation33_spill] sm:$0xff] }
 0x170   : > { %1093 = vmatpush1.bf16.msra.mxu0 %v3308_v39  ;;  %1134 = vmatpush1.bf16.msra.mxu1 %v3313_v40 }
 0x171   : > { %1094 = vmatprep.subr.bf16.mxu0 %v3320_v41  ;;  %1135 = vmatprep.subr.bf16.mxu1 %v3327_v42 }
 0x172   : > { %1124 = vmatprep.mubr.bf16.mxu0 %v4481_v35  ;;  %1165 = vmatprep.mubr.bf16.mxu1 %v4481_v35 }
 0x174   : > { %1095 = vmatpush1.bf16.msra.mxu0 %v3332_v43  ;;  %1136 = vmatpush1.bf16.msra.mxu1 %v3339_v44 }
 0x175   : > { %1096 = vmatprep.subr.bf16.mxu0 %v3346_v45  ;;  %1137 = vmatprep.subr.bf16.mxu1 %v3351_v46 }
 0x178   : > { %1097 = vmatpush1.bf16.msra.mxu0 %v3358_v47  ;;  %1138 = vmatpush1.bf16.msra.mxu1 %v3363_v48 }
 0x179   : > { %1098 = vmatprep.subr.bf16.mxu0 %v3370_v49  ;;  %1139 = vmatprep.subr.bf16.mxu1 %v3377_v50 }
 0x17c   : > { %1099 = vmatpush1.bf16.msra.mxu0 %v3384_v51  ;;  %1140 = vmatpush1.bf16.msra.mxu1 %v3389_v52 }
 0x17d   : > { %1100 = vmatprep.subr.bf16.mxu0 %v3396_v53  ;;  %1141 = vmatprep.subr.bf16.mxu1 %v3401_v54 }
 0x180   : > { %1101 = vmatpush1.bf16.msra.mxu0 %v3408_v55  ;;  %1142 = vmatpush1.bf16.msra.mxu1 %v3413_v56 }
 0x181   : > { %1102 = vmatprep.subr.bf16.mxu0 %v3420_v57  ;;  %1143 = vmatprep.subr.bf16.mxu1 %v3425_v58 }
 0x184   : > { %1103 = vmatpush1.bf16.msra.mxu0 %v3432_v59  ;;  %1144 = vmatpush1.bf16.msra.mxu1 %v3437_v60 }
 0x185   : > { %1104 = vmatprep.subr.bf16.mxu0 %v4482_v61  ;;  %1145 = vmatprep.subr.bf16.mxu1 %v4483_v34 }
 0x188   : > { %1105 = vmatpush1.bf16.msra.mxu0 %v3456_v63  ;;  %1146 = vmatpush1.bf16.msra.mxu1 %v3461_v0 }
 0x189   : > { %1106 = vmatprep.subr.bf16.mxu0 %v3468_v1  ;;  %1147 = vmatprep.subr.bf16.mxu1 %v4484_v19 }
 0x18c   : > { %1107 = vmatpush1.bf16.msra.mxu0 %v3480_v38  ;;  %1148 = vmatpush1.bf16.msra.mxu1 %v3485_v4 }
 0x18d   : > { %1202 = vmatprep.subr.bf16.mxu0 %v3199_v2  ;;  %1243 = vmatprep.subr.bf16.mxu1 %v3201_v3 }
 0x18f   : > { %1125 = vmatmul.mubr.bf16.vlgmr.msra.gmra.mxu0 %v1009_v27  ;;  %1166 = vmatmul.mubr.bf16.vlgmr.msra.gmra.mxu1 %v1009_v27  ;;  %v4502_v27 = vld [vmem:[#allocation35_spill] sm:$0xff] }
 0x190   : > { %1203 = vmatpush1.bf16.msra.mxu0 %v3206_v5  ;;  %1244 = vmatpush1.bf16.msra.mxu1 %v3208_v6 }
 0x191   : > { %1204 = vmatprep.subr.bf16.mxu0 %v3211_v7  ;;  %1245 = vmatprep.subr.bf16.mxu1 %v3215_v8 }
 0x192   : > { %1234 = vmatprep.mubr.bf16.mxu0 %v4481_v35  ;;  %1275 = vmatprep.mubr.bf16.mxu1 %v4481_v35 }
 0x194   : > { %1205 = vmatpush1.bf16.msra.mxu0 %v3217_v9  ;;  %1246 = vmatpush1.bf16.msra.mxu1 %v3220_v10 }
 0x195   : > { %1206 = vmatprep.subr.bf16.mxu0 %v3223_v11  ;;  %1247 = vmatprep.subr.bf16.mxu1 %v3225_v12 }
 0x198   : > { %1207 = vmatpush1.bf16.msra.mxu0 %v4485_v21  ;;  %1248 = vmatpush1.bf16.msra.mxu1 %v4486_v26 }
 0x199   : > { %1208 = vmatprep.subr.bf16.mxu0 %v4487_v37  ;;  %1249 = vmatprep.subr.bf16.mxu1 %v4488_v62 }
 0x19c   : > { %1209 = vmatpush1.bf16.msra.mxu0 %v4489_v15  ;;  %1250 = vmatpush1.bf16.msra.mxu1 %v4490_v14 }
 0x19d   : > { %1210 = vmatprep.subr.bf16.mxu0 %v4491_v18  ;;  %1251 = vmatprep.subr.bf16.mxu1 %v4492_v31  ;;  %v4503_v31 = vld [vmem:[#allocation36_spill] sm:$0xff] }
 0x1a0   : > { %1211 = vmatpush1.bf16.msra.mxu0 %v4493_v25  ;;  %1252 = vmatpush1.bf16.msra.mxu1 %v4494_v16  ;;  %v4504_v25 = vld [vmem:[#allocation37_spill] sm:$0xff]  ;;  %v4505_v16 = vld [vmem:[#allocation38_spill] sm:$0xff] }
 0x1a1   : > { %1212 = vmatprep.subr.bf16.mxu0 %v4495_v28  ;;  %1253 = vmatprep.subr.bf16.mxu1 %v4496_v33  ;;  %v4506_v28 = vld [vmem:[#allocation39_spill] sm:$0xff]  ;;  %v4507_v33 = vld [vmem:[#allocation40_spill] sm:$0xff] }
 0x1a4   : > { %1213 = vmatpush1.bf16.msra.mxu0 %v4497_v29  ;;  %1254 = vmatpush1.bf16.msra.mxu1 %v4498_v24  ;;  %v4508_v29 = vld [vmem:[#allocation41_spill] sm:$0xff] }
 0x1a5   : > { %1214 = vmatprep.subr.bf16.mxu0 %v4499_v23  ;;  %1255 = vmatprep.subr.bf16.mxu1 %v4500_v36 }
 0x1a8   : > { %1215 = vmatpush1.bf16.msra.mxu0 %v4501_v22  ;;  %1256 = vmatpush1.bf16.msra.mxu1 %v4502_v27 }
 0x1a9   : > { %1216 = vmatprep.subr.bf16.mxu0 %v4503_v31  ;;  %1257 = vmatprep.subr.bf16.mxu1 %v4504_v25 }
 0x1ac   : > { %1217 = vmatpush1.bf16.msra.mxu0 %v4505_v16  ;;  %1258 = vmatpush1.bf16.msra.mxu1 %v4506_v28 }
 0x1ad   : > { %1284 = vmatprep.subr.bf16.mxu0 %v4507_v33  ;;  %1325 = vmatprep.subr.bf16.mxu1 %v4508_v29 }
 0x22f   : > { %v1044_v24 = vpop.f32.mrf.mxu0  ;;  %v1085_v23 = vpop.f32.mrf.mxu1 }
 0x231   : > { %v1046_v18 = vpop.f32.mrf.mxu0  ;;  %v1087_v36 = vpop.f32.mrf.mxu1 }
 0x233   : > { %v1048_v14 = vpop.f32.mrf.mxu0  ;;  %v1089_v22 = vpop.f32.mrf.mxu1 }
 0x235   : > { %v1049_v15 = vpop.f32.mrf.mxu0  ;;  %v1090_v27 = vpop.f32.mrf.mxu1 }
 0x24f   : > { %v1126_v62 = vpop.f32.mrf.mxu0  ;;  %v1167_v31 = vpop.f32.mrf.mxu1 }
 0x250   : > { %v1127_v37 = vadd.f32 %v1126_v62, %v1044_v24  ;;  %v1168_v29 = vadd.f32 %v1167_v31, %v1085_v23 }
 0x251   : > { %v1128_v25 = vpop.f32.mrf.mxu0  ;;  %v1169_v26 = vpop.f32.mrf.mxu1 }
 0x252   : > { %v1174_v16 = vadd.f32 %v1127_v37, %v3531_v32  ;;  %v1129_v28 = vadd.f32 %v1128_v25, %v1046_v18  ;;  %v1176_v15 = vadd.f32 %v1168_v29, %v3536_v17  ;;  %v1170_v22 = vadd.f32 %v1169_v26, %v1087_v36 }
 0x253   : > { %v1130_v21 = vpop.f32.mrf.mxu0  ;;  %v1171_v33 = vpop.f32.mrf.mxu1 }
 0x254   : > { %v1178_v12 = vmul.f32 0.5, %v1174_v16  ;;  %v1175_v11 = vadd.f32 %v1129_v28, %v3533_v20  ;;  %v1177_v62 = vadd.f32 %v1170_v22, %v3540_v13  ;;  %v4513_v22 = vld [vmem:[#allocation18_spill] sm:$0xff] }
 0x255   : > { %v1131_v10 = vpop.f32.mrf.mxu0  ;;  %v1172_v9 = vpop.f32.mrf.mxu1 }
 0x256   : > { %2791 = vtanh.f32 %v1178_v12  ;;  %v1182_v14 = vmul.f32 0.5, %v1175_v11  ;;  %v1187_v24 = vmul.f32 0.5, %v1177_v62  ;;  %v4518_v62 = vld [vmem:[#allocation23_spill] sm:$0xff] }
 0x258   : > { %2793 = vtanh.f32 %v1182_v14  ;;  %v4509_v14 = vld [vmem:[#allocation14_spill] sm:$0xff] }
 0x259   : > { %2795 = vtanh.f32 %v1176_v15  ;;  %v4510_v15 = vld [vmem:[#allocation15_spill] sm:$0xff] }
 0x25a   : > { %2797 = vtanh.f32 %v1187_v24  ;;  %v4519_v24 = vld [vmem:[#allocation24_spill] sm:$0xff] }
 0x263   : > { %v2792_v37 = vpop.eup %2791 }
 0x264   : > { %v1180_v18 = vmul.f32 0.5, %v2792_v37  ;;  %v4520_v37 = vld [vmem:[#allocation25_spill] sm:$0xff] }
 0x265   : > { %v2794_v21 = vpop.eup %2793 }
 0x266   : > { %v1181_v25 = vadd.f32 0.5, %v1180_v18  ;;  %v1184_v31 = vmul.f32 0.5, %v2794_v21  ;;  %v2796_v10 = vpop.eup %2795  ;;  %v4521_v18 = vld [vmem:[#allocation26_spill] sm:$0xff]  ;;  %v4522_v21 = vld [vmem:[#allocation27_spill] sm:$0xff] }
 0x267   : > { %v2798_v26 = vpop.eup %2797 }
 0x268   : > { %v1185_v16 = vadd.f32 0.5, %v1184_v31  ;;  %v1192_v11 = vmul.f32 %v2796_v10, %v1181_v25  ;;  %v1189_v28 = vmul.f32 0.5, %v2798_v26  ;;  %v4523_v25 = vld [vmem:[#allocation28_spill] sm:$0xff]  ;;  %v4524_v31 = vld [vmem:[#allocation29_spill] sm:$0xff]  ;;  %v4526_v10 = vld [vmem:[#allocation31_spill] sm:$0xff] }
 0x269   : > { %v4529_v26 = vld [vmem:[#allocation34_spill] sm:$0xff] }
 0x26a   : > { %v1191_v9 = vmul.f32 %v1185_v16, %v3543_v30  ;;  %v1190_v33 = vadd.f32 0.5, %v1189_v28  ;;  %v2605_v30 = vld [vmem:[%s3188_s14 + $0x10] sm:$0xff]  ;;  %v4525_v16 = vld [vmem:[#allocation30_spill] sm:$0xff]  ;;  %v4530_v28 = vld [vmem:[#allocation35_spill] sm:$0xff] }
 0x26b   : > { %v1201_v27 = vpack.c.bf16 %v2605_v30, %v2605_v30  ;;  %v4535_v30 = vld [vmem:[#allocation40_spill] sm:$0xff] }
 0x26c   : > { %v3621_v12 = vadd.f32 %v1192_v11, %v1191_v9  ;;  %v4527_v9 = vld [vmem:[#allocation32_spill] sm:$0xff]  ;;  %v4528_v11 = vld [vmem:[#allocation33_spill] sm:$0xff] }
 0x26e   : > { %2799 = vtanh.f32 %v3621_v12 }
 0x27b   : > { %v2800_v29 = vpop.eup %2799 }
 0x27c   : > { %v1195_v23 = vmul.f32 %v2800_v29, %v1190_v33  ;;  %v4531_v33 = vld [vmem:[#allocation36_spill] sm:$0xff]  ;;  %v4532_v29 = vld [vmem:[#allocation37_spill] sm:$0xff] }
 0x27e   : > { %v1196_v36 = vpack.c.bf16 %v1195_v23, %v1195_v23  ;;  %v4533_v23 = vld [vmem:[#allocation38_spill] sm:$0xff] }
 0x280   : > { %2604 = vst [vmem:[%s3193_s17 + $0x4] sm:$0xf] %v1196_v36  ;;  %1235 = vmatmul.mubr.bf16.vlgmr.msra.gmra.mxu0 %v1196_v36  ;;  %1276 = vmatmul.mubr.bf16.vlgmr.msra.gmra.mxu1 %v1196_v36  ;;  %v4534_v36 = vld [vmem:[#allocation39_spill] sm:$0xff] }
 0x281   : > { %1285 = vmatpush1.bf16.msra.mxu0 %v3308_v39  ;;  %1326 = vmatpush1.bf16.msra.mxu1 %v3313_v40 }
 0x282   : > { %1286 = vmatprep.subr.bf16.mxu0 %v3320_v41  ;;  %1327 = vmatprep.subr.bf16.mxu1 %v3327_v42 }
 0x283   : > { %1316 = vmatprep.mubr.bf16.mxu0 %v4481_v35  ;;  %1357 = vmatprep.mubr.bf16.mxu1 %v4481_v35 }
 0x285   : > { %1287 = vmatpush1.bf16.msra.mxu0 %v3332_v43  ;;  %1328 = vmatpush1.bf16.msra.mxu1 %v3339_v44 }
 0x286   : > { %1288 = vmatprep.subr.bf16.mxu0 %v3346_v45  ;;  %1329 = vmatprep.subr.bf16.mxu1 %v3351_v46 }
 0x289   : > { %1289 = vmatpush1.bf16.msra.mxu0 %v3358_v47  ;;  %1330 = vmatpush1.bf16.msra.mxu1 %v3363_v48 }
 0x28a   : > { %1290 = vmatprep.subr.bf16.mxu0 %v3370_v49  ;;  %1331 = vmatprep.subr.bf16.mxu1 %v3377_v50 }
 0x28d   : > { %1291 = vmatpush1.bf16.msra.mxu0 %v3384_v51  ;;  %1332 = vmatpush1.bf16.msra.mxu1 %v3389_v52 }
 0x28e   : > { %1292 = vmatprep.subr.bf16.mxu0 %v3396_v53  ;;  %1333 = vmatprep.subr.bf16.mxu1 %v3401_v54 }
 0x291   : > { %1293 = vmatpush1.bf16.msra.mxu0 %v3408_v55  ;;  %1334 = vmatpush1.bf16.msra.mxu1 %v3413_v56 }
 0x292   : > { %1294 = vmatprep.subr.bf16.mxu0 %v3420_v57  ;;  %1335 = vmatprep.subr.bf16.mxu1 %v3425_v58 }
 0x295   : > { %1295 = vmatpush1.bf16.msra.mxu0 %v3432_v59  ;;  %1336 = vmatpush1.bf16.msra.mxu1 %v3437_v60 }
 0x296   : > { %1296 = vmatprep.subr.bf16.mxu0 %v4482_v61  ;;  %1337 = vmatprep.subr.bf16.mxu1 %v4483_v34 }
 0x299   : > { %1297 = vmatpush1.bf16.msra.mxu0 %v3456_v63  ;;  %1338 = vmatpush1.bf16.msra.mxu1 %v3461_v0 }
 0x29a   : > { %1298 = vmatprep.subr.bf16.mxu0 %v3468_v1  ;;  %1339 = vmatprep.subr.bf16.mxu1 %v4484_v19 }
 0x29d   : > { %1299 = vmatpush1.bf16.msra.mxu0 %v3480_v38  ;;  %1340 = vmatpush1.bf16.msra.mxu1 %v3485_v4 }
 0x29e   : > { %1394 = vmatprep.subr.bf16.mxu0 %v3199_v2  ;;  %1435 = vmatprep.subr.bf16.mxu1 %v3201_v3  ;;  %v4511_v2 = vld [vmem:[#allocation16_spill] sm:$0xff]  ;;  %v4512_v3 = vld [vmem:[#allocation17_spill] sm:$0xff] }
 0x2a0   : > { %1317 = vmatmul.mubr.bf16.vlgmr.msra.gmra.mxu0 %v1201_v27  ;;  %1358 = vmatmul.mubr.bf16.vlgmr.msra.gmra.mxu1 %v1201_v27  ;;  %v4536_v27 = vld [vmem:[#allocation41_spill] sm:$0xff] }
 0x2a1   : > { %1395 = vmatpush1.bf16.msra.mxu0 %v3206_v5  ;;  %1436 = vmatpush1.bf16.msra.mxu1 %v3208_v6  ;;  %v4514_v5 = vld [vmem:[#allocation19_spill] sm:$0xff]  ;;  %v4515_v6 = vld [vmem:[#allocation20_spill] sm:$0xff] }
 0x2a2   : > { %1396 = vmatprep.subr.bf16.mxu0 %v3211_v7  ;;  %1437 = vmatprep.subr.bf16.mxu1 %v3215_v8  ;;  %v4516_v7 = vld [vmem:[#allocation21_spill] sm:$0xff]  ;;  %v4517_v8 = vld [vmem:[#allocation22_spill] sm:$0xff] }
 0x2a3   : > { %1426 = vmatprep.mubr.bf16.mxu0 %v4481_v35  ;;  %1467 = vmatprep.mubr.bf16.mxu1 %v4481_v35 }
 0x2a5   : > { %1397 = vmatpush1.bf16.msra.mxu0 %v4509_v14  ;;  %1438 = vmatpush1.bf16.msra.mxu1 %v4510_v15 }
 0x2a6   : > { %1398 = vmatprep.subr.bf16.mxu0 %v4511_v2  ;;  %1439 = vmatprep.subr.bf16.mxu1 %v4512_v3 }
 0x2a9   : > { %1399 = vmatpush1.bf16.msra.mxu0 %v4513_v22  ;;  %1440 = vmatpush1.bf16.msra.mxu1 %v4514_v5 }
 0x2aa   : > { %1400 = vmatprep.subr.bf16.mxu0 %v4515_v6  ;;  %1441 = vmatprep.subr.bf16.mxu1 %v4516_v7 }
 0x2ad   : > { %1401 = vmatpush1.bf16.msra.mxu0 %v4517_v8  ;;  %1442 = vmatpush1.bf16.msra.mxu1 %v4518_v62 }
 0x2ae   : > { %1402 = vmatprep.subr.bf16.mxu0 %v4519_v24  ;;  %1443 = vmatprep.subr.bf16.mxu1 %v4520_v37 }
 0x2b1   : > { %1403 = vmatpush1.bf16.msra.mxu0 %v4521_v18  ;;  %1444 = vmatpush1.bf16.msra.mxu1 %v4522_v21 }
 0x2b2   : > { %1404 = vmatprep.subr.bf16.mxu0 %v4523_v25  ;;  %1445 = vmatprep.subr.bf16.mxu1 %v4524_v31 }
 0x2b5   : > { %1405 = vmatpush1.bf16.msra.mxu0 %v4525_v16  ;;  %1446 = vmatpush1.bf16.msra.mxu1 %v4526_v10 }
 0x2b6   : > { %1406 = vmatprep.subr.bf16.mxu0 %v4527_v9  ;;  %1447 = vmatprep.subr.bf16.mxu1 %v4528_v11 }
 0x2b9   : > { %1407 = vmatpush1.bf16.msra.mxu0 %v4529_v26  ;;  %1448 = vmatpush1.bf16.msra.mxu1 %v4530_v28 }
 0x2ba   : > { %1408 = vmatprep.subr.bf16.mxu0 %v4531_v33  ;;  %1449 = vmatprep.subr.bf16.mxu1 %v4532_v29 }
 0x2bd   : > { %1409 = vmatpush1.bf16.msra.mxu0 %v4533_v23  ;;  %1450 = vmatpush1.bf16.msra.mxu1 %v4534_v36 }
 0x2be   : > { %1476 = vmatprep.subr.bf16.mxu0 %v4535_v30  ;;  %1517 = vmatprep.subr.bf16.mxu1 %v4536_v27 }
 0x340   : > { %v1236_v14 = vpop.f32.mrf.mxu0  ;;  %v1277_v15 = vpop.f32.mrf.mxu1 }
 0x342   : > { %v1238_v2 = vpop.f32.mrf.mxu0  ;;  %v1279_v3 = vpop.f32.mrf.mxu1 }
 0x344   : > { %v1240_v22 = vpop.f32.mrf.mxu0  ;;  %v1281_v5 = vpop.f32.mrf.mxu1 }
 0x346   : > { %v1241_v6 = vpop.f32.mrf.mxu0  ;;  %v1282_v7 = vpop.f32.mrf.mxu1 }
 0x360   : > { %v1318_v8 = vpop.f32.mrf.mxu0  ;;  %v1359_v62 = vpop.f32.mrf.mxu1 }
 0x361   : > { %v1319_v24 = vadd.f32 %v1318_v8, %v1236_v14  ;;  %v1360_v9 = vadd.f32 %v1359_v62, %v1277_v15 }
 0x362   : > { %v1320_v37 = vpop.f32.mrf.mxu0  ;;  %v1361_v18 = vpop.f32.mrf.mxu1 }
 0x363   : > { %v1366_v21 = vadd.f32 %v1319_v24, %v3531_v32  ;;  %v1321_v25 = vadd.f32 %v1320_v37, %v1238_v2  ;;  %v1368_v29 = vadd.f32 %v1360_v9, %v3536_v17  ;;  %v1362_v23 = vadd.f32 %v1361_v18, %v1279_v3  ;;  %v3816_v9 = vld [vmem:[#allocation5 + $0x20] ss:$16 sps:$4 sm:$0xff]  }
 0x364   : > { %v1322_v31 = vpop.f32.mrf.mxu0  ;;  %v1363_v16 = vpop.f32.mrf.mxu1  ;;  %4557 = vst [vmem:[#allocation31_spill] sm:$0xff] %v3816_v9 }
 0x365   : > { %v1370_v10 = vmul.f32 0.5, %v1366_v21  ;;  %v1367_v11 = vadd.f32 %v1321_v25, %v3533_v20  ;;  %v1369_v36 = vadd.f32 %v1362_v23, %v3540_v13 }
 0x366   : > { %v1323_v26 = vpop.f32.mrf.mxu0  ;;  %v1364_v28 = vpop.f32.mrf.mxu1 }
 0x367   : > { %2801 = vtanh.f32 %v1370_v10  ;;  %v1374_v33 = vmul.f32 0.5, %v1367_v11  ;;  %v1379_v14 = vmul.f32 0.5, %v1369_v36  ;;  %v3813_v10 = vld [vmem:[#allocation5 + $0x2c] ss:$16 sps:$4 sm:$0xff]   ;;  %v3819_v11 = vld [vmem:[#allocation5 + $0x28] ss:$16 sps:$4 sm:$0xff]  }
 0x368   : > { %4556 = vst [vmem:[#allocation30_spill] sm:$0xff] %v3813_v10  ;;  %4558 = vst [vmem:[#allocation32_spill] sm:$0xff] %v3819_v11  ;;  %v3822_v26 = vld [vmem:[#allocation5 + $0x4] ss:$16 sps:$4 sm:$0xff]   ;;  %v3825_v28 = vld [vmem:[#allocation5 + $0xc] ss:$16 sps:$4 sm:$0xff]  }
 0x369   : > { %2803 = vtanh.f32 %v1374_v33  ;;  %4559 = vst [vmem:[#allocation33_spill] sm:$0xff] %v3822_v26  ;;  %4560 = vst [vmem:[#allocation34_spill] sm:$0xff] %v3825_v28  ;;  %v3828_v33 = vld [vmem:[#allocation5] ss:$16 sps:$4 sm:$0xff]  }
 0x36a   : > { %2805 = vtanh.f32 %v1368_v29  ;;  %4561 = vst [vmem:[#allocation35_spill] sm:$0xff] %v3828_v33  ;;  %v3831_v29 = vld [vmem:[#allocation5 + $0x8] ss:$16 sps:$4 sm:$0xff]  }
 0x36b   : > { %2807 = vtanh.f32 %v1379_v14  ;;  %4562 = vst [vmem:[#allocation36_spill] sm:$0xff] %v3831_v29 }
 0x374   : > { %v2802_v22 = vpop.eup %2801 }
 0x375   : > { %v1372_v2 = vmul.f32 0.5, %v2802_v22 }
 0x376   : > { %v2804_v5 = vpop.eup %2803 }
 0x377   : > { %v1373_v6 = vadd.f32 0.5, %v1372_v2  ;;  %v1376_v15 = vmul.f32 0.5, %v2804_v5  ;;  %v2806_v8 = vpop.eup %2805 }
 0x378   : > { %v2808_v3 = vpop.eup %2807 }
 0x379   : > { %v1377_v7 = vadd.f32 0.5, %v1376_v15  ;;  %v1384_v24 = vmul.f32 %v2806_v8, %v1373_v6  ;;  %v1381_v18 = vmul.f32 0.5, %v2808_v3 }
 0x37b   : > { %v1383_v62 = vmul.f32 %v1377_v7, %v3621_v12  ;;  %v1382_v21 = vadd.f32 0.5, %v1381_v18  ;;  %v3810_v12 = vld [vmem:[#allocation5 + $0x24] ss:$16 sps:$4 sm:$0xff]  }
 0x37c   : > { %4555 = vst [vmem:[#allocation29_spill] sm:$0xff] %v3810_v12 }
 0x37d   : > { %v3699_v37 = vadd.f32 %v1384_v24, %v1383_v62 }
 0x37f   : > { %2809 = vtanh.f32 %v3699_v37 }
 0x38c   : > { %v2810_v25 = vpop.eup %2809 }
 0x38d   : > { %v1387_v31 = vmul.f32 %v2810_v25, %v1382_v21 }
 0x38f   : > { %v1388_v16 = vpack.c.bf16 %v1387_v31, %v1387_v31 }
 0x391   : > { %2606 = vst [vmem:[%s3193_s17 + $0x8] sm:$0xf] %v1388_v16  ;;  %1427 = vmatmul.mubr.bf16.vlgmr.msra.gmra.mxu0 %v1388_v16  ;;  %1468 = vmatmul.mubr.bf16.vlgmr.msra.gmra.mxu1 %v1388_v16 }
 0x392   : > { %1477 = vmatpush1.bf16.msra.mxu0 %v3308_v39  ;;  %1518 = vmatpush1.bf16.msra.mxu1 %v3313_v40  ;;  %v2607_v39 = vld [vmem:[%s3188_s14 + $0x18] sm:$0xff] }
 0x393   : > { %1478 = vmatprep.subr.bf16.mxu0 %v3320_v41  ;;  %1519 = vmatprep.subr.bf16.mxu1 %v3327_v42  ;;  %v1393_v40 = vpack.c.bf16 %v2607_v39, %v2607_v39  ;;  %v3736_v41 = vld [vmem:[#allocation5 + $0xe4] ss:$16 sps:$4 sm:$0xff]   ;;  %v3739_v42 = vld [vmem:[#allocation5 + $0xec] ss:$16 sps:$4 sm:$0xff]  }
 0x394   : > { %1508 = vmatprep.mubr.bf16.mxu0 %v4481_v35  ;;  %1549 = vmatprep.mubr.bf16.mxu1 %v4481_v35 }
 0x396   : > { %1479 = vmatpush1.bf16.msra.mxu0 %v3332_v43  ;;  %1520 = vmatpush1.bf16.msra.mxu1 %v3339_v44  ;;  %v3742_v43 = vld [vmem:[#allocation5 + $0xe0] ss:$16 sps:$4 sm:$0xff]   ;;  %v3745_v44 = vld [vmem:[#allocation5 + $0xe8] ss:$16 sps:$4 sm:$0xff]  }
 0x397   : > { %1480 = vmatprep.subr.bf16.mxu0 %v3346_v45  ;;  %1521 = vmatprep.subr.bf16.mxu1 %v3351_v46  ;;  %v3748_v45 = vld [vmem:[#allocation5 + $0xc4] ss:$16 sps:$4 sm:$0xff]   ;;  %v3751_v46 = vld [vmem:[#allocation5 + $0xcc] ss:$16 sps:$4 sm:$0xff]  }
 0x39a   : > { %1481 = vmatpush1.bf16.msra.mxu0 %v3358_v47  ;;  %1522 = vmatpush1.bf16.msra.mxu1 %v3363_v48  ;;  %v3756_v47 = vld [vmem:[#allocation5 + $0xc0] ss:$16 sps:$4 sm:$0xff]   ;;  %v3759_v48 = vld [vmem:[#allocation5 + $0xc8] ss:$16 sps:$4 sm:$0xff]  }
 0x39b   : > { %1482 = vmatprep.subr.bf16.mxu0 %v3370_v49  ;;  %1523 = vmatprep.subr.bf16.mxu1 %v3377_v50  ;;  %4537 = vst [vmem:[#allocation42_spill] sm:$0xff] %v3756_v47  ;;  %4538 = vst [vmem:[#allocation43_spill] sm:$0xff] %v3759_v48  ;;  %v3762_v49 = vld [vmem:[#allocation5 + $0xa4] ss:$16 sps:$4 sm:$0xff]   ;;  %v3765_v50 = vld [vmem:[#allocation5 + $0xac] ss:$16 sps:$4 sm:$0xff]  }
 0x39c   : > { %4539 = vst [vmem:[#allocation44_spill] sm:$0xff] %v3762_v49  ;;  %4540 = vst [vmem:[#allocation14_spill] sm:$0xff] %v3765_v50 }
 0x39e   : > { %1483 = vmatpush1.bf16.msra.mxu0 %v3384_v51  ;;  %1524 = vmatpush1.bf16.msra.mxu1 %v3389_v52  ;;  %v3768_v51 = vld [vmem:[#allocation5 + $0xa0] ss:$16 sps:$4 sm:$0xff]   ;;  %v3771_v52 = vld [vmem:[#allocation5 + $0xa8] ss:$16 sps:$4 sm:$0xff]  }
 0x39f   : > { %1484 = vmatprep.subr.bf16.mxu0 %v3396_v53  ;;  %1525 = vmatprep.subr.bf16.mxu1 %v3401_v54  ;;  %4541 = vst [vmem:[#allocation15_spill] sm:$0xff] %v3768_v51  ;;  %4542 = vst [vmem:[#allocation16_spill] sm:$0xff] %v3771_v52  ;;  %v3774_v53 = vld [vmem:[#allocation5 + $0x84] ss:$16 sps:$4 sm:$0xff]   ;;  %v3777_v54 = vld [vmem:[#allocation5 + $0x8c] ss:$16 sps:$4 sm:$0xff]  }
 0x3a0   : > { %4543 = vst [vmem:[#allocation17_spill] sm:$0xff] %v3774_v53  ;;  %4544 = vst [vmem:[#allocation18_spill] sm:$0xff] %v3777_v54 }
 0x3a2   : > { %1485 = vmatpush1.bf16.msra.mxu0 %v3408_v55  ;;  %1526 = vmatpush1.bf16.msra.mxu1 %v3413_v56  ;;  %v3780_v55 = vld [vmem:[#allocation5 + $0x80] ss:$16 sps:$4 sm:$0xff]   ;;  %v3783_v56 = vld [vmem:[#allocation5 + $0x88] ss:$16 sps:$4 sm:$0xff]  }
 0x3a3   : > { %1486 = vmatprep.subr.bf16.mxu0 %v3420_v57  ;;  %1527 = vmatprep.subr.bf16.mxu1 %v3425_v58  ;;  %4545 = vst [vmem:[#allocation19_spill] sm:$0xff] %v3780_v55  ;;  %4546 = vst [vmem:[#allocation20_spill] sm:$0xff] %v3783_v56  ;;  %v3786_v57 = vld [vmem:[#allocation5 + $0x64] ss:$16 sps:$4 sm:$0xff]   ;;  %v3789_v58 = vld [vmem:[#allocation5 + $0x6c] ss:$16 sps:$4 sm:$0xff]  }
 0x3a4   : > { %4547 = vst [vmem:[#allocation21_spill] sm:$0xff] %v3786_v57  ;;  %4548 = vst [vmem:[#allocation22_spill] sm:$0xff] %v3789_v58 }
 0x3a6   : > { %1487 = vmatpush1.bf16.msra.mxu0 %v3432_v59  ;;  %1528 = vmatpush1.bf16.msra.mxu1 %v3437_v60  ;;  %v3792_v59 = vld [vmem:[#allocation5 + $0x60] ss:$16 sps:$4 sm:$0xff]   ;;  %v3795_v60 = vld [vmem:[#allocation5 + $0x68] ss:$16 sps:$4 sm:$0xff]  }
 0x3a7   : > { %1488 = vmatprep.subr.bf16.mxu0 %v4482_v61  ;;  %1529 = vmatprep.subr.bf16.mxu1 %v4483_v34  ;;  %4549 = vst [vmem:[#allocation23_spill] sm:$0xff] %v3792_v59  ;;  %4550 = vst [vmem:[#allocation24_spill] sm:$0xff] %v3795_v60  ;;  %v3804_v61 = vld [vmem:[#allocation5 + $0x40] ss:$16 sps:$4 sm:$0xff]   ;;  %v3807_v34 = vld [vmem:[#allocation5 + $0x48] ss:$16 sps:$4 sm:$0xff]  }
 0x3a8   : > { %4553 = vst [vmem:[#allocation27_spill] sm:$0xff] %v3804_v61  ;;  %4554 = vst [vmem:[#allocation28_spill] sm:$0xff] %v3807_v34 }
 0x3aa   : > { %1489 = vmatpush1.bf16.msra.mxu0 %v3456_v63  ;;  %1530 = vmatpush1.bf16.msra.mxu1 %v3461_v0  ;;  %v3798_v63 = vld [vmem:[#allocation5 + $0x44] ss:$16 sps:$4 sm:$0xff]   ;;  %v3801_v0 = vld [vmem:[#allocation5 + $0x4c] ss:$16 sps:$4 sm:$0xff]  }
 0x3ab   : > { %1490 = vmatprep.subr.bf16.mxu0 %v3468_v1  ;;  %1531 = vmatprep.subr.bf16.mxu1 %v4484_v19  ;;  %4551 = vst [vmem:[#allocation25_spill] sm:$0xff] %v3798_v63  ;;  %4552 = vst [vmem:[#allocation26_spill] sm:$0xff] %v3801_v0 }
 0x3ae   : > { %1491 = vmatpush1.bf16.msra.mxu0 %v3480_v38  ;;  %1532 = vmatpush1.bf16.msra.mxu1 %v3485_v4 }
 0x3af   : > { %1586 = vmatprep.subr.bf16.mxu0 %v3736_v41  ;;  %1627 = vmatprep.subr.bf16.mxu1 %v3739_v42 }
 0x3b1   : > { %1509 = vmatmul.mubr.bf16.vlgmr.msra.gmra.mxu0 %v1393_v40  ;;  %1550 = vmatmul.mubr.bf16.vlgmr.msra.gmra.mxu1 %v1393_v40 }
 0x3b2   : > { %1587 = vmatpush1.bf16.msra.mxu0 %v3742_v43  ;;  %1628 = vmatpush1.bf16.msra.mxu1 %v3745_v44 }
 0x3b3   : > { %1588 = vmatprep.subr.bf16.mxu0 %v3748_v45  ;;  %1629 = vmatprep.subr.bf16.mxu1 %v3751_v46 }
 0x3b4   : > { %1618 = vmatprep.mubr.bf16.mxu0 %v4481_v35  ;;  %1659 = vmatprep.mubr.bf16.mxu1 %v4481_v35 }
 0x3b6   : > { %1589 = vmatpush1.bf16.msra.mxu0 %v3756_v47  ;;  %1630 = vmatpush1.bf16.msra.mxu1 %v3759_v48 }
 0x3b7   : > { %1590 = vmatprep.subr.bf16.mxu0 %v3762_v49  ;;  %1631 = vmatprep.subr.bf16.mxu1 %v3765_v50 }
 0x3ba   : > { %1591 = vmatpush1.bf16.msra.mxu0 %v3768_v51  ;;  %1632 = vmatpush1.bf16.msra.mxu1 %v3771_v52 }
 0x3bb   : > { %1592 = vmatprep.subr.bf16.mxu0 %v3774_v53  ;;  %1633 = vmatprep.subr.bf16.mxu1 %v3777_v54 }
 0x3be   : > { %1593 = vmatpush1.bf16.msra.mxu0 %v3780_v55  ;;  %1634 = vmatpush1.bf16.msra.mxu1 %v3783_v56 }
 0x3bf   : > { %1594 = vmatprep.subr.bf16.mxu0 %v3786_v57  ;;  %1635 = vmatprep.subr.bf16.mxu1 %v3789_v58 }
 0x3c2   : > { %1595 = vmatpush1.bf16.msra.mxu0 %v3792_v59  ;;  %1636 = vmatpush1.bf16.msra.mxu1 %v3795_v60 }
 0x3c3   : > { %1596 = vmatprep.subr.bf16.mxu0 %v3798_v63  ;;  %1637 = vmatprep.subr.bf16.mxu1 %v3801_v0 }
 0x3c6   : > { %1597 = vmatpush1.bf16.msra.mxu0 %v3804_v61  ;;  %1638 = vmatpush1.bf16.msra.mxu1 %v3807_v34 }
 0x3c7   : > { %1598 = vmatprep.subr.bf16.mxu0 %v3810_v12  ;;  %1639 = vmatprep.subr.bf16.mxu1 %v3813_v10 }
 0x3ca   : > { %1599 = vmatpush1.bf16.msra.mxu0 %v3816_v9  ;;  %1640 = vmatpush1.bf16.msra.mxu1 %v3819_v11 }
 0x3cb   : > { %1600 = vmatprep.subr.bf16.mxu0 %v3822_v26  ;;  %1641 = vmatprep.subr.bf16.mxu1 %v3825_v28 }
 0x3ce   : > { %1601 = vmatpush1.bf16.msra.mxu0 %v3828_v33  ;;  %1642 = vmatpush1.bf16.msra.mxu1 %v3831_v29 }
 0x3cf   : > { %1668 = vmatprep.subr.bf16.mxu0 %v4535_v30  ;;  %1709 = vmatprep.subr.bf16.mxu1 %v4536_v27 }
 0x451   : > { %v1428_v23 = vpop.f32.mrf.mxu0  ;;  %v1469_v36 = vpop.f32.mrf.mxu1 }
 0x453   : > { %v1430_v14 = vpop.f32.mrf.mxu0  ;;  %v1471_v22 = vpop.f32.mrf.mxu1 }
 0x455   : > { %v1432_v2 = vpop.f32.mrf.mxu0  ;;  %v1473_v5 = vpop.f32.mrf.mxu1 }
 0x457   : > { %v1433_v6 = vpop.f32.mrf.mxu0  ;;  %v1474_v15 = vpop.f32.mrf.mxu1 }
 0x471   : > { %v1510_v7 = vpop.f32.mrf.mxu0  ;;  %v1551_v8 = vpop.f32.mrf.mxu1 }
 0x472   : > { %v1511_v62 = vadd.f32 %v1510_v7, %v1428_v23  ;;  %v1552_v27 = vadd.f32 %v1551_v8, %v1469_v36 }
 0x473   : > { %v1512_v24 = vpop.f32.mrf.mxu0  ;;  %v1553_v3 = vpop.f32.mrf.mxu1 }
 0x474   : > { %v1558_v18 = vadd.f32 %v1511_v62, %v3531_v32  ;;  %v1513_v21 = vadd.f32 %v1512_v24, %v1430_v14  ;;  %v1560_v5 = vadd.f32 %v1552_v27, %v3536_v17  ;;  %v1554_v6 = vadd.f32 %v1553_v3, %v1471_v22 }
 0x475   : > { %v1514_v25 = vpop.f32.mrf.mxu0  ;;  %v1555_v30 = vpop.f32.mrf.mxu1 }
 0x476   : > { %v1562_v31 = vmul.f32 0.5, %v1558_v18  ;;  %v1559_v16 = vadd.f32 %v1513_v21, %v3533_v20  ;;  %v1561_v23 = vadd.f32 %v1554_v6, %v3540_v13  ;;  %v3874_v6 = vld [vmem:[%s4318_s3 + $0xc0] ss:$16 sps:$4 sm:$0xff]  }
 0x477   : > { %v1515_v39 = vpop.f32.mrf.mxu0  ;;  %v1556_v40 = vpop.f32.mrf.mxu1 }
 0x478   : > { %2811 = vtanh.f32 %v1562_v31  ;;  %v1566_v2 = vmul.f32 0.5, %v1559_v16  ;;  %v1571_v15 = vmul.f32 0.5, %v1561_v23  ;;  %v3848_v40 = vld [vmem:[%s4318_s3 + $0xe0] ss:$16 sps:$4 sm:$0xff]   ;;  %v3880_v23 = vld [vmem:[%s4318_s3 + $0xc8] ss:$16 sps:$4 sm:$0xff]  }
 0x47a   : > { %2813 = vtanh.f32 %v1566_v2  ;;  %v3860_v2 = vld [vmem:[%s4318_s3 + $0xc4] ss:$16 sps:$4 sm:$0xff]  }
 0x47b   : > { %2815 = vtanh.f32 %v1560_v5  ;;  %v3866_v5 = vld [vmem:[%s4318_s3 + $0xcc] ss:$16 sps:$4 sm:$0xff]  }
 0x47c   : > { %2817 = vtanh.f32 %v1571_v15  ;;  %v3886_v15 = vld [vmem:[%s4318_s3 + $0xa4] ss:$16 sps:$4 sm:$0xff]  }
 0x485   : > { %v2812_v7 = vpop.eup %2811 }
 0x486   : > { %v1564_v14 = vmul.f32 0.5, %v2812_v7  ;;  %v3892_v7 = vld [vmem:[%s4318_s3 + $0xac] ss:$16 sps:$4 sm:$0xff]  }
 0x487   : > { %v2814_v62 = vpop.eup %2813 }
 0x488   : > { %v1565_v24 = vadd.f32 0.5, %v1564_v14  ;;  %v1568_v36 = vmul.f32 0.5, %v2814_v62  ;;  %v2816_v18 = vpop.eup %2815  ;;  %v3898_v14 = vld [vmem:[%s4318_s3 + $0xa0] ss:$16 sps:$4 sm:$0xff]   ;;  %v3904_v62 = vld [vmem:[%s4318_s3 + $0xa8] ss:$16 sps:$4 sm:$0xff]  }
 0x489   : > { %v2818_v22 = vpop.eup %2817 }
 0x48a   : > { %v1569_v8 = vadd.f32 0.5, %v1568_v36  ;;  %v1576_v25 = vmul.f32 %v2816_v18, %v1565_v24  ;;  %v1573_v3 = vmul.f32 0.5, %v2818_v22  ;;  %v3910_v24 = vld [vmem:[%s4318_s3 + $0x84] ss:$16 sps:$4 sm:$0xff]   ;;  %v3916_v36 = vld [vmem:[%s4318_s3 + $0x8c] ss:$16 sps:$4 sm:$0xff]  }
 0x48b   : > { %v3928_v18 = vld [vmem:[%s4318_s3 + $0x88] ss:$16 sps:$4 sm:$0xff]   ;;  %v3946_v22 = vld [vmem:[%s4318_s3 + $0x60] ss:$16 sps:$4 sm:$0xff]  }
 0x48c   : > { %v1575_v21 = vmul.f32 %v1569_v8, %v3699_v37  ;;  %v1574_v31 = vadd.f32 0.5, %v1573_v3  ;;  %v3854_v37 = vld [vmem:[%s4318_s3 + $0xe8] ss:$16 sps:$4 sm:$0xff]   ;;  %v3922_v8 = vld [vmem:[%s4318_s3 + $0x80] ss:$16 sps:$4 sm:$0xff]  }
 0x48d   : > { %v3952_v3 = vld [vmem:[%s4318_s3 + $0x68] ss:$16 sps:$4 sm:$0xff]  }
 0x48e   : > { %v3841_v30 = vadd.f32 %v1576_v25, %v1575_v21  ;;  %v3934_v21 = vld [vmem:[%s4318_s3 + $0x64] ss:$16 sps:$4 sm:$0xff]   ;;  %v3940_v25 = vld [vmem:[%s4318_s3 + $0x6c] ss:$16 sps:$4 sm:$0xff]  }
 0x490   : > { %2819 = vtanh.f32 %v3841_v30 }
 0x49d   : > { %v2820_v27 = vpop.eup %2819 }
 0x49e   : > { %v1579_v16 = vmul.f32 %v2820_v27, %v1574_v31  ;;  %v3958_v31 = vld [vmem:[%s4318_s3 + $0x44] ss:$16 sps:$4 sm:$0xff]   ;;  %v3964_v27 = vld [vmem:[%s4318_s3 + $0x4c] ss:$16 sps:$4 sm:$0xff]  }
 0x49f   : > { %4563 = vst [vmem:[#allocation37_spill] sm:$0xff] %v3958_v31  ;;  %4564 = vst [vmem:[#allocation38_spill] sm:$0xff] %v3964_v27 }
 0x4a0   : > { %v1580_v39 = vpack.c.bf16 %v1579_v16, %v1579_v16  ;;  %v3970_v16 = vld [vmem:[%s4318_s3 + $0x40] ss:$16 sps:$4 sm:$0xff]  }
 0x4a1   : > { %4565 = vst [vmem:[#allocation39_spill] sm:$0xff] %v3970_v16 }
 0x4a2   : > { %2608 = vst [vmem:[%s3193_s17 + $0xc] sm:$0xf] %v1580_v39  ;;  %1619 = vmatmul.mubr.bf16.vlgmr.msra.gmra.mxu0 %v1580_v39  ;;  %1660 = vmatmul.mubr.bf16.vlgmr.msra.gmra.mxu1 %v1580_v39  ;;  %v3976_v39 = vld [vmem:[%s4318_s3 + $0x48] ss:$16 sps:$4 sm:$0xff]  }
 0x4a3   : > { %1669 = vmatpush1.bf16.msra.mxu0 %v3848_v40  ;;  %1710 = vmatpush1.bf16.msra.mxu1 %v3854_v37  ;;  %4566 = vst [vmem:[#allocation40_spill] sm:$0xff] %v3976_v39 }
 0x4a4   : > { %1670 = vmatprep.subr.bf16.mxu0 %v3860_v2  ;;  %1711 = vmatprep.subr.bf16.mxu1 %v3866_v5 }
 0x4a5   : > { %1700 = vmatprep.mubr.bf16.mxu0 %v4481_v35  ;;  %1741 = vmatprep.mubr.bf16.mxu1 %v4481_v35 }
 0x4a7   : > { %1671 = vmatpush1.bf16.msra.mxu0 %v3874_v6  ;;  %1712 = vmatpush1.bf16.msra.mxu1 %v3880_v23 }
 0x4a8   : > { %1672 = vmatprep.subr.bf16.mxu0 %v3886_v15  ;;  %1713 = vmatprep.subr.bf16.mxu1 %v3892_v7 }
 0x4ab   : > { %1673 = vmatpush1.bf16.msra.mxu0 %v3898_v14  ;;  %1714 = vmatpush1.bf16.msra.mxu1 %v3904_v62 }
 0x4ac   : > { %1674 = vmatprep.subr.bf16.mxu0 %v3910_v24  ;;  %1715 = vmatprep.subr.bf16.mxu1 %v3916_v36 }
 0x4af   : > { %1675 = vmatpush1.bf16.msra.mxu0 %v3922_v8  ;;  %1716 = vmatpush1.bf16.msra.mxu1 %v3928_v18 }
 0x4b0   : > { %1676 = vmatprep.subr.bf16.mxu0 %v3934_v21  ;;  %1717 = vmatprep.subr.bf16.mxu1 %v3940_v25 }
 0x4b3   : > { %1677 = vmatpush1.bf16.msra.mxu0 %v3946_v22  ;;  %1718 = vmatpush1.bf16.msra.mxu1 %v3952_v3 }
 0x4b4   : > { %1678 = vmatprep.subr.bf16.mxu0 %v3958_v31  ;;  %1719 = vmatprep.subr.bf16.mxu1 %v3964_v27  ;;  %v3982_v31 = vld [vmem:[%s4318_s3 + $0x24] ss:$16 sps:$4 sm:$0xff]   ;;  %v3988_v27 = vld [vmem:[%s4318_s3 + $0x2c] ss:$16 sps:$4 sm:$0xff]  }
 0x4b5   : > { %4567 = vst [vmem:[#allocation41_spill] sm:$0xff] %v3982_v31  ;;  %4568 = vst [vmem:[#allocation45_spill] sm:$0xff] %v3988_v27 }
 0x4b7   : > { %1679 = vmatpush1.bf16.msra.mxu0 %v3970_v16  ;;  %1720 = vmatpush1.bf16.msra.mxu1 %v3976_v39  ;;  %v3994_v16 = vld [vmem:[%s4318_s3 + $0x20] ss:$16 sps:$4 sm:$0xff]   ;;  %v4000_v39 = vld [vmem:[%s4318_s3 + $0x28] ss:$16 sps:$4 sm:$0xff]  }
 0x4b8   : > { %1680 = vmatprep.subr.bf16.mxu0 %v3982_v31  ;;  %1721 = vmatprep.subr.bf16.mxu1 %v3988_v27  ;;  %v2609_v31 = vld [vmem:[%s3188_s14 + $0x20] sm:$0xff] }
 0x4b9   : > { %v1585_v27 = vpack.c.bf16 %v2609_v31, %v2609_v31 }
 0x4bb   : > { %1681 = vmatpush1.bf16.msra.mxu0 %v3994_v16  ;;  %1722 = vmatpush1.bf16.msra.mxu1 %v4000_v39 }
 0x4bc   : > { %1682 = vmatprep.subr.bf16.mxu0 %v3468_v1  ;;  %1723 = vmatprep.subr.bf16.mxu1 %v4484_v19  ;;  %v4051_v1 = vld [vmem:[%s4318_s3 + $0xec] ss:$16 sps:$4 sm:$0xff]  }
 0x4bd   : > { %4570 = vst [vmem:[#allocation47_spill] sm:$0xff] %v4051_v1 }
 0x4bf   : > { %1683 = vmatpush1.bf16.msra.mxu0 %v3480_v38  ;;  %1724 = vmatpush1.bf16.msra.mxu1 %v3485_v4  ;;  %v4045_v4 = vld [vmem:[%s4318_s3 + $0xe4] ss:$16 sps:$4 sm:$0xff]  }
 0x4c0   : > { %1778 = vmatprep.subr.bf16.mxu0 %v3736_v41  ;;  %1819 = vmatprep.subr.bf16.mxu1 %v3739_v42  ;;  %4569 = vst [vmem:[#allocation46_spill] sm:$0xff] %v4045_v4 }
 0x4c2   : > { %1701 = vmatmul.mubr.bf16.vlgmr.msra.gmra.mxu0 %v1585_v27  ;;  %1742 = vmatmul.mubr.bf16.vlgmr.msra.gmra.mxu1 %v1585_v27 }
 0x4c3   : > { %1779 = vmatpush1.bf16.msra.mxu0 %v3742_v43  ;;  %1820 = vmatpush1.bf16.msra.mxu1 %v3745_v44 }
 0x4c4   : > { %1780 = vmatprep.subr.bf16.mxu0 %v3748_v45  ;;  %1821 = vmatprep.subr.bf16.mxu1 %v3751_v46 }
 0x4c5   : > { %1810 = vmatprep.mubr.bf16.mxu0 %v4481_v35  ;;  %1851 = vmatprep.mubr.bf16.mxu1 %v4481_v35 }
 0x4c7   : > { %1781 = vmatpush1.bf16.msra.mxu0 %v3756_v47  ;;  %1822 = vmatpush1.bf16.msra.mxu1 %v3759_v48 }
 0x4c8   : > { %1782 = vmatprep.subr.bf16.mxu0 %v3762_v49  ;;  %1823 = vmatprep.subr.bf16.mxu1 %v3765_v50 }
 0x4cb   : > { %1783 = vmatpush1.bf16.msra.mxu0 %v3768_v51  ;;  %1824 = vmatpush1.bf16.msra.mxu1 %v3771_v52 }
 0x4cc   : > { %1784 = vmatprep.subr.bf16.mxu0 %v3774_v53  ;;  %1825 = vmatprep.subr.bf16.mxu1 %v3777_v54 }
 0x4cf   : > { %1785 = vmatpush1.bf16.msra.mxu0 %v3780_v55  ;;  %1826 = vmatpush1.bf16.msra.mxu1 %v3783_v56 }
 0x4d0   : > { %1786 = vmatprep.subr.bf16.mxu0 %v3786_v57  ;;  %1827 = vmatprep.subr.bf16.mxu1 %v3789_v58 }
 0x4d3   : > { %1787 = vmatpush1.bf16.msra.mxu0 %v3792_v59  ;;  %1828 = vmatpush1.bf16.msra.mxu1 %v3795_v60 }
 0x4d4   : > { %1788 = vmatprep.subr.bf16.mxu0 %v3798_v63  ;;  %1829 = vmatprep.subr.bf16.mxu1 %v3801_v0 }
 0x4d7   : > { %1789 = vmatpush1.bf16.msra.mxu0 %v3804_v61  ;;  %1830 = vmatpush1.bf16.msra.mxu1 %v3807_v34 }
 0x4d8   : > { %1790 = vmatprep.subr.bf16.mxu0 %v3810_v12  ;;  %1831 = vmatprep.subr.bf16.mxu1 %v3813_v10 }
 0x4db   : > { %1791 = vmatpush1.bf16.msra.mxu0 %v3816_v9  ;;  %1832 = vmatpush1.bf16.msra.mxu1 %v3819_v11 }
 0x4dc   : > { %1792 = vmatprep.subr.bf16.mxu0 %v3822_v26  ;;  %1833 = vmatprep.subr.bf16.mxu1 %v3825_v28 }
 0x4df   : > { %1793 = vmatpush1.bf16.msra.mxu0 %v3828_v33  ;;  %1834 = vmatpush1.bf16.msra.mxu1 %v3831_v29 }
 0x4e0   : > { %1860 = vmatprep.subr.bf16.mxu0 %v4045_v4  ;;  %1901 = vmatprep.subr.bf16.mxu1 %v4051_v1 }
 0x562   : > { %v1620_v38 = vpop.f32.mrf.mxu0  ;;  %v1661_v19 = vpop.f32.mrf.mxu1 }
 0x564   : > { %v1622_v31 = vpop.f32.mrf.mxu0  ;;  %v1663_v27 = vpop.f32.mrf.mxu1 }
 0x566   : > { %v1624_v33 = vpop.f32.mrf.mxu0  ;;  %v1665_v29 = vpop.f32.mrf.mxu1 }
 0x568   : > { %v1625_v28 = vpop.f32.mrf.mxu0  ;;  %v1666_v26 = vpop.f32.mrf.mxu1 }
 0x582   : > { %v1702_v11 = vpop.f32.mrf.mxu0  ;;  %v1743_v9 = vpop.f32.mrf.mxu1 }
 0x583   : > { %v1703_v10 = vadd.f32 %v1702_v11, %v1620_v38  ;;  %v1744_v1 = vadd.f32 %v1743_v9, %v1661_v19 }
 0x584   : > { %v1704_v12 = vpop.f32.mrf.mxu0  ;;  %v1745_v4 = vpop.f32.mrf.mxu1 }
 0x585   : > { %v1750_v34 = vadd.f32 %v1703_v10, %v3531_v32  ;;  %v1705_v61 = vadd.f32 %v1704_v12, %v1622_v31  ;;  %v1752_v26 = vadd.f32 %v1744_v1, %v3536_v17  ;;  %v1746_v28 = vadd.f32 %v1745_v4, %v1663_v27  ;;  %v4572_v27 = vld [vmem:[#allocation38_spill] sm:$0xff] }
 0x586   : > { %v1706_v0 = vpop.f32.mrf.mxu0  ;;  %v1747_v63 = vpop.f32.mrf.mxu1 }
 0x587   : > { %v1754_v60 = vmul.f32 0.5, %v1750_v34  ;;  %v1751_v59 = vadd.f32 %v1705_v61, %v3533_v20  ;;  %v1753_v11 = vadd.f32 %v1746_v28, %v3540_v13  ;;  %v4575_v28 = vld [vmem:[#allocation41_spill] sm:$0xff] }
 0x588   : > { %v1707_v58 = vpop.f32.mrf.mxu0  ;;  %v1748_v57 = vpop.f32.mrf.mxu1 }
 0x589   : > { %2821 = vtanh.f32 %v1754_v60  ;;  %v1758_v33 = vmul.f32 0.5, %v1751_v59  ;;  %v1763_v29 = vmul.f32 0.5, %v1753_v11  ;;  %v4576_v11 = vld [vmem:[#allocation45_spill] sm:$0xff] }
 0x58b   : > { %2823 = vtanh.f32 %v1758_v33  ;;  %v4573_v33 = vld [vmem:[#allocation39_spill] sm:$0xff] }
 0x58c   : > { %2825 = vtanh.f32 %v1752_v26  ;;  %v4574_v26 = vld [vmem:[#allocation40_spill] sm:$0xff] }
 0x58d   : > { %2827 = vtanh.f32 %v1763_v29  ;;  %v2611_v29 = vld [vmem:[%s3188_s14 + $0x28] sm:$0xff] }
 0x596   : > { %v2822_v10 = vpop.eup %2821 }
 0x597   : > { %v1756_v12 = vmul.f32 0.5, %v2822_v10  ;;  %v4095_v10 = vld [vmem:[%s4318_s3 + $0x4] ss:$16 sps:$4 sm:$0xff]  }
 0x598   : > { %v2824_v0 = vpop.eup %2823 }
 0x599   : > { %v1757_v63 = vadd.f32 0.5, %v1756_v12  ;;  %v1760_v34 = vmul.f32 0.5, %v2824_v0  ;;  %v2826_v58 = vpop.eup %2825  ;;  %v4101_v12 = vld [vmem:[%s4318_s3 + $0xc] ss:$16 sps:$4 sm:$0xff]   ;;  %v1777_v0 = vpack.c.bf16 %v2611_v29, %v2611_v29  ;;  %v4587_v29 = vld [vmem:[#allocation31_spill] sm:$0xff] }
 0x59a   : > { %v2828_v9 = vpop.eup %2827 }
 0x59b   : > { %v1761_v61 = vadd.f32 0.5, %v1760_v34  ;;  %v1768_v59 = vmul.f32 %v2826_v58, %v1757_v63  ;;  %v1765_v4 = vmul.f32 0.5, %v2828_v9  ;;  %v4107_v63 = vld [vmem:[%s4318_s3] ss:$16 sps:$4 sm:$0xff]   ;;  %v4113_v34 = vld [vmem:[%s4318_s3 + $0x8] ss:$16 sps:$4 sm:$0xff]  }
 0x59c   : > { %v4578_v58 = vld [vmem:[#allocation22_spill] sm:$0xff]  ;;  %v4581_v9 = vld [vmem:[#allocation25_spill] sm:$0xff] }
 0x59d   : > { %v1767_v57 = vmul.f32 %v1761_v61, %v3841_v30  ;;  %v1766_v1 = vadd.f32 0.5, %v1765_v4  ;;  %v4571_v30 = vld [vmem:[#allocation37_spill] sm:$0xff]  ;;  %v4582_v4 = vld [vmem:[#allocation26_spill] sm:$0xff] }
 0x59e   : > { %v4577_v61 = vld [vmem:[#allocation21_spill] sm:$0xff] }
 0x59f   : > { %v4059_v60 = vadd.f32 %v1768_v59, %v1767_v57  ;;  %v4579_v57 = vld [vmem:[#allocation23_spill] sm:$0xff]  ;;  %v4580_v59 = vld [vmem:[#allocation24_spill] sm:$0xff] }
 0x5a1   : > { %2829 = vtanh.f32 %v4059_v60 }
 0x5ae   : > { %v2830_v38 = vpop.eup %2829 }
 0x5af   : > { %v1771_v19 = vmul.f32 %v2830_v38, %v1766_v1  ;;  %v4583_v1 = vld [vmem:[#allocation27_spill] sm:$0xff]  ;;  %v4584_v38 = vld [vmem:[#allocation28_spill] sm:$0xff] }
 0x5b1   : > { %v1772_v31 = vpack.c.bf16 %v1771_v19, %v1771_v19  ;;  %v4585_v19 = vld [vmem:[#allocation29_spill] sm:$0xff] }
 0x5b3   : > { %2610 = vst [vmem:[%s3193_s17 + $0x10] sm:$0xf] %v1772_v31  ;;  %1811 = vmatmul.mubr.bf16.vlgmr.msra.gmra.mxu0 %v1772_v31  ;;  %1852 = vmatmul.mubr.bf16.vlgmr.msra.gmra.mxu1 %v1772_v31  ;;  %v4586_v31 = vld [vmem:[#allocation30_spill] sm:$0xff] }
 0x5b4   : > { %1861 = vmatpush1.bf16.msra.mxu0 %v3848_v40  ;;  %1902 = vmatpush1.bf16.msra.mxu1 %v3854_v37 }
 0x5b5   : > { %1862 = vmatprep.subr.bf16.mxu0 %v3860_v2  ;;  %1903 = vmatprep.subr.bf16.mxu1 %v3866_v5 }
 0x5b6   : > { %1892 = vmatprep.mubr.bf16.mxu0 %v4481_v35  ;;  %1933 = vmatprep.mubr.bf16.mxu1 %v4481_v35 }
 0x5b8   : > { %1863 = vmatpush1.bf16.msra.mxu0 %v3874_v6  ;;  %1904 = vmatpush1.bf16.msra.mxu1 %v3880_v23 }
 0x5b9   : > { %1864 = vmatprep.subr.bf16.mxu0 %v3886_v15  ;;  %1905 = vmatprep.subr.bf16.mxu1 %v3892_v7 }
 0x5bc   : > { %1865 = vmatpush1.bf16.msra.mxu0 %v3898_v14  ;;  %1906 = vmatpush1.bf16.msra.mxu1 %v3904_v62 }
 0x5bd   : > { %1866 = vmatprep.subr.bf16.mxu0 %v3910_v24  ;;  %1907 = vmatprep.subr.bf16.mxu1 %v3916_v36 }
 0x5c0   : > { %1867 = vmatpush1.bf16.msra.mxu0 %v3922_v8  ;;  %1908 = vmatpush1.bf16.msra.mxu1 %v3928_v18 }
 0x5c1   : > { %1868 = vmatprep.subr.bf16.mxu0 %v3934_v21  ;;  %1909 = vmatprep.subr.bf16.mxu1 %v3940_v25 }
 0x5c4   : > { %1869 = vmatpush1.bf16.msra.mxu0 %v3946_v22  ;;  %1910 = vmatpush1.bf16.msra.mxu1 %v3952_v3 }
 0x5c5   : > { %1870 = vmatprep.subr.bf16.mxu0 %v4571_v30  ;;  %1911 = vmatprep.subr.bf16.mxu1 %v4572_v27 }
 0x5c8   : > { %1871 = vmatpush1.bf16.msra.mxu0 %v4573_v33  ;;  %1912 = vmatpush1.bf16.msra.mxu1 %v4574_v26 }
 0x5c9   : > { %1872 = vmatprep.subr.bf16.mxu0 %v4575_v28  ;;  %1913 = vmatprep.subr.bf16.mxu1 %v4576_v11 }
 0x5cc   : > { %1873 = vmatpush1.bf16.msra.mxu0 %v3994_v16  ;;  %1914 = vmatpush1.bf16.msra.mxu1 %v4000_v39 }
 0x5cd   : > { %1874 = vmatprep.subr.bf16.mxu0 %v4095_v10  ;;  %1915 = vmatprep.subr.bf16.mxu1 %v4101_v12 }
 0x5d0   : > { %1875 = vmatpush1.bf16.msra.mxu0 %v4107_v63  ;;  %1916 = vmatpush1.bf16.msra.mxu1 %v4113_v34 }
 0x5d1   : > { %1970 = vmatprep.subr.bf16.mxu0 %v3736_v41  ;;  %2011 = vmatprep.subr.bf16.mxu1 %v3739_v42 }
 0x5d3   : > { %1893 = vmatmul.mubr.bf16.vlgmr.msra.gmra.mxu0 %v1777_v0  ;;  %1934 = vmatmul.mubr.bf16.vlgmr.msra.gmra.mxu1 %v1777_v0  ;;  %v4588_v0 = vld [vmem:[#allocation32_spill] sm:$0xff] }
 0x5d4   : > { %1971 = vmatpush1.bf16.msra.mxu0 %v3742_v43  ;;  %2012 = vmatpush1.bf16.msra.mxu1 %v3745_v44 }
 0x5d5   : > { %1972 = vmatprep.subr.bf16.mxu0 %v3748_v45  ;;  %2013 = vmatprep.subr.bf16.mxu1 %v3751_v46 }
 0x5d6   : > { %2002 = vmatprep.mubr.bf16.mxu0 %v4481_v35  ;;  %2043 = vmatprep.mubr.bf16.mxu1 %v4481_v35 }
 0x5d8   : > { %1973 = vmatpush1.bf16.msra.mxu0 %v3756_v47  ;;  %2014 = vmatpush1.bf16.msra.mxu1 %v3759_v48 }
 0x5d9   : > { %1974 = vmatprep.subr.bf16.mxu0 %v3762_v49  ;;  %2015 = vmatprep.subr.bf16.mxu1 %v3765_v50 }
 0x5dc   : > { %1975 = vmatpush1.bf16.msra.mxu0 %v3768_v51  ;;  %2016 = vmatpush1.bf16.msra.mxu1 %v3771_v52 }
 0x5dd   : > { %1976 = vmatprep.subr.bf16.mxu0 %v3774_v53  ;;  %2017 = vmatprep.subr.bf16.mxu1 %v3777_v54 }
 0x5e0   : > { %1977 = vmatpush1.bf16.msra.mxu0 %v3780_v55  ;;  %2018 = vmatpush1.bf16.msra.mxu1 %v3783_v56 }
 0x5e1   : > { %1978 = vmatprep.subr.bf16.mxu0 %v4577_v61  ;;  %2019 = vmatprep.subr.bf16.mxu1 %v4578_v58  ;;  %v4589_v58 = vld [vmem:[#allocation33_spill] sm:$0xff] }
 0x5e4   : > { %1979 = vmatpush1.bf16.msra.mxu0 %v4579_v57  ;;  %2020 = vmatpush1.bf16.msra.mxu1 %v4580_v59  ;;  %v4590_v57 = vld [vmem:[#allocation34_spill] sm:$0xff]  ;;  %v4591_v59 = vld [vmem:[#allocation35_spill] sm:$0xff] }
 0x5e5   : > { %1980 = vmatprep.subr.bf16.mxu0 %v4581_v9  ;;  %2021 = vmatprep.subr.bf16.mxu1 %v4582_v4  ;;  %v4592_v9 = vld [vmem:[#allocation36_spill] sm:$0xff]  ;;  %v4593_v4 = vld [vmem:[#allocation46_spill] sm:$0xff] }
 0x5e8   : > { %1981 = vmatpush1.bf16.msra.mxu0 %v4583_v1  ;;  %2022 = vmatpush1.bf16.msra.mxu1 %v4584_v38  ;;  %v4594_v1 = vld [vmem:[#allocation47_spill] sm:$0xff] }
 0x5e9   : > { %1982 = vmatprep.subr.bf16.mxu0 %v4585_v19  ;;  %2023 = vmatprep.subr.bf16.mxu1 %v4586_v31 }
 0x5ec   : > { %1983 = vmatpush1.bf16.msra.mxu0 %v4587_v29  ;;  %2024 = vmatpush1.bf16.msra.mxu1 %v4588_v0 }
 0x5ed   : > { %1984 = vmatprep.subr.bf16.mxu0 %v4589_v58  ;;  %2025 = vmatprep.subr.bf16.mxu1 %v4590_v57 }
 0x5f0   : > { %1985 = vmatpush1.bf16.msra.mxu0 %v4591_v59  ;;  %2026 = vmatpush1.bf16.msra.mxu1 %v4592_v9 }
 0x5f1   : > { %2052 = vmatprep.subr.bf16.mxu0 %v4593_v4  ;;  %2093 = vmatprep.subr.bf16.mxu1 %v4594_v1 }
 0x673   : > { %v1812_v38 = vpop.f32.mrf.mxu0  ;;  %v1853_v19 = vpop.f32.mrf.mxu1 }
 0x675   : > { %v1814_v61 = vpop.f32.mrf.mxu0  ;;  %v1855_v31 = vpop.f32.mrf.mxu1 }
 0x677   : > { %v1816_v56 = vpop.f32.mrf.mxu0  ;;  %v1857_v29 = vpop.f32.mrf.mxu1 }
 0x679   : > { %v1817_v55 = vpop.f32.mrf.mxu0  ;;  %v1858_v0 = vpop.f32.mrf.mxu1 }
 0x693   : > { %v1894_v54 = vpop.f32.mrf.mxu0  ;;  %v1935_v58 = vpop.f32.mrf.mxu1 }
 0x694   : > { %v1895_v53 = vadd.f32 %v1894_v54, %v1812_v38  ;;  %v1936_v1 = vadd.f32 %v1935_v58, %v1853_v19 }
 0x695   : > { %v1896_v57 = vpop.f32.mrf.mxu0  ;;  %v1937_v52 = vpop.f32.mrf.mxu1 }
 0x696   : > { %v1942_v59 = vadd.f32 %v1895_v53, %v3531_v32  ;;  %v1897_v9 = vadd.f32 %v1896_v57, %v1814_v61  ;;  %v1944_v55 = vadd.f32 %v1936_v1, %v3536_v17  ;;  %v1938_v29 = vadd.f32 %v1937_v52, %v1855_v31 }
 0x697   : > { %v1898_v51 = vpop.f32.mrf.mxu0  ;;  %v1939_v4 = vpop.f32.mrf.mxu1 }
 0x698   : > { %v1946_v50 = vmul.f32 0.5, %v1942_v59  ;;  %v1943_v49 = vadd.f32 %v1897_v9, %v3533_v20  ;;  %v1945_v54 = vadd.f32 %v1938_v29, %v3540_v13  ;;  %v4599_v29 = vld [vmem:[#allocation15_spill] sm:$0xff] }
 0x699   : > { %v1899_v48 = vpop.f32.mrf.mxu0  ;;  %v1940_v47 = vpop.f32.mrf.mxu1 }
 0x69a   : > { %2831 = vtanh.f32 %v1946_v50  ;;  %v1950_v56 = vmul.f32 0.5, %v1943_v49  ;;  %v1955_v38 = vmul.f32 0.5, %v1945_v54  ;;  %v4604_v54 = vld [vmem:[#allocation20_spill] sm:$0xff] }
 0x69c   : > { %2833 = vtanh.f32 %v1950_v56  ;;  %v4595_v56 = vld [vmem:[#allocation42_spill] sm:$0xff] }
 0x69d   : > { %2835 = vtanh.f32 %v1944_v55  ;;  %v4596_v55 = vld [vmem:[#allocation43_spill] sm:$0xff] }
 0x69e   : > { %2837 = vtanh.f32 %v1955_v38  ;;  %v4605_v38 = vld [vmem:[#allocation21_spill] sm:$0xff] }
 0x6a7   : > { %v2832_v53 = vpop.eup %2831 }
 0x6a8   : > { %v1948_v61 = vmul.f32 0.5, %v2832_v53  ;;  %v4606_v53 = vld [vmem:[#allocation22_spill] sm:$0xff] }
 0x6a9   : > { %v2834_v51 = vpop.eup %2833 }
 0x6aa   : > { %v1949_v57 = vadd.f32 0.5, %v1948_v61  ;;  %v1952_v58 = vmul.f32 0.5, %v2834_v51  ;;  %v2836_v48 = vpop.eup %2835  ;;  %v4607_v61 = vld [vmem:[#allocation23_spill] sm:$0xff]  ;;  %v4608_v51 = vld [vmem:[#allocation24_spill] sm:$0xff] }
 0x6ab   : > { %v2838_v52 = vpop.eup %2837 }
 0x6ac   : > { %v1953_v59 = vadd.f32 0.5, %v1952_v58  ;;  %v1960_v49 = vmul.f32 %v2836_v48, %v1949_v57  ;;  %v1957_v9 = vmul.f32 0.5, %v2838_v52  ;;  %v4609_v57 = vld [vmem:[#allocation25_spill] sm:$0xff]  ;;  %v4610_v58 = vld [vmem:[#allocation26_spill] sm:$0xff]  ;;  %v4612_v48 = vld [vmem:[#allocation28_spill] sm:$0xff] }
 0x6ad   : > { %v4615_v52 = vld [vmem:[#allocation31_spill] sm:$0xff] }
 0x6ae   : > { %v1959_v47 = vmul.f32 %v1953_v59, %v4059_v60  ;;  %v1958_v4 = vadd.f32 0.5, %v1957_v9  ;;  %v2613_v60 = vld [vmem:[%s3188_s14 + $0x30] sm:$0xff]  ;;  %v4611_v59 = vld [vmem:[#allocation27_spill] sm:$0xff]  ;;  %v4616_v9 = vld [vmem:[#allocation32_spill] sm:$0xff] }
 0x6af   : > { %v1969_v0 = vpack.c.bf16 %v2613_v60, %v2613_v60  ;;  %v4621_v60 = vld [vmem:[#allocation46_spill] sm:$0xff] }
 0x6b0   : > { %v4157_v50 = vadd.f32 %v1960_v49, %v1959_v47  ;;  %v4613_v47 = vld [vmem:[#allocation29_spill] sm:$0xff]  ;;  %v4614_v49 = vld [vmem:[#allocation30_spill] sm:$0xff] }
 0x6b2   : > { %2839 = vtanh.f32 %v4157_v50 }
 0x6bf   : > { %v2840_v1 = vpop.eup %2839 }
 0x6c0   : > { %v1963_v19 = vmul.f32 %v2840_v1, %v1958_v4  ;;  %v4617_v4 = vld [vmem:[#allocation33_spill] sm:$0xff]  ;;  %v4618_v1 = vld [vmem:[#allocation34_spill] sm:$0xff] }
 0x6c2   : > { %v1964_v31 = vpack.c.bf16 %v1963_v19, %v1963_v19  ;;  %v4619_v19 = vld [vmem:[#allocation35_spill] sm:$0xff] }
 0x6c4   : > { %2612 = vst [vmem:[%s3193_s17 + $0x14] sm:$0xf] %v1964_v31  ;;  %2003 = vmatmul.mubr.bf16.vlgmr.msra.gmra.mxu0 %v1964_v31  ;;  %2044 = vmatmul.mubr.bf16.vlgmr.msra.gmra.mxu1 %v1964_v31  ;;  %v4620_v31 = vld [vmem:[#allocation36_spill] sm:$0xff] }
 0x6c5   : > { %2053 = vmatpush1.bf16.msra.mxu0 %v3848_v40  ;;  %2094 = vmatpush1.bf16.msra.mxu1 %v3854_v37 }
 0x6c6   : > { %2054 = vmatprep.subr.bf16.mxu0 %v3860_v2  ;;  %2095 = vmatprep.subr.bf16.mxu1 %v3866_v5 }
 0x6c7   : > { %2084 = vmatprep.mubr.bf16.mxu0 %v4481_v35  ;;  %2125 = vmatprep.mubr.bf16.mxu1 %v4481_v35 }
 0x6c9   : > { %2055 = vmatpush1.bf16.msra.mxu0 %v3874_v6  ;;  %2096 = vmatpush1.bf16.msra.mxu1 %v3880_v23 }
 0x6ca   : > { %2056 = vmatprep.subr.bf16.mxu0 %v3886_v15  ;;  %2097 = vmatprep.subr.bf16.mxu1 %v3892_v7 }
 0x6cd   : > { %2057 = vmatpush1.bf16.msra.mxu0 %v3898_v14  ;;  %2098 = vmatpush1.bf16.msra.mxu1 %v3904_v62 }
 0x6ce   : > { %2058 = vmatprep.subr.bf16.mxu0 %v3910_v24  ;;  %2099 = vmatprep.subr.bf16.mxu1 %v3916_v36 }
 0x6d1   : > { %2059 = vmatpush1.bf16.msra.mxu0 %v3922_v8  ;;  %2100 = vmatpush1.bf16.msra.mxu1 %v3928_v18 }
 0x6d2   : > { %2060 = vmatprep.subr.bf16.mxu0 %v3934_v21  ;;  %2101 = vmatprep.subr.bf16.mxu1 %v3940_v25 }
 0x6d5   : > { %2061 = vmatpush1.bf16.msra.mxu0 %v3946_v22  ;;  %2102 = vmatpush1.bf16.msra.mxu1 %v3952_v3 }
 0x6d6   : > { %2062 = vmatprep.subr.bf16.mxu0 %v4571_v30  ;;  %2103 = vmatprep.subr.bf16.mxu1 %v4572_v27 }
 0x6d9   : > { %2063 = vmatpush1.bf16.msra.mxu0 %v4573_v33  ;;  %2104 = vmatpush1.bf16.msra.mxu1 %v4574_v26 }
 0x6da   : > { %2064 = vmatprep.subr.bf16.mxu0 %v4575_v28  ;;  %2105 = vmatprep.subr.bf16.mxu1 %v4576_v11 }
 0x6dd   : > { %2065 = vmatpush1.bf16.msra.mxu0 %v3994_v16  ;;  %2106 = vmatpush1.bf16.msra.mxu1 %v4000_v39 }
 0x6de   : > { %2066 = vmatprep.subr.bf16.mxu0 %v4095_v10  ;;  %2107 = vmatprep.subr.bf16.mxu1 %v4101_v12 }
 0x6e1   : > { %2067 = vmatpush1.bf16.msra.mxu0 %v4107_v63  ;;  %2108 = vmatpush1.bf16.msra.mxu1 %v4113_v34 }
 0x6e2   : > { %2162 = vmatprep.subr.bf16.mxu0 %v3736_v41  ;;  %2203 = vmatprep.subr.bf16.mxu1 %v3739_v42  ;;  %v4597_v41 = vld [vmem:[#allocation44_spill] sm:$0xff]  ;;  %v4598_v42 = vld [vmem:[#allocation14_spill] sm:$0xff] }
 0x6e4   : > { %2085 = vmatmul.mubr.bf16.vlgmr.msra.gmra.mxu0 %v1969_v0  ;;  %2126 = vmatmul.mubr.bf16.vlgmr.msra.gmra.mxu1 %v1969_v0  ;;  %v4622_v0 = vld [vmem:[#allocation47_spill] sm:$0xff] }
 0x6e5   : > { %2163 = vmatpush1.bf16.msra.mxu0 %v3742_v43  ;;  %2204 = vmatpush1.bf16.msra.mxu1 %v3745_v44  ;;  %v4600_v43 = vld [vmem:[#allocation16_spill] sm:$0xff]  ;;  %v4601_v44 = vld [vmem:[#allocation17_spill] sm:$0xff] }
 0x6e6   : > { %2164 = vmatprep.subr.bf16.mxu0 %v3748_v45  ;;  %2205 = vmatprep.subr.bf16.mxu1 %v3751_v46  ;;  %v4602_v45 = vld [vmem:[#allocation18_spill] sm:$0xff]  ;;  %v4603_v46 = vld [vmem:[#allocation19_spill] sm:$0xff] }
 0x6e7   : > { %2194 = vmatprep.mubr.bf16.mxu0 %v4481_v35  ;;  %2235 = vmatprep.mubr.bf16.mxu1 %v4481_v35 }
 0x6e9   : > { %2165 = vmatpush1.bf16.msra.mxu0 %v4595_v56  ;;  %2206 = vmatpush1.bf16.msra.mxu1 %v4596_v55 }
 0x6ea   : > { %2166 = vmatprep.subr.bf16.mxu0 %v4597_v41  ;;  %2207 = vmatprep.subr.bf16.mxu1 %v4598_v42 }
 0x6ed   : > { %2167 = vmatpush1.bf16.msra.mxu0 %v4599_v29  ;;  %2208 = vmatpush1.bf16.msra.mxu1 %v4600_v43 }
 0x6ee   : > { %2168 = vmatprep.subr.bf16.mxu0 %v4601_v44  ;;  %2209 = vmatprep.subr.bf16.mxu1 %v4602_v45 }
 0x6f1   : > { %2169 = vmatpush1.bf16.msra.mxu0 %v4603_v46  ;;  %2210 = vmatpush1.bf16.msra.mxu1 %v4604_v54 }
 0x6f2   : > { %2170 = vmatprep.subr.bf16.mxu0 %v4605_v38  ;;  %2211 = vmatprep.subr.bf16.mxu1 %v4606_v53 }
 0x6f5   : > { %2171 = vmatpush1.bf16.msra.mxu0 %v4607_v61  ;;  %2212 = vmatpush1.bf16.msra.mxu1 %v4608_v51 }
 0x6f6   : > { %2172 = vmatprep.subr.bf16.mxu0 %v4609_v57  ;;  %2213 = vmatprep.subr.bf16.mxu1 %v4610_v58 }
 0x6f9   : > { %2173 = vmatpush1.bf16.msra.mxu0 %v4611_v59  ;;  %2214 = vmatpush1.bf16.msra.mxu1 %v4612_v48 }
 0x6fa   : > { %2174 = vmatprep.subr.bf16.mxu0 %v4613_v47  ;;  %2215 = vmatprep.subr.bf16.mxu1 %v4614_v49 }
 0x6fd   : > { %2175 = vmatpush1.bf16.msra.mxu0 %v4615_v52  ;;  %2216 = vmatpush1.bf16.msra.mxu1 %v4616_v9 }
 0x6fe   : > { %2176 = vmatprep.subr.bf16.mxu0 %v4617_v4  ;;  %2217 = vmatprep.subr.bf16.mxu1 %v4618_v1 }
 0x701   : > { %2177 = vmatpush1.bf16.msra.mxu0 %v4619_v19  ;;  %2218 = vmatpush1.bf16.msra.mxu1 %v4620_v31 }
 0x702   : > { %2244 = vmatprep.subr.bf16.mxu0 %v4621_v60  ;;  %2285 = vmatprep.subr.bf16.mxu1 %v4622_v0 }
 0x784   : > { %v2004_v56 = vpop.f32.mrf.mxu0  ;;  %v2045_v55 = vpop.f32.mrf.mxu1 }
 0x786   : > { %v2006_v41 = vpop.f32.mrf.mxu0  ;;  %v2047_v42 = vpop.f32.mrf.mxu1 }
 0x788   : > { %v2008_v29 = vpop.f32.mrf.mxu0  ;;  %v2049_v43 = vpop.f32.mrf.mxu1 }
 0x78a   : > { %v2009_v44 = vpop.f32.mrf.mxu0  ;;  %v2050_v45 = vpop.f32.mrf.mxu1 }
 0x7a4   : > { %v2086_v46 = vpop.f32.mrf.mxu0  ;;  %v2127_v54 = vpop.f32.mrf.mxu1 }
 0x7a5   : > { %v2087_v38 = vadd.f32 %v2086_v46, %v2004_v56  ;;  %v2128_v47 = vadd.f32 %v2127_v54, %v2045_v55 }
 0x7a6   : > { %v2088_v53 = vpop.f32.mrf.mxu0  ;;  %v2129_v61 = vpop.f32.mrf.mxu1 }
 0x7a7   : > { %v2134_v51 = vadd.f32 %v2087_v38, %v3531_v32  ;;  %v2089_v57 = vadd.f32 %v2088_v53, %v2006_v41  ;;  %v2136_v1 = vadd.f32 %v2128_v47, %v3536_v17  ;;  %v2130_v19 = vadd.f32 %v2129_v61, %v2047_v42 }
 0x7a8   : > { %v2090_v58 = vpop.f32.mrf.mxu0  ;;  %v2131_v59 = vpop.f32.mrf.mxu1 }
 0x7a9   : > { %v2138_v48 = vmul.f32 0.5, %v2134_v51  ;;  %v2135_v49 = vadd.f32 %v2089_v57, %v3533_v20  ;;  %v2137_v31 = vadd.f32 %v2130_v19, %v3540_v13 }
 0x7aa   : > { %v2091_v52 = vpop.f32.mrf.mxu0  ;;  %v2132_v9 = vpop.f32.mrf.mxu1 }
 0x7ab   : > { %2841 = vtanh.f32 %v2138_v48  ;;  %v2142_v4 = vmul.f32 0.5, %v2135_v49  ;;  %v2147_v60 = vmul.f32 0.5, %v2137_v31 }
 0x7ad   : > { %2843 = vtanh.f32 %v2142_v4 }
 0x7ae   : > { %2845 = vtanh.f32 %v2136_v1 }
 0x7af   : > { %2847 = vtanh.f32 %v2147_v60 }
 0x7b8   : > { %v2842_v0 = vpop.eup %2841 }
 0x7b9   : > { %v2140_v56 = vmul.f32 0.5, %v2842_v0 }
 0x7ba   : > { %v2844_v41 = vpop.eup %2843 }
 0x7bb   : > { %v2141_v29 = vadd.f32 0.5, %v2140_v56  ;;  %v2144_v55 = vmul.f32 0.5, %v2844_v41  ;;  %v2846_v44 = vpop.eup %2845 }
 0x7bc   : > { %v2848_v42 = vpop.eup %2847 }
 0x7bd   : > { %v2145_v43 = vadd.f32 0.5, %v2144_v55  ;;  %v2152_v46 = vmul.f32 %v2846_v44, %v2141_v29  ;;  %v2149_v38 = vmul.f32 0.5, %v2848_v42 }
 0x7bf   : > { %v2151_v45 = vmul.f32 %v2145_v43, %v4157_v50  ;;  %v2150_v53 = vadd.f32 0.5, %v2149_v38 }
 0x7c1   : > { %v4235_v54 = vadd.f32 %v2152_v46, %v2151_v45 }
 0x7c3   : > { %2849 = vtanh.f32 %v4235_v54 }
 0x7d0   : > { %v2850_v61 = vpop.eup %2849 }
 0x7d1   : > { %v2155_v51 = vmul.f32 %v2850_v61, %v2150_v53 }
 0x7d3   : > { %v2156_v57 = vpack.c.bf16 %v2155_v51, %v2155_v51 }
 0x7d5   : > { %2614 = vst [vmem:[%s3193_s17 + $0x18] sm:$0xf] %v2156_v57  ;;  %2195 = vmatmul.mubr.bf16.vlgmr.msra.gmra.mxu0 %v2156_v57  ;;  %2236 = vmatmul.mubr.bf16.vlgmr.msra.gmra.mxu1 %v2156_v57 }
 0x7d6   : > { %2245 = vmatpush1.bf16.msra.mxu0 %v3848_v40  ;;  %2286 = vmatpush1.bf16.msra.mxu1 %v3854_v37 }
 0x7d7   : > { %2246 = vmatprep.subr.bf16.mxu0 %v3860_v2  ;;  %2287 = vmatprep.subr.bf16.mxu1 %v3866_v5 }
 0x7d8   : > { %2276 = vmatprep.mubr.bf16.mxu0 %v4481_v35  ;;  %2317 = vmatprep.mubr.bf16.mxu1 %v4481_v35  ;;  %v2615_v35 = vld [vmem:[%s3188_s14 + $0x38] sm:$0xff]  ;;  %s3070_s14 = smov [#allocation8]  }
 0x7d9   : > { %v2161_v40 = vpack.c.bf16 %v2615_v35, %v2615_v35  ;;  %s2387_s20 = sshll.u32 %s3070_s14, 4  ;;  %s2388_s20 = int_to_ptr.vmem [resolvable:$true] %s2387_s20 }
 0x7da   : > { %2247 = vmatpush1.bf16.msra.mxu0 %v3874_v6  ;;  %2288 = vmatpush1.bf16.msra.mxu1 %v3880_v23  ;;  %s2977_s22 = scalar_lea.vmem %s2388_s20, 128  ;;  %p2984_p0 = scmp.lt.s32.totalorder %s2388_s20, %s2388_s20 }
 0x7db   : > { %2248 = vmatprep.subr.bf16.mxu0 %v3886_v15  ;;  %2289 = vmatprep.subr.bf16.mxu1 %v3892_v7  ;;  %p2978_p7 = scmp.ne.s32.totalorder %s2388_s20, %s2977_s22  ;;  %p2985_p1 = scmp.lt.s32.totalorder %s2977_s22, %s2977_s22 }
 0x7dd   : > { %p2979_p12 = pnand %p2978_p7, %p4279_p6  ;;  %p2986_p2 = por %p2985_p1, %p2984_p0 }
 0x7de   : > { %2249 = vmatpush1.bf16.msra.mxu0 %v3898_v14  ;;  %2290 = vmatpush1.bf16.msra.mxu1 %v3904_v62 }
 0x7df   : > { %2250 = vmatprep.subr.bf16.mxu0 %v3910_v24  ;;  %2291 = vmatprep.subr.bf16.mxu1 %v3916_v36  ;;  %p2980_p13 = pneg %p2979_p12 }
 0x7e1   : > { %p2987_p5 = pnand %p2986_p2, %p2980_p13 }
 0x7e2   : > { %2251 = vmatpush1.bf16.msra.mxu0 %v3922_v8  ;;  %2292 = vmatpush1.bf16.msra.mxu1 %v3928_v18 }
 0x7e3   : > { %2252 = vmatprep.subr.bf16.mxu0 %v3934_v21  ;;  %2293 = vmatprep.subr.bf16.mxu1 %v3940_v25 }
 0x7e6   : > { %2253 = vmatpush1.bf16.msra.mxu0 %v3946_v22  ;;  %2294 = vmatpush1.bf16.msra.mxu1 %v3952_v3 }
 0x7e7   : > { %2254 = vmatprep.subr.bf16.mxu0 %v4571_v30  ;;  %2295 = vmatprep.subr.bf16.mxu1 %v4572_v27 }
 0x7ea   : > { %2255 = vmatpush1.bf16.msra.mxu0 %v4573_v33  ;;  %2296 = vmatpush1.bf16.msra.mxu1 %v4574_v26 }
 0x7eb   : > { %2256 = vmatprep.subr.bf16.mxu0 %v4575_v28  ;;  %2297 = vmatprep.subr.bf16.mxu1 %v4576_v11 }
 0x7ee   : > { %2257 = vmatpush1.bf16.msra.mxu0 %v3994_v16  ;;  %2298 = vmatpush1.bf16.msra.mxu1 %v4000_v39 }
 0x7ef   : > { %2258 = vmatprep.subr.bf16.mxu0 %v4095_v10  ;;  %2299 = vmatprep.subr.bf16.mxu1 %v4101_v12 }
 0x7f2   : > { %2259 = vmatpush1.bf16.msra.mxu0 %v4107_v63  ;;  %2300 = vmatpush1.bf16.msra.mxu1 %v4113_v34 }
 0x7f5   : > { %2277 = vmatmul.mubr.bf16.vlgmr.msra.gmra.mxu0 %v2161_v40  ;;  %2318 = vmatmul.mubr.bf16.vlgmr.msra.gmra.mxu1 %v2161_v40 }
 0x895   : > { %v2196_v37 = vpop.f32.mrf.mxu0  ;;  %v2237_v2 = vpop.f32.mrf.mxu1 }
 0x897   : > { %v2198_v5 = vpop.f32.mrf.mxu0  ;;  %v2239_v6 = vpop.f32.mrf.mxu1 }
 0x899   : > { %v2200_v23 = vpop.f32.mrf.mxu0  ;;  %v2241_v15 = vpop.f32.mrf.mxu1 }
 0x89b   : > { %v2201_v7 = vpop.f32.mrf.mxu0  ;;  %v2242_v14 = vpop.f32.mrf.mxu1 }
 0x8b5   : > { %v2278_v62 = vpop.f32.mrf.mxu0  ;;  %v2319_v24 = vpop.f32.mrf.mxu1 }
 0x8b6   : > { %v2279_v36 = vadd.f32 %v2278_v62, %v2196_v37  ;;  %v2320_v39 = vadd.f32 %v2319_v24, %v2237_v2 }
 0x8b7   : > { %v2280_v8 = vpop.f32.mrf.mxu0  ;;  %v2321_v18 = vpop.f32.mrf.mxu1 }
 0x8b8   : > { %v2326_v21 = vadd.f32 %v2279_v36, %v3531_v32  ;;  %v2281_v25 = vadd.f32 %v2280_v8, %v2198_v5  ;;  %v2328_v28 = vadd.f32 %v2320_v39, %v3536_v17  ;;  %v2322_v11 = vadd.f32 %v2321_v18, %v2239_v6 }
 0x8b9   : > { %v2282_v22 = vpop.f32.mrf.mxu0  ;;  %v2323_v3 = vpop.f32.mrf.mxu1 }
 0x8ba   : > { %v2330_v16 = vmul.f32 0.5, %v2326_v21  ;;  %v2327_v30 = vadd.f32 %v2281_v25, %v3533_v20  ;;  %v2329_v10 = vadd.f32 %v2322_v11, %v3540_v13 }
 0x8bb   : > { %v2283_v27 = vpop.f32.mrf.mxu0  ;;  %v2324_v33 = vpop.f32.mrf.mxu1 }
 0x8bc   : > { %2851 = vtanh.f32 %v2330_v16  ;;  %v2334_v26 = vmul.f32 0.5, %v2327_v30  ;;  %v2339_v32 = vmul.f32 0.5, %v2329_v10 }
 0x8be   : > { %2853 = vtanh.f32 %v2334_v26 }
 0x8bf   : > { %2855 = vtanh.f32 %v2328_v28 }
 0x8c0   : > { %2857 = vtanh.f32 %v2339_v32 }
 0x8c9   : > { %v2852_v12 = vpop.eup %2851 }
 0x8ca   : > { %v2332_v63 = vmul.f32 0.5, %v2852_v12 }
 0x8cb   : > { %v2854_v34 = vpop.eup %2853 }
 0x8cc   : > { %v2333_v50 = vadd.f32 0.5, %v2332_v63  ;;  %v2336_v58 = vmul.f32 0.5, %v2854_v34  ;;  %v2856_v59 = vpop.eup %2855 }
 0x8ce   : > { %v2337_v20 = vadd.f32 0.5, %v2336_v58  ;;  %v2344_v17 = vmul.f32 %v2856_v59, %v2333_v50 }
 0x8d0   : > { %v2343_v48 = vmul.f32 %v2337_v20, %v4235_v54 }
 0x8d2   : > { %v2345_v13 = vadd.f32 %v2344_v17, %v2343_v48 }
 0x8d4   : > { %2859 = vtanh.f32 %v2345_v13  ;;  %2352 = vst [vmem:[#allocation8] sm:$0xff] %v2345_v13 }
 0x8d5   : > { %2990 = shalt.err (!%p2987_p5)
}
 0x8d6   : > { %2634 = dma.vmem_to_hbm [thread:$0]  (%p4279_p6), %s2388_s20, 128, %s4323_s8, [#allocation9]   ;;  %v2858_v47 = vpop.eup %2857 }
 0x8d7   : > { %v2341_v49 = vmul.f32 0.5, %v2858_v47  ;;  %s3071_s24 = smov [#allocation7]  }
 0x8d8   : > { %s2374_s25 = sshll.u32 %s3071_s24, 4  ;;  %s2375_s25 = int_to_ptr.vmem [resolvable:$true] %s2374_s25 }
 0x8d9   : > { %v2342_v52 = vadd.f32 0.5, %v2341_v49  ;;  %s3001_s26 = scalar_lea.vmem %s2375_s25, 128  ;;  %p3008_p11 = scmp.lt.s32.totalorder %s2375_s25, %s2375_s25 }
 0x8da   : > { %p3002_p8 = scmp.ne.s32.totalorder %s2375_s25, %s3001_s26  ;;  %p3009_p3 = scmp.lt.s32.totalorder %s3001_s26, %s3001_s26 }
 0x8dc   : > { %p3003_p9 = pnand %p3002_p8, %p4279_p6  ;;  %p3010_p4 = por %p3009_p3, %p3008_p11 }
 0x8de   : > { %p3004_p10 = pneg %p3003_p9 }
 0x8e0   : > { %p3011_p7 = pnand %p3010_p4, %p3004_p10 }
 0x8e1   : > { %v2860_v9 = vpop.eup %2859 }
 0x8e2   : > { %v2347_v4 = vmul.f32 %v2860_v9, %v2342_v52 }
 0x8e4   : > { %v2348_v1 = vpack.c.bf16 %v2347_v4, %v2347_v4  ;;  %2351 = vst [vmem:[#allocation7] sm:$0xff] %v2347_v4 }
 0x8e5   : > { %3014 = shalt.err (!%p3011_p7)
}
 0x8e6   : > { %2632 = dma.vmem_to_hbm [thread:$0]  (%p4279_p6), %s2375_s25, 128, %s4322_s7, [#allocation4]   ;;  %2616 = vst [vmem:[%s3193_s17 + $0x1c] sm:$0xf] %v2348_v1 }
 0x8e7   : > { %3046 = dma.done.wait (%p4279_p6), [#allocation4], 128  }
 0x8e8   : > { %3048 = vsyncadd (%p4279_p6), [#allocation4], 4294967168 }
 0x8e9   : > { %3050 = dma.done.wait (%p4279_p6), [#allocation9], 128  }
 0x8ea   : > { %3052 = vsyncadd (%p4279_p6), [#allocation9], 4294967168 }
 0x8eb PF: > { %s23_s29 = sadd.s32 1, %s3063_s29   ;;  %s4624_s27 = smov %s3059_s28 }
 0x8ec   : > { %p20_p12 = scmp.ge.s32.totalorder %s23_s29, 4   ;;  %s4625_s28 = smov %s4627_s9 }
 0x8ee   :  { %22 = sbr.rel (!%p20_p12) target bundleno = 5 (0x5), region = 124 }
 0x8f3   :  { %2415 = vsyncpa [#allocation3], 1 }
 0x8f4   :  { %2417 = vsyncpa [#allocation3 + $0x1], 1 }
 0x8f5   :  { %2418 = vsyncpa [#allocation6], 1 }
 0x8f6   :  { %2419 = vsyncpa [#allocation4], 1 }
 0x8f7   :  { %2421 = vsyncpa [#allocation4 + $0x1], 1 }
 0x8f8   :  { %2422 = vsyncpa [#allocation9], 1 }

</bundles_post_ra>
